<compile_context>
chip_gen: v6e
topology: v6e:2x2x1
jax: 0.10.0
libtpu: 0.0.40
codegen_flags: <defaults>
</compile_context>

<pallas_src>
import numpy as np
import jax
import jax.numpy as jnp
from jax.experimental import pallas as pl
from jax.experimental.pallas import tpu as pltpu

NUM_BINS = 4
# (input H == W, Cin, Cout) for conv1..conv4 (each followed by ReLU + 2x2 pool)
LAYERS = ((32, 1, 8), (16, 8, 8), (8, 8, 8), (4, 8, 4))


# ----------------------------------------------------------------------------
# The single fused kernel (one grid step = one batch chunk of NB images)
# ----------------------------------------------------------------------------

def _histres_kernel(*refs):
    f32 = jnp.float32
    nL = len(LAYERS)
    x_ref = refs[0]
    lrefs = refs[1:1 + 5 * nL]
    (fh, w5s, b5big, ereps, hw, hc, msum, wcat, bfc) = \
        refs[1 + 5 * nL:1 + 5 * nL + 9]
    x2_ref = refs[1 + 5 * nL + 9]
    out_ref = refs[1 + 5 * nL + 10]

    def mm(a, b):
        return jnp.dot(a, b, preferred_element_type=f32)

    # ---- conv backbone: 4 x (3x3 conv + bias + ReLU + 2x2 maxpool) ----------
    # Activation layout: rows = (n, h), lanes = c*W + w (channel-major); no
    # pad rows, so all row blocks stay 8-sublane aligned.
    xin = x_ref[...]                                     # (NB*32, 32)
    for l in range(nL):
        cw, cb, sh, ee, aa = lrefs[5 * l:5 * l + 5]
        # h = -1 / +1 conv taps via block-diagonal row-shift matrices
        # (image-boundary rows are all-zero -> implicit zero padding).
        xm = mm(sh[0], xin)                              # rows h-1
        xp = mm(sh[1], xin)                              # rows h+1
        acc = mm(xm, cw[0]) + mm(xin, cw[1]) + mm(xp, cw[2]) + cb[...]
        y = jnp.maximum(acc, 0.0)                        # bias + ReLU
        # 2x2 maxpool: even/odd row selection, then even/odd lane selection.
        yh = jnp.maximum(mm(ee[0], y), mm(ee[1], y))
        yp = jnp.maximum(mm(yh, aa[0]), mm(yh, aa[1]))
        if l == 1:                                       # maxpool2 feature map
            x2_ref[...] = yp
        xin = yp

    # ---- head: conv5 + sigmoid + avgpool + BN(eval) + histogram + fc --------
    x4 = xin                                             # (NB*2, C4*2)
    Hh = fh.shape[0]
    parts = [mm(fh[h], x4) for h in range(Hh)]           # per-image h-rows

    # x_pool branch (conv5 / avgpool / BN / fc-half folded into w5s/wcat/bfc).
    y5 = b5big[...]
    for h in range(Hh):
        y5 = y5 + mm(parts[h], w5s[h])                   # (NB, L*F)
    sig = pl.reciprocal(1.0 + jnp.exp(-y5), approx=True)

    # x_hist branch: RBF histogram with per-(channel, position) bin sums.
    xrep = mm(parts[0], ereps[0])
    for h in range(1, Hh):
        xrep = xrep + mm(parts[h], ereps[h])             # (NB, J*B)
    r = jnp.exp(-jnp.square(hw[...] * (xrep + hc[...])))
    den = mm(r, msum[...]) + 1e-6                        # bin-sum + broadcast
    rn = r * pl.reciprocal(den, approx=True)             # normalize_bins

    # fused final fc: [sig | rn] @ [wpf; whf] + bfc  (concat at lane 256)
    comb = jnp.concatenate([sig, rn], axis=1)            # (NB, L*F + J*B)
    out_ref[...] = mm(comb, wcat[...]) + bfc[...]


# ----------------------------------------------------------------------------
# Host-side weight / selection-matrix preprocessing (done once)
# ----------------------------------------------------------------------------

def build_constants(params, batch_chunk, num_bins=NUM_BINS):
    NB = int(batch_chunk)
    c = {}

    for idx, (H, Cin, Cout) in enumerate(LAYERS, start=1):
        W = H
        Ho, Wo = H // 2, W // 2
        wgt = np.asarray(params[f"w{idx}"], np.float32)          # (3,3,Cin,Cout)

        # banded lane matrices: band[dy, ci*W+wi, co*W+w] = wgt[dy, dx, ci, co]
        band = np.zeros((3, Cin * W, Cout * W), np.float32)
        co_idx = np.arange(Cout) * W
        for dy in range(3):
            for dx in range(3):
                for w in range(W):
                    wi = w + dx - 1
                    if 0 <= wi < W:
                        for ci in range(Cin):
                            band[dy, ci * W + wi, co_idx + w] = wgt[dy, dx, ci, :]
        c[f"cw{idx}"] = jnp.asarray(band)
        c[f"cb{idx}"] = jnp.asarray(
            np.repeat(np.asarray(params[f"b{idx}"], np.float32), W)[None, :])

        # block-diagonal row-shift matrices for the h-1 / h+1 conv taps
        sh = np.zeros((2, NB * H, NB * H), np.float32)
        rows = np.arange(NB * H)
        hrow = rows % H
        sel = rows[hrow >= 1]
        sh[0, sel, sel - 1] = 1.0
        sel = rows[hrow <= H - 2]
        sh[1, sel, sel + 1] = 1.0
        c[f"sh{idx}"] = jnp.asarray(sh)

        # block-diagonal even/odd row selection for the 2x2 maxpool (h dim)
        ee = np.zeros((2, NB * Ho, NB * H), np.float32)
        ro = np.arange(NB * Ho)
        ni, ho = ro // Ho, ro % Ho
        ee[0, ro, ni * H + 2 * ho] = 1.0
        ee[1, ro, ni * H + 2 * ho + 1] = 1.0
        c[f"ee{idx}"] = jnp.asarray(ee)

        # even/odd lane selection for the 2x2 maxpool (w dim), channel-major
        aa = np.zeros((2, Cout * W, Cout * Wo), np.float32)
        for co in range(Cout):
            for wo in range(Wo):
                aa[0, co * W + 2 * wo, co * Wo + wo] = 1.0
                aa[1, co * W + 2 * wo + 1, co * Wo + wo] = 1.0
        c[f"aa{idx}"] = jnp.asarray(aa)

    # ---- head constants ------------------------------------------------------
    H4 = LAYERS[-1][0] // 2
    W4 = H4
    C4 = LAYERS[-1][2]
    L = H4 * W4
    F = int(params["w5"].shape[-1])
    nc = int(params["fc_w"].shape[-1])
    Bn = num_bins
    J = C4 * L

    def lane_of(cc, hh, ww):        # x4 flat lane index = h*(C*W) + c*W + w
        return hh * (C4 * W4) + cc * W4 + ww

    # conv5 (Conv1d k=3 pad=1 over L = H*W) folded into a (J, L*F) matrix,
    # split by h so layer-4 output rows feed the head directly (no flatten).
    w5 = np.asarray(params["w5"], np.float32)                    # (3, C4, F)
    W5big = np.zeros((J, L * F), np.float32)
    for l in range(L):
        for d in range(3):
            sp = l + d - 1
            if 0 <= sp < L:
                hh, ww = sp // W4, sp % W4
                for cc in range(C4):
                    W5big[lane_of(cc, hh, ww), l * F:(l + 1) * F] += w5[d, cc, :]
    c["w5s"] = jnp.asarray(W5big.reshape(H4, C4 * W4, L * F))
    c["b5big"] = jnp.asarray(
        np.tile(np.asarray(params["b5"], np.float32), L)[None, :])

    # avgpool + BN(eval) + fc (pool half) folded; BN shift folded into bias
    scale = np.asarray(params["bn_scale"], np.float32)
    shift = np.asarray(params["bn_shift"], np.float32)
    fcw = np.asarray(params["fc_w"], np.float32)
    fcb = np.asarray(params["fc_b"], np.float32)
    W1, W2 = fcw[:F], fcw[F:]
    wpf = np.tile(scale[:, None] * W1 / L, (L, 1))               # (L*F, nc)
    c["bfc"] = jnp.asarray((fcb + shift @ W1)[None, :].astype(np.float32))

    # histogram widths / centers rows and fc (hist half) permuted to the
    # kernel's (lane = (h*CW + c*W + w)*B + b) ordering.
    widths = np.asarray(params["hist_widths"], np.float32)       # (C4, B)
    cents = np.asarray(params["hist_centers"], np.float32)       # (C4, B)
    Sp = L
    assert int(params["hist_pool_out"]) ** 2 == Sp, \
        "non-identity hist_pool not folded into the fused kernel"
    hwrow = np.zeros((1, J * Bn), np.float32)
    hcrow = np.zeros((1, J * Bn), np.float32)
    Wh = np.zeros((J * Bn, nc), np.float32)
    for hh in range(H4):
        for ww in range(W4):
            s = hh * W4 + ww
            for cc in range(C4):
                j = lane_of(cc, hh, ww)
                for b in range(Bn):
                    m = j * Bn + b
                    hwrow[0, m] = widths[cc, b]
                    hcrow[0, m] = cents[cc, b]
                    Wh[m, :] = W2[(cc * Bn + b) * Sp + s, :]
    c["hw"] = jnp.asarray(hwrow)
    c["hc"] = jnp.asarray(hcrow)

    # fused final fc: [sig | rn] @ [wpf; Wh] + bfc
    c["wcat"] = jnp.asarray(np.vstack([wpf, Wh]))

    # value -> bin-lane repeat (split by h) and bin-sum+broadcast matrices
    erep = np.zeros((J, J * Bn), np.float32)
    for j in range(J):
        erep[j, j * Bn:(j + 1) * Bn] = 1.0
    c["ereps"] = jnp.asarray(erep.reshape(H4, C4 * W4, J * Bn))
    msum = np.zeros((J * Bn, J * Bn), np.float32)
    for j in range(J):
        msum[j * Bn:(j + 1) * Bn, j * Bn:(j + 1) * Bn] = 1.0
    c["msum"] = jnp.asarray(msum)

    # per-image selection of layer-4 output rows h = 0..H4-1 (head "flatten")
    fh = np.zeros((H4, NB, NB * H4), np.float32)
    for h in range(H4):
        for n in range(NB):
            fh[h, n, n * H4 + h] = 1.0
    c["fh"] = jnp.asarray(fh)
    return c


# ----------------------------------------------------------------------------
# Forward (single pallas_call; 1-D parallel grid over batch chunks)
# ----------------------------------------------------------------------------

def hist_res_forward(consts, x_nchw):
    N, Cin, H, W = x_nchw.shape
    assert Cin == 1, "TDNN_feats == 1"
    NB = consts["fh"].shape[1]                           # static batch chunk
    assert N % NB == 0, "batch must be a multiple of the compiled batch chunk"
    G = N // NB
    H2, C2 = LAYERS[1][0] // 2, LAYERS[1][2]             # x2: 8x8 spatial, 8 ch
    nc = consts["wcat"].shape[1]

    x2d = x_nchw.reshape(N * H, W)                       # rows=(n,h), lanes=w

    names = []
    for idx in range(1, len(LAYERS) + 1):
        names += [f"cw{idx}", f"cb{idx}", f"sh{idx}", f"ee{idx}", f"aa{idx}"]
    names += ["fh", "w5s", "b5big", "ereps", "hw", "hc", "msum", "wcat", "bfc"]
    cargs = [consts[k] for k in names]

    def const_spec(a):
        nd = a.ndim
        return pl.BlockSpec(a.shape, lambda i, _nd=nd: (0,) * _nd)

    in_specs = ([pl.BlockSpec((NB * H, W), lambda i: (i, 0))]
                + [const_spec(a) for a in cargs])
    out_specs = (pl.BlockSpec((NB * H2, C2 * H2), lambda i: (i, 0)),
                 pl.BlockSpec((NB, nc), lambda i: (i, 0)))

    x2_2d, out = pl.pallas_call(
        _histres_kernel,
        out_shape=(jax.ShapeDtypeStruct((N * H2, C2 * H2), jnp.float32),
                   jax.ShapeDtypeStruct((N, nc), jnp.float32)),
        grid=(G,),
        in_specs=in_specs,
        out_specs=out_specs,
        compiler_params=pltpu.CompilerParams(
            dimension_semantics=("parallel",)),
    )(x2d, *cargs)

    # kernel x2 layout: rows = (n, h), lanes = c*W + w  ->  NCHW
    x2 = x2_2d.reshape(N, H2, C2, H2).transpose(0, 2, 1, 3)
    return x2, out


# ----------------------------------------------------------------------------
# Pure-JAX reference (loose numerical self-check)
# ----------------------------------------------------------------------------

def reference_forward(params, x_nchw):
    prec = jax.lax.Precision.HIGHEST

    def conv_relu_pool(x, w, b):
        y = jax.lax.conv_general_dilated(
            x, jnp.transpose(w, (3, 2, 0, 1)), (1, 1), 'SAME',
            dimension_numbers=('NCHW', 'OIHW', 'NCHW'), precision=prec)
        y = jnp.maximum(y + b[None, :, None, None], 0.0)
        return jax.lax.reduce_window(y, -jnp.inf, jax.lax.max,
                                     (1, 1, 2, 2), (1, 1, 2, 2), 'VALID')

    x = conv_relu_pool(x_nchw, params["w1"], params["b1"])
    x2 = conv_relu_pool(x, params["w2"], params["b2"])
    x = conv_relu_pool(x2, params["w3"], params["b3"])
    x4 = conv_relu_pool(x, params["w4"], params["b4"])

    N, C, H, W = x4.shape
    L = H * W
    xseq = x4.reshape(N, C, L)
    xpad = jnp.pad(xseq, ((0, 0), (0, 0), (1, 1)))
    y5 = sum(jnp.einsum('ncl,cf->nfl', xpad[:, :, d:d + L], params["w5"][d],
                        precision=prec) for d in range(3))
    y5 = y5 + params["b5"][None, :, None]
    sig = 1.0 / (1.0 + jnp.exp(-y5))
    pooled = jnp.mean(sig, axis=2)
    x_pool = pooled * params["bn_scale"][None, :] + params["bn_shift"][None, :]

    wdt = params["hist_widths"]
    ctr = params["hist_centers"]
    r = jnp.exp(-jnp.square(wdt[None, :, :, None, None]
                            * (x4[:, :, None, :, :] + ctr[None, :, :, None, None])))
    rn = r / (jnp.sum(r, axis=2, keepdims=True) + 1e-6)
    x_hist = rn.reshape(N, C * NUM_BINS * L)             # hist_pool is identity

    x_comb = jnp.concatenate([x_pool, x_hist], axis=1)
    out = jnp.dot(x_comb, params["fc_w"], precision=prec) + params["fc_b"]
    return x2, out


# ----------------------------------------------------------------------------
# Deterministic synthetic parameters
# ----------------------------------------------------------------------------

def init_params(key):
    ks = jax.random.split(key, 8)

    def conv_w(k, cin, cout):
        return jax.random.normal(k, (3, 3, cin, cout), jnp.float32) / np.sqrt(9 * cin)

    p = {}
    p["w1"], p["b1"] = conv_w(ks[0], 1, 8), jnp.full((8,), 0.01, jnp.float32)
    p["w2"], p["b2"] = conv_w(ks[1], 8, 8), jnp.full((8,), 0.01, jnp.float32)
    p["w3"], p["b3"] = conv_w(ks[2], 8, 8), jnp.full((8,), 0.01, jnp.float32)
    p["w4"], p["b4"] = conv_w(ks[3], 8, 4), jnp.full((4,), 0.01, jnp.float32)

    F, C4 = 64, 4
    p["w5"] = jax.random.normal(ks[4], (3, C4, F), jnp.float32) / np.sqrt(3 * C4)
    p["b5"] = jnp.zeros((F,), jnp.float32)

    # BatchNorm2d(num_ftrs), eval mode, folded to scale/shift
    gamma = 1.0 + 0.1 * jnp.arange(F, dtype=jnp.float32) / F
    beta = 0.05 * jnp.ones((F,), jnp.float32)
    running_mean = 0.5 * jnp.ones((F,), jnp.float32)
    running_var = jnp.ones((F,), jnp.float32)
    scale = gamma / jnp.sqrt(running_var + 1e-5)
    p["bn_scale"], p["bn_shift"] = scale, beta - running_mean * scale

    # Histogram layer: bin_centers_conv bias (= negated centers) and widths
    p["hist_centers"] = jnp.tile(
        jnp.linspace(-0.6, 0.6, NUM_BINS, dtype=jnp.float32), (C4, 1))
    p["hist_widths"] = jnp.full((C4, NUM_BINS), 2.0, jnp.float32)
    p["hist_pool_out"] = int(np.sqrt(F // (NUM_BINS * C4)))     # = 2

    num_class = 4
    p["fc_w"] = jax.random.normal(ks[5], (2 * F, num_class), jnp.float32) / np.sqrt(2 * F)
    p["fc_b"] = jnp.zeros((num_class,), jnp.float32)
    return p


if __name__ == "__main__":
    key = jax.random.PRNGKey(0)
    pkey, xkey = jax.random.split(key)
    params = init_params(pkey)

    # PyTorch-style NCHW input: batch=2, TDNN_feats=1 channel, 32x32 spectrogram
    N = 2
    NB = N if N <= 8 else 8               # per-grid-step batch chunk (8-aligned)
    consts = build_constants(params, batch_chunk=NB)

    x = jax.random.normal(xkey, (N, 1, 32, 32), jnp.float32)

    fwd = jax.jit(hist_res_forward)
    x2, output = fwd(consts, x)
    jax.block_until_ready((x2, output))

    # loose self-check against a pure-JAX reference (approx reciprocals in-kernel)
    x2_ref, out_ref = reference_forward(params, x)
    np.testing.assert_allclose(np.asarray(x2), np.asarray(x2_ref),
                               rtol=3e-2, atol=3e-2)
    np.testing.assert_allclose(np.asarray(output), np.asarray(out_ref),
                               rtol=3e-2, atol=3e-2)
    assert x2.shape == (N, 8, 8, 8) and output.shape == (N, 4)
    assert bool(jnp.all(jnp.isfinite(output))) and bool(jnp.all(jnp.isfinite(x2)))
    print("KERNEL_OK")
</pallas_src>

<mosaic_0001>
module attributes {stable_mosaic.version = 11 : i64} {
  func.func @_histres_kernel(%arg0: i32, %arg1: memref<64x32xf32, #tpu.memory_space<vmem>>, %arg2: memref<3x32x256xf32, #tpu.memory_space<vmem>>, %arg3: memref<1x256xf32, #tpu.memory_space<vmem>>, %arg4: memref<2x64x64xf32, #tpu.memory_space<vmem>>, %arg5: memref<2x32x64xf32, #tpu.memory_space<vmem>>, %arg6: memref<2x256x128xf32, #tpu.memory_space<vmem>>, %arg7: memref<3x128x128xf32, #tpu.memory_space<vmem>>, %arg8: memref<1x128xf32, #tpu.memory_space<vmem>>, %arg9: memref<2x32x32xf32, #tpu.memory_space<vmem>>, %arg10: memref<2x16x32xf32, #tpu.memory_space<vmem>>, %arg11: memref<2x128x64xf32, #tpu.memory_space<vmem>>, %arg12: memref<3x64x64xf32, #tpu.memory_space<vmem>>, %arg13: memref<1x64xf32, #tpu.memory_space<vmem>>, %arg14: memref<2x16x16xf32, #tpu.memory_space<vmem>>, %arg15: memref<2x8x16xf32, #tpu.memory_space<vmem>>, %arg16: memref<2x64x32xf32, #tpu.memory_space<vmem>>, %arg17: memref<3x32x16xf32, #tpu.memory_space<vmem>>, %arg18: memref<1x16xf32, #tpu.memory_space<vmem>>, %arg19: memref<2x8x8xf32, #tpu.memory_space<vmem>>, %arg20: memref<2x4x8xf32, #tpu.memory_space<vmem>>, %arg21: memref<2x16x8xf32, #tpu.memory_space<vmem>>, %arg22: memref<2x2x4xf32, #tpu.memory_space<vmem>>, %arg23: memref<2x8x256xf32, #tpu.memory_space<vmem>>, %arg24: memref<1x256xf32, #tpu.memory_space<vmem>>, %arg25: memref<2x8x64xf32, #tpu.memory_space<vmem>>, %arg26: memref<1x64xf32, #tpu.memory_space<vmem>>, %arg27: memref<1x64xf32, #tpu.memory_space<vmem>>, %arg28: memref<64x64xf32, #tpu.memory_space<vmem>>, %arg29: memref<320x4xf32, #tpu.memory_space<vmem>>, %arg30: memref<1x4xf32, #tpu.memory_space<vmem>>, %arg31: memref<16x64xf32, #tpu.memory_space<vmem>>, %arg32: memref<2x4xf32, #tpu.memory_space<vmem>>) attributes {dimension_semantics = [#tpu.dimension_semantics<parallel>], iteration_bounds = array<i64: 1>, scalar_prefetch = 0 : i64, scratch_operands = 0 : i64, tpu.core_type = #tpu.core_type<tc>, window_params = [{transform_indices = @transform_0, window_bounds = array<i64: 64, 32>}, {pipeline_mode = #tpu.pipeline_mode<synchronous>, transform_indices = @transform_1, window_bounds = array<i64: 3, 32, 256>}, {pipeline_mode = #tpu.pipeline_mode<synchronous>, transform_indices = @transform_2, window_bounds = array<i64: 1, 256>}, {pipeline_mode = #tpu.pipeline_mode<synchronous>, transform_indices = @transform_3, window_bounds = array<i64: 2, 64, 64>}, {pipeline_mode = #tpu.pipeline_mode<synchronous>, transform_indices = @transform_4, window_bounds = array<i64: 2, 32, 64>}, {pipeline_mode = #tpu.pipeline_mode<synchronous>, transform_indices = @transform_5, window_bounds = array<i64: 2, 256, 128>}, {pipeline_mode = #tpu.pipeline_mode<synchronous>, transform_indices = @transform_6, window_bounds = array<i64: 3, 128, 128>}, {pipeline_mode = #tpu.pipeline_mode<synchronous>, transform_indices = @transform_7, window_bounds = array<i64: 1, 128>}, {pipeline_mode = #tpu.pipeline_mode<synchronous>, transform_indices = @transform_8, window_bounds = array<i64: 2, 32, 32>}, {pipeline_mode = #tpu.pipeline_mode<synchronous>, transform_indices = @transform_9, window_bounds = array<i64: 2, 16, 32>}, {pipeline_mode = #tpu.pipeline_mode<synchronous>, transform_indices = @transform_10, window_bounds = array<i64: 2, 128, 64>}, {pipeline_mode = #tpu.pipeline_mode<synchronous>, transform_indices = @transform_11, window_bounds = array<i64: 3, 64, 64>}, {pipeline_mode = #tpu.pipeline_mode<synchronous>, transform_indices = @transform_12, window_bounds = array<i64: 1, 64>}, {pipeline_mode = #tpu.pipeline_mode<synchronous>, transform_indices = @transform_13, window_bounds = array<i64: 2, 16, 16>}, {pipeline_mode = #tpu.pipeline_mode<synchronous>, transform_indices = @transform_14, window_bounds = array<i64: 2, 8, 16>}, {pipeline_mode = #tpu.pipeline_mode<synchronous>, transform_indices = @transform_15, window_bounds = array<i64: 2, 64, 32>}, {pipeline_mode = #tpu.pipeline_mode<synchronous>, transform_indices = @transform_16, window_bounds = array<i64: 3, 32, 16>}, {pipeline_mode = #tpu.pipeline_mode<synchronous>, transform_indices = @transform_17, window_bounds = array<i64: 1, 16>}, {pipeline_mode = #tpu.pipeline_mode<synchronous>, transform_indices = @transform_18, window_bounds = array<i64: 2, 8, 8>}, {pipeline_mode = #tpu.pipeline_mode<synchronous>, transform_indices = @transform_19, window_bounds = array<i64: 2, 4, 8>}, {pipeline_mode = #tpu.pipeline_mode<synchronous>, transform_indices = @transform_20, window_bounds = array<i64: 2, 16, 8>}, {pipeline_mode = #tpu.pipeline_mode<synchronous>, transform_indices = @transform_21, window_bounds = array<i64: 2, 2, 4>}, {pipeline_mode = #tpu.pipeline_mode<synchronous>, transform_indices = @transform_22, window_bounds = array<i64: 2, 8, 256>}, {pipeline_mode = #tpu.pipeline_mode<synchronous>, transform_indices = @transform_23, window_bounds = array<i64: 1, 256>}, {pipeline_mode = #tpu.pipeline_mode<synchronous>, transform_indices = @transform_24, window_bounds = array<i64: 2, 8, 64>}, {pipeline_mode = #tpu.pipeline_mode<synchronous>, transform_indices = @transform_25, window_bounds = array<i64: 1, 64>}, {pipeline_mode = #tpu.pipeline_mode<synchronous>, transform_indices = @transform_26, window_bounds = array<i64: 1, 64>}, {pipeline_mode = #tpu.pipeline_mode<synchronous>, transform_indices = @transform_27, window_bounds = array<i64: 64, 64>}, {pipeline_mode = #tpu.pipeline_mode<synchronous>, transform_indices = @transform_28, window_bounds = array<i64: 320, 4>}, {pipeline_mode = #tpu.pipeline_mode<synchronous>, transform_indices = @transform_29, window_bounds = array<i64: 1, 4>}, {transform_indices = @transform_30, window_bounds = array<i64: 16, 64>}, {transform_indices = @transform_31, window_bounds = array<i64: 2, 4>}]} {
    %c0 = arith.constant 0 : index
    %c0_0 = arith.constant 0 : index
    %0 = vector.load %arg1[%c0, %c0_0] : memref<64x32xf32, #tpu.memory_space<vmem>>, vector<64x32xf32>
    %c0_1 = arith.constant 0 : index
    %c0_2 = arith.constant 0 : index
    %c0_3 = arith.constant 0 : index
    %1 = vector.load %arg4[%c0_1, %c0_2, %c0_3] : memref<2x64x64xf32, #tpu.memory_space<vmem>>, vector<1x64x64xf32>
    %2 = vector.shape_cast %1 : vector<1x64x64xf32> to vector<64x64xf32>
    %cst = arith.constant dense<0.000000e+00> : vector<64x32xf32>
    %3 = tpu.matmul %2, %0, %cst {dimension_numbers = #tpu.dot_dimension_numbers<[1], [0], [0], [1], [0, 0, 1, 1], [], []>} : vector<64x64xf32>, vector<64x32xf32>, vector<64x32xf32> -> vector<64x32xf32>
    %c1 = arith.constant 1 : index
    %c0_4 = arith.constant 0 : index
    %c0_5 = arith.constant 0 : index
    %4 = vector.load %arg4[%c1, %c0_4, %c0_5] : memref<2x64x64xf32, #tpu.memory_space<vmem>>, vector<1x64x64xf32>
    %5 = vector.shape_cast %4 : vector<1x64x64xf32> to vector<64x64xf32>
    %cst_6 = arith.constant dense<0.000000e+00> : vector<64x32xf32>
    %6 = tpu.matmul %5, %0, %cst_6 {dimension_numbers = #tpu.dot_dimension_numbers<[1], [0], [0], [1], [0, 0, 1, 1], [], []>} : vector<64x64xf32>, vector<64x32xf32>, vector<64x32xf32> -> vector<64x32xf32>
    %c0_7 = arith.constant 0 : index
    %c0_8 = arith.constant 0 : index
    %c0_9 = arith.constant 0 : index
    %7 = vector.load %arg2[%c0_7, %c0_8, %c0_9] : memref<3x32x256xf32, #tpu.memory_space<vmem>>, vector<1x32x256xf32>
    %8 = vector.shape_cast %7 : vector<1x32x256xf32> to vector<32x256xf32>
    %cst_10 = arith.constant dense<0.000000e+00> : vector<64x256xf32>
    %9 = tpu.matmul %3, %8, %cst_10 {dimension_numbers = #tpu.dot_dimension_numbers<[1], [0], [0], [1], [0, 0, 1, 1], [], []>} : vector<64x32xf32>, vector<32x256xf32>, vector<64x256xf32> -> vector<64x256xf32>
    %c1_11 = arith.constant 1 : index
    %c0_12 = arith.constant 0 : index
    %c0_13 = arith.constant 0 : index
    %10 = vector.load %arg2[%c1_11, %c0_12, %c0_13] : memref<3x32x256xf32, #tpu.memory_space<vmem>>, vector<1x32x256xf32>
    %11 = vector.shape_cast %10 : vector<1x32x256xf32> to vector<32x256xf32>
    %cst_14 = arith.constant dense<0.000000e+00> : vector<64x256xf32>
    %12 = tpu.matmul %0, %11, %cst_14 {dimension_numbers = #tpu.dot_dimension_numbers<[1], [0], [0], [1], [0, 0, 1, 1], [], []>} : vector<64x32xf32>, vector<32x256xf32>, vector<64x256xf32> -> vector<64x256xf32>
    %13 = arith.addf %9, %12 : vector<64x256xf32>
    %c2 = arith.constant 2 : index
    %c0_15 = arith.constant 0 : index
    %c0_16 = arith.constant 0 : index
    %14 = vector.load %arg2[%c2, %c0_15, %c0_16] : memref<3x32x256xf32, #tpu.memory_space<vmem>>, vector<1x32x256xf32>
    %15 = vector.shape_cast %14 : vector<1x32x256xf32> to vector<32x256xf32>
    %cst_17 = arith.constant dense<0.000000e+00> : vector<64x256xf32>
    %16 = tpu.matmul %6, %15, %cst_17 {dimension_numbers = #tpu.dot_dimension_numbers<[1], [0], [0], [1], [0, 0, 1, 1], [], []>} : vector<64x32xf32>, vector<32x256xf32>, vector<64x256xf32> -> vector<64x256xf32>
    %17 = arith.addf %13, %16 : vector<64x256xf32>
    %c0_18 = arith.constant 0 : index
    %c0_19 = arith.constant 0 : index
    %18 = vector.load %arg3[%c0_18, %c0_19] : memref<1x256xf32, #tpu.memory_space<vmem>>, vector<1x256xf32>
    %19 = vector.broadcast %18 : vector<1x256xf32> to vector<64x256xf32>
    %20 = arith.addf %17, %19 : vector<64x256xf32>
    %cst_20 = arith.constant 0.000000e+00 : f32
    %21 = vector.broadcast %cst_20 : f32 to vector<64x256xf32>
    %22 = arith.maximumf %20, %21 : vector<64x256xf32>
    %c0_21 = arith.constant 0 : index
    %c0_22 = arith.constant 0 : index
    %c0_23 = arith.constant 0 : index
    %23 = vector.load %arg5[%c0_21, %c0_22, %c0_23] : memref<2x32x64xf32, #tpu.memory_space<vmem>>, vector<1x32x64xf32>
    %24 = vector.shape_cast %23 : vector<1x32x64xf32> to vector<32x64xf32>
    %cst_24 = arith.constant dense<0.000000e+00> : vector<32x256xf32>
    %25 = tpu.matmul %24, %22, %cst_24 {dimension_numbers = #tpu.dot_dimension_numbers<[1], [0], [0], [1], [0, 0, 1, 1], [], []>} : vector<32x64xf32>, vector<64x256xf32>, vector<32x256xf32> -> vector<32x256xf32>
    %c1_25 = arith.constant 1 : index
    %c0_26 = arith.constant 0 : index
    %c0_27 = arith.constant 0 : index
    %26 = vector.load %arg5[%c1_25, %c0_26, %c0_27] : memref<2x32x64xf32, #tpu.memory_space<vmem>>, vector<1x32x64xf32>
    %27 = vector.shape_cast %26 : vector<1x32x64xf32> to vector<32x64xf32>
    %cst_28 = arith.constant dense<0.000000e+00> : vector<32x256xf32>
    %28 = tpu.matmul %27, %22, %cst_28 {dimension_numbers = #tpu.dot_dimension_numbers<[1], [0], [0], [1], [0, 0, 1, 1], [], []>} : vector<32x64xf32>, vector<64x256xf32>, vector<32x256xf32> -> vector<32x256xf32>
    %29 = arith.maximumf %25, %28 : vector<32x256xf32>
    %c0_29 = arith.constant 0 : index
    %c0_30 = arith.constant 0 : index
    %c0_31 = arith.constant 0 : index
    %30 = vector.load %arg6[%c0_29, %c0_30, %c0_31] : memref<2x256x128xf32, #tpu.memory_space<vmem>>, vector<1x256x128xf32>
    %31 = vector.shape_cast %30 : vector<1x256x128xf32> to vector<256x128xf32>
    %cst_32 = arith.constant dense<0.000000e+00> : vector<32x128xf32>
    %32 = tpu.matmul %29, %31, %cst_32 {dimension_numbers = #tpu.dot_dimension_numbers<[1], [0], [0], [1], [0, 0, 1, 1], [], []>} : vector<32x256xf32>, vector<256x128xf32>, vector<32x128xf32> -> vector<32x128xf32>
    %c1_33 = arith.constant 1 : index
    %c0_34 = arith.constant 0 : index
    %c0_35 = arith.constant 0 : index
    %33 = vector.load %arg6[%c1_33, %c0_34, %c0_35] : memref<2x256x128xf32, #tpu.memory_space<vmem>>, vector<1x256x128xf32>
    %34 = vector.shape_cast %33 : vector<1x256x128xf32> to vector<256x128xf32>
    %cst_36 = arith.constant dense<0.000000e+00> : vector<32x128xf32>
    %35 = tpu.matmul %29, %34, %cst_36 {dimension_numbers = #tpu.dot_dimension_numbers<[1], [0], [0], [1], [0, 0, 1, 1], [], []>} : vector<32x256xf32>, vector<256x128xf32>, vector<32x128xf32> -> vector<32x128xf32>
    %36 = arith.maximumf %32, %35 : vector<32x128xf32>
    %c0_37 = arith.constant 0 : index
    %c0_38 = arith.constant 0 : index
    %c0_39 = arith.constant 0 : index
    %37 = vector.load %arg9[%c0_37, %c0_38, %c0_39] : memref<2x32x32xf32, #tpu.memory_space<vmem>>, vector<1x32x32xf32>
    %38 = vector.shape_cast %37 : vector<1x32x32xf32> to vector<32x32xf32>
    %cst_40 = arith.constant dense<0.000000e+00> : vector<32x128xf32>
    %39 = tpu.matmul %38, %36, %cst_40 {dimension_numbers = #tpu.dot_dimension_numbers<[1], [0], [0], [1], [0, 0, 1, 1], [], []>} : vector<32x32xf32>, vector<32x128xf32>, vector<32x128xf32> -> vector<32x128xf32>
    %c1_41 = arith.constant 1 : index
    %c0_42 = arith.constant 0 : index
    %c0_43 = arith.constant 0 : index
    %40 = vector.load %arg9[%c1_41, %c0_42, %c0_43] : memref<2x32x32xf32, #tpu.memory_space<vmem>>, vector<1x32x32xf32>
    %41 = vector.shape_cast %40 : vector<1x32x32xf32> to vector<32x32xf32>
    %cst_44 = arith.constant dense<0.000000e+00> : vector<32x128xf32>
    %42 = tpu.matmul %41, %36, %cst_44 {dimension_numbers = #tpu.dot_dimension_numbers<[1], [0], [0], [1], [0, 0, 1, 1], [], []>} : vector<32x32xf32>, vector<32x128xf32>, vector<32x128xf32> -> vector<32x128xf32>
    %c0_45 = arith.constant 0 : index
    %c0_46 = arith.constant 0 : index
    %c0_47 = arith.constant 0 : index
    %43 = vector.load %arg7[%c0_45, %c0_46, %c0_47] : memref<3x128x128xf32, #tpu.memory_space<vmem>>, vector<1x128x128xf32>
    %44 = vector.shape_cast %43 : vector<1x128x128xf32> to vector<128x128xf32>
    %cst_48 = arith.constant dense<0.000000e+00> : vector<32x128xf32>
    %45 = tpu.matmul %39, %44, %cst_48 {dimension_numbers = #tpu.dot_dimension_numbers<[1], [0], [0], [1], [0, 0, 1, 1], [], []>} : vector<32x128xf32>, vector<128x128xf32>, vector<32x128xf32> -> vector<32x128xf32>
    %c1_49 = arith.constant 1 : index
    %c0_50 = arith.constant 0 : index
    %c0_51 = arith.constant 0 : index
    %46 = vector.load %arg7[%c1_49, %c0_50, %c0_51] : memref<3x128x128xf32, #tpu.memory_space<vmem>>, vector<1x128x128xf32>
    %47 = vector.shape_cast %46 : vector<1x128x128xf32> to vector<128x128xf32>
    %cst_52 = arith.constant dense<0.000000e+00> : vector<32x128xf32>
    %48 = tpu.matmul %36, %47, %cst_52 {dimension_numbers = #tpu.dot_dimension_numbers<[1], [0], [0], [1], [0, 0, 1, 1], [], []>} : vector<32x128xf32>, vector<128x128xf32>, vector<32x128xf32> -> vector<32x128xf32>
    %49 = arith.addf %45, %48 : vector<32x128xf32>
    %c2_53 = arith.constant 2 : index
    %c0_54 = arith.constant 0 : index
    %c0_55 = arith.constant 0 : index
    %50 = vector.load %arg7[%c2_53, %c0_54, %c0_55] : memref<3x128x128xf32, #tpu.memory_space<vmem>>, vector<1x128x128xf32>
    %51 = vector.shape_cast %50 : vector<1x128x128xf32> to vector<128x128xf32>
    %cst_56 = arith.constant dense<0.000000e+00> : vector<32x128xf32>
    %52 = tpu.matmul %42, %51, %cst_56 {dimension_numbers = #tpu.dot_dimension_numbers<[1], [0], [0], [1], [0, 0, 1, 1], [], []>} : vector<32x128xf32>, vector<128x128xf32>, vector<32x128xf32> -> vector<32x128xf32>
    %53 = arith.addf %49, %52 : vector<32x128xf32>
    %c0_57 = arith.constant 0 : index
    %c0_58 = arith.constant 0 : index
    %54 = vector.load %arg8[%c0_57, %c0_58] : memref<1x128xf32, #tpu.memory_space<vmem>>, vector<1x128xf32>
    %55 = vector.broadcast %54 : vector<1x128xf32> to vector<32x128xf32>
    %56 = arith.addf %53, %55 : vector<32x128xf32>
    %cst_59 = arith.constant 0.000000e+00 : f32
    %57 = vector.broadcast %cst_59 : f32 to vector<32x128xf32>
    %58 = arith.maximumf %56, %57 : vector<32x128xf32>
    %c0_60 = arith.constant 0 : index
    %c0_61 = arith.constant 0 : index
    %c0_62 = arith.constant 0 : index
    %59 = vector.load %arg10[%c0_60, %c0_61, %c0_62] : memref<2x16x32xf32, #tpu.memory_space<vmem>>, vector<1x16x32xf32>
    %60 = vector.shape_cast %59 : vector<1x16x32xf32> to vector<16x32xf32>
    %cst_63 = arith.constant dense<0.000000e+00> : vector<16x128xf32>
    %61 = tpu.matmul %60, %58, %cst_63 {dimension_numbers = #tpu.dot_dimension_numbers<[1], [0], [0], [1], [0, 0, 1, 1], [], []>} : vector<16x32xf32>, vector<32x128xf32>, vector<16x128xf32> -> vector<16x128xf32>
    %c1_64 = arith.constant 1 : index
    %c0_65 = arith.constant 0 : index
    %c0_66 = arith.constant 0 : index
    %62 = vector.load %arg10[%c1_64, %c0_65, %c0_66] : memref<2x16x32xf32, #tpu.memory_space<vmem>>, vector<1x16x32xf32>
    %63 = vector.shape_cast %62 : vector<1x16x32xf32> to vector<16x32xf32>
    %cst_67 = arith.constant dense<0.000000e+00> : vector<16x128xf32>
    %64 = tpu.matmul %63, %58, %cst_67 {dimension_numbers = #tpu.dot_dimension_numbers<[1], [0], [0], [1], [0, 0, 1, 1], [], []>} : vector<16x32xf32>, vector<32x128xf32>, vector<16x128xf32> -> vector<16x128xf32>
    %65 = arith.maximumf %61, %64 : vector<16x128xf32>
    %c0_68 = arith.constant 0 : index
    %c0_69 = arith.constant 0 : index
    %c0_70 = arith.constant 0 : index
    %66 = vector.load %arg11[%c0_68, %c0_69, %c0_70] : memref<2x128x64xf32, #tpu.memory_space<vmem>>, vector<1x128x64xf32>
    %67 = vector.shape_cast %66 : vector<1x128x64xf32> to vector<128x64xf32>
    %cst_71 = arith.constant dense<0.000000e+00> : vector<16x64xf32>
    %68 = tpu.matmul %65, %67, %cst_71 {dimension_numbers = #tpu.dot_dimension_numbers<[1], [0], [0], [1], [0, 0, 1, 1], [], []>} : vector<16x128xf32>, vector<128x64xf32>, vector<16x64xf32> -> vector<16x64xf32>
    %c1_72 = arith.constant 1 : index
    %c0_73 = arith.constant 0 : index
    %c0_74 = arith.constant 0 : index
    %69 = vector.load %arg11[%c1_72, %c0_73, %c0_74] : memref<2x128x64xf32, #tpu.memory_space<vmem>>, vector<1x128x64xf32>
    %70 = vector.shape_cast %69 : vector<1x128x64xf32> to vector<128x64xf32>
    %cst_75 = arith.constant dense<0.000000e+00> : vector<16x64xf32>
    %71 = tpu.matmul %65, %70, %cst_75 {dimension_numbers = #tpu.dot_dimension_numbers<[1], [0], [0], [1], [0, 0, 1, 1], [], []>} : vector<16x128xf32>, vector<128x64xf32>, vector<16x64xf32> -> vector<16x64xf32>
    %72 = arith.maximumf %68, %71 : vector<16x64xf32>
    %c0_76 = arith.constant 0 : index
    %c0_77 = arith.constant 0 : index
    %73 = vector.load %arg31[%c0_76, %c0_77] : memref<16x64xf32, #tpu.memory_space<vmem>>, vector<16x64xf32>
    tpu.vector_store %arg31[%c0_76, %c0_77], %72 {strides = array<i32>} : memref<16x64xf32, #tpu.memory_space<vmem>>, vector<16x64xf32>,
    %c0_78 = arith.constant 0 : index
    %c0_79 = arith.constant 0 : index
    %c0_80 = arith.constant 0 : index
    %74 = vector.load %arg14[%c0_78, %c0_79, %c0_80] : memref<2x16x16xf32, #tpu.memory_space<vmem>>, vector<1x16x16xf32>
    %75 = vector.shape_cast %74 : vector<1x16x16xf32> to vector<16x16xf32>
    %cst_81 = arith.constant dense<0.000000e+00> : vector<16x64xf32>
    %76 = tpu.matmul %75, %72, %cst_81 {dimension_numbers = #tpu.dot_dimension_numbers<[1], [0], [0], [1], [0, 0, 1, 1], [], []>} : vector<16x16xf32>, vector<16x64xf32>, vector<16x64xf32> -> vector<16x64xf32>
    %c1_82 = arith.constant 1 : index
    %c0_83 = arith.constant 0 : index
    %c0_84 = arith.constant 0 : index
    %77 = vector.load %arg14[%c1_82, %c0_83, %c0_84] : memref<2x16x16xf32, #tpu.memory_space<vmem>>, vector<1x16x16xf32>
    %78 = vector.shape_cast %77 : vector<1x16x16xf32> to vector<16x16xf32>
    %cst_85 = arith.constant dense<0.000000e+00> : vector<16x64xf32>
    %79 = tpu.matmul %78, %72, %cst_85 {dimension_numbers = #tpu.dot_dimension_numbers<[1], [0], [0], [1], [0, 0, 1, 1], [], []>} : vector<16x16xf32>, vector<16x64xf32>, vector<16x64xf32> -> vector<16x64xf32>
    %c0_86 = arith.constant 0 : index
    %c0_87 = arith.constant 0 : index
    %c0_88 = arith.constant 0 : index
    %80 = vector.load %arg12[%c0_86, %c0_87, %c0_88] : memref<3x64x64xf32, #tpu.memory_space<vmem>>, vector<1x64x64xf32>
    %81 = vector.shape_cast %80 : vector<1x64x64xf32> to vector<64x64xf32>
    %cst_89 = arith.constant dense<0.000000e+00> : vector<16x64xf32>
    %82 = tpu.matmul %76, %81, %cst_89 {dimension_numbers = #tpu.dot_dimension_numbers<[1], [0], [0], [1], [0, 0, 1, 1], [], []>} : vector<16x64xf32>, vector<64x64xf32>, vector<16x64xf32> -> vector<16x64xf32>
    %c1_90 = arith.constant 1 : index
    %c0_91 = arith.constant 0 : index
    %c0_92 = arith.constant 0 : index
    %83 = vector.load %arg12[%c1_90, %c0_91, %c0_92] : memref<3x64x64xf32, #tpu.memory_space<vmem>>, vector<1x64x64xf32>
    %84 = vector.shape_cast %83 : vector<1x64x64xf32> to vector<64x64xf32>
    %cst_93 = arith.constant dense<0.000000e+00> : vector<16x64xf32>
    %85 = tpu.matmul %72, %84, %cst_93 {dimension_numbers = #tpu.dot_dimension_numbers<[1], [0], [0], [1], [0, 0, 1, 1], [], []>} : vector<16x64xf32>, vector<64x64xf32>, vector<16x64xf32> -> vector<16x64xf32>
    %86 = arith.addf %82, %85 : vector<16x64xf32>
    %c2_94 = arith.constant 2 : index
    %c0_95 = arith.constant 0 : index
    %c0_96 = arith.constant 0 : index
    %87 = vector.load %arg12[%c2_94, %c0_95, %c0_96] : memref<3x64x64xf32, #tpu.memory_space<vmem>>, vector<1x64x64xf32>
    %88 = vector.shape_cast %87 : vector<1x64x64xf32> to vector<64x64xf32>
    %cst_97 = arith.constant dense<0.000000e+00> : vector<16x64xf32>
    %89 = tpu.matmul %79, %88, %cst_97 {dimension_numbers = #tpu.dot_dimension_numbers<[1], [0], [0], [1], [0, 0, 1, 1], [], []>} : vector<16x64xf32>, vector<64x64xf32>, vector<16x64xf32> -> vector<16x64xf32>
    %90 = arith.addf %86, %89 : vector<16x64xf32>
    %c0_98 = arith.constant 0 : index
    %c0_99 = arith.constant 0 : index
    %91 = vector.load %arg13[%c0_98, %c0_99] : memref<1x64xf32, #tpu.memory_space<vmem>>, vector<1x64xf32>
    %92 = vector.broadcast %91 : vector<1x64xf32> to vector<16x64xf32>
    %93 = arith.addf %90, %92 : vector<16x64xf32>
    %cst_100 = arith.constant 0.000000e+00 : f32
    %94 = vector.broadcast %cst_100 : f32 to vector<16x64xf32>
    %95 = arith.maximumf %93, %94 : vector<16x64xf32>
    %c0_101 = arith.constant 0 : index
    %c0_102 = arith.constant 0 : index
    %c0_103 = arith.constant 0 : index
    %96 = vector.load %arg15[%c0_101, %c0_102, %c0_103] : memref<2x8x16xf32, #tpu.memory_space<vmem>>, vector<1x8x16xf32>
    %97 = vector.shape_cast %96 : vector<1x8x16xf32> to vector<8x16xf32>
    %cst_104 = arith.constant dense<0.000000e+00> : vector<8x64xf32>
    %98 = tpu.matmul %97, %95, %cst_104 {dimension_numbers = #tpu.dot_dimension_numbers<[1], [0], [0], [1], [0, 0, 1, 1], [], []>} : vector<8x16xf32>, vector<16x64xf32>, vector<8x64xf32> -> vector<8x64xf32>
    %c1_105 = arith.constant 1 : index
    %c0_106 = arith.constant 0 : index
    %c0_107 = arith.constant 0 : index
    %99 = vector.load %arg15[%c1_105, %c0_106, %c0_107] : memref<2x8x16xf32, #tpu.memory_space<vmem>>, vector<1x8x16xf32>
    %100 = vector.shape_cast %99 : vector<1x8x16xf32> to vector<8x16xf32>
    %cst_108 = arith.constant dense<0.000000e+00> : vector<8x64xf32>
    %101 = tpu.matmul %100, %95, %cst_108 {dimension_numbers = #tpu.dot_dimension_numbers<[1], [0], [0], [1], [0, 0, 1, 1], [], []>} : vector<8x16xf32>, vector<16x64xf32>, vector<8x64xf32> -> vector<8x64xf32>
    %102 = arith.maximumf %98, %101 : vector<8x64xf32>
    %c0_109 = arith.constant 0 : index
    %c0_110 = arith.constant 0 : index
    %c0_111 = arith.constant 0 : index
    %103 = vector.load %arg16[%c0_109, %c0_110, %c0_111] : memref<2x64x32xf32, #tpu.memory_space<vmem>>, vector<1x64x32xf32>
    %104 = vector.shape_cast %103 : vector<1x64x32xf32> to vector<64x32xf32>
    %cst_112 = arith.constant dense<0.000000e+00> : vector<8x32xf32>
    %105 = tpu.matmul %102, %104, %cst_112 {dimension_numbers = #tpu.dot_dimension_numbers<[1], [0], [0], [1], [0, 0, 1, 1], [], []>} : vector<8x64xf32>, vector<64x32xf32>, vector<8x32xf32> -> vector<8x32xf32>
    %c1_113 = arith.constant 1 : index
    %c0_114 = arith.constant 0 : index
    %c0_115 = arith.constant 0 : index
    %106 = vector.load %arg16[%c1_113, %c0_114, %c0_115] : memref<2x64x32xf32, #tpu.memory_space<vmem>>, vector<1x64x32xf32>
    %107 = vector.shape_cast %106 : vector<1x64x32xf32> to vector<64x32xf32>
    %cst_116 = arith.constant dense<0.000000e+00> : vector<8x32xf32>
    %108 = tpu.matmul %102, %107, %cst_116 {dimension_numbers = #tpu.dot_dimension_numbers<[1], [0], [0], [1], [0, 0, 1, 1], [], []>} : vector<8x64xf32>, vector<64x32xf32>, vector<8x32xf32> -> vector<8x32xf32>
    %109 = arith.maximumf %105, %108 : vector<8x32xf32>
    %c0_117 = arith.constant 0 : index
    %c0_118 = arith.constant 0 : index
    %c0_119 = arith.constant 0 : index
    %110 = vector.load %arg19[%c0_117, %c0_118, %c0_119] : memref<2x8x8xf32, #tpu.memory_space<vmem>>, vector<1x8x8xf32>
    %111 = vector.shape_cast %110 : vector<1x8x8xf32> to vector<8x8xf32>
    %cst_120 = arith.constant dense<0.000000e+00> : vector<8x32xf32>
    %112 = tpu.matmul %111, %109, %cst_120 {dimension_numbers = #tpu.dot_dimension_numbers<[1], [0], [0], [1], [0, 0, 1, 1], [], []>} : vector<8x8xf32>, vector<8x32xf32>, vector<8x32xf32> -> vector<8x32xf32>
    %c1_121 = arith.constant 1 : index
    %c0_122 = arith.constant 0 : index
    %c0_123 = arith.constant 0 : index
    %113 = vector.load %arg19[%c1_121, %c0_122, %c0_123] : memref<2x8x8xf32, #tpu.memory_space<vmem>>, vector<1x8x8xf32>
    %114 = vector.shape_cast %113 : vector<1x8x8xf32> to vector<8x8xf32>
    %cst_124 = arith.constant dense<0.000000e+00> : vector<8x32xf32>
    %115 = tpu.matmul %114, %109, %cst_124 {dimension_numbers = #tpu.dot_dimension_numbers<[1], [0], [0], [1], [0, 0, 1, 1], [], []>} : vector<8x8xf32>, vector<8x32xf32>, vector<8x32xf32> -> vector<8x32xf32>
    %c0_125 = arith.constant 0 : index
    %c0_126 = arith.constant 0 : index
    %c0_127 = arith.constant 0 : index
    %116 = vector.load %arg17[%c0_125, %c0_126, %c0_127] : memref<3x32x16xf32, #tpu.memory_space<vmem>>, vector<1x32x16xf32>
    %117 = vector.shape_cast %116 : vector<1x32x16xf32> to vector<32x16xf32>
    %cst_128 = arith.constant dense<0.000000e+00> : vector<8x16xf32>
    %118 = tpu.matmul %112, %117, %cst_128 {dimension_numbers = #tpu.dot_dimension_numbers<[1], [0], [0], [1], [0, 0, 1, 1], [], []>} : vector<8x32xf32>, vector<32x16xf32>, vector<8x16xf32> -> vector<8x16xf32>
    %c1_129 = arith.constant 1 : index
    %c0_130 = arith.constant 0 : index
    %c0_131 = arith.constant 0 : index
    %119 = vector.load %arg17[%c1_129, %c0_130, %c0_131] : memref<3x32x16xf32, #tpu.memory_space<vmem>>, vector<1x32x16xf32>
    %120 = vector.shape_cast %119 : vector<1x32x16xf32> to vector<32x16xf32>
    %cst_132 = arith.constant dense<0.000000e+00> : vector<8x16xf32>
    %121 = tpu.matmul %109, %120, %cst_132 {dimension_numbers = #tpu.dot_dimension_numbers<[1], [0], [0], [1], [0, 0, 1, 1], [], []>} : vector<8x32xf32>, vector<32x16xf32>, vector<8x16xf32> -> vector<8x16xf32>
    %122 = arith.addf %118, %121 : vector<8x16xf32>
    %c2_133 = arith.constant 2 : index
    %c0_134 = arith.constant 0 : index
    %c0_135 = arith.constant 0 : index
    %123 = vector.load %arg17[%c2_133, %c0_134, %c0_135] : memref<3x32x16xf32, #tpu.memory_space<vmem>>, vector<1x32x16xf32>
    %124 = vector.shape_cast %123 : vector<1x32x16xf32> to vector<32x16xf32>
    %cst_136 = arith.constant dense<0.000000e+00> : vector<8x16xf32>
    %125 = tpu.matmul %115, %124, %cst_136 {dimension_numbers = #tpu.dot_dimension_numbers<[1], [0], [0], [1], [0, 0, 1, 1], [], []>} : vector<8x32xf32>, vector<32x16xf32>, vector<8x16xf32> -> vector<8x16xf32>
    %126 = arith.addf %122, %125 : vector<8x16xf32>
    %c0_137 = arith.constant 0 : index
    %c0_138 = arith.constant 0 : index
    %127 = vector.load %arg18[%c0_137, %c0_138] : memref<1x16xf32, #tpu.memory_space<vmem>>, vector<1x16xf32>
    %128 = vector.broadcast %127 : vector<1x16xf32> to vector<8x16xf32>
    %129 = arith.addf %126, %128 : vector<8x16xf32>
    %cst_139 = arith.constant 0.000000e+00 : f32
    %130 = vector.broadcast %cst_139 : f32 to vector<8x16xf32>
    %131 = arith.maximumf %129, %130 : vector<8x16xf32>
    %c0_140 = arith.constant 0 : index
    %c0_141 = arith.constant 0 : index
    %c0_142 = arith.constant 0 : index
    %132 = vector.load %arg20[%c0_140, %c0_141, %c0_142] : memref<2x4x8xf32, #tpu.memory_space<vmem>>, vector<1x4x8xf32>
    %133 = vector.shape_cast %132 : vector<1x4x8xf32> to vector<4x8xf32>
    %cst_143 = arith.constant dense<0.000000e+00> : vector<4x16xf32>
    %134 = tpu.matmul %133, %131, %cst_143 {dimension_numbers = #tpu.dot_dimension_numbers<[1], [0], [0], [1], [0, 0, 1, 1], [], []>} : vector<4x8xf32>, vector<8x16xf32>, vector<4x16xf32> -> vector<4x16xf32>
    %c1_144 = arith.constant 1 : index
    %c0_145 = arith.constant 0 : index
    %c0_146 = arith.constant 0 : index
    %135 = vector.load %arg20[%c1_144, %c0_145, %c0_146] : memref<2x4x8xf32, #tpu.memory_space<vmem>>, vector<1x4x8xf32>
    %136 = vector.shape_cast %135 : vector<1x4x8xf32> to vector<4x8xf32>
    %cst_147 = arith.constant dense<0.000000e+00> : vector<4x16xf32>
    %137 = tpu.matmul %136, %131, %cst_147 {dimension_numbers = #tpu.dot_dimension_numbers<[1], [0], [0], [1], [0, 0, 1, 1], [], []>} : vector<4x8xf32>, vector<8x16xf32>, vector<4x16xf32> -> vector<4x16xf32>
    %138 = arith.maximumf %134, %137 : vector<4x16xf32>
    %c0_148 = arith.constant 0 : index
    %c0_149 = arith.constant 0 : index
    %c0_150 = arith.constant 0 : index
    %139 = vector.load %arg21[%c0_148, %c0_149, %c0_150] : memref<2x16x8xf32, #tpu.memory_space<vmem>>, vector<1x16x8xf32>
    %140 = vector.shape_cast %139 : vector<1x16x8xf32> to vector<16x8xf32>
    %cst_151 = arith.constant dense<0.000000e+00> : vector<4x8xf32>
    %141 = tpu.matmul %138, %140, %cst_151 {dimension_numbers = #tpu.dot_dimension_numbers<[1], [0], [0], [1], [0, 0, 1, 1], [], []>} : vector<4x16xf32>, vector<16x8xf32>, vector<4x8xf32> -> vector<4x8xf32>
    %c1_152 = arith.constant 1 : index
    %c0_153 = arith.constant 0 : index
    %c0_154 = arith.constant 0 : index
    %142 = vector.load %arg21[%c1_152, %c0_153, %c0_154] : memref<2x16x8xf32, #tpu.memory_space<vmem>>, vector<1x16x8xf32>
    %143 = vector.shape_cast %142 : vector<1x16x8xf32> to vector<16x8xf32>
    %cst_155 = arith.constant dense<0.000000e+00> : vector<4x8xf32>
    %144 = tpu.matmul %138, %143, %cst_155 {dimension_numbers = #tpu.dot_dimension_numbers<[1], [0], [0], [1], [0, 0, 1, 1], [], []>} : vector<4x16xf32>, vector<16x8xf32>, vector<4x8xf32> -> vector<4x8xf32>
    %145 = arith.maximumf %141, %144 : vector<4x8xf32>
    %c0_156 = arith.constant 0 : index
    %c0_157 = arith.constant 0 : index
    %c0_158 = arith.constant 0 : index
    %146 = vector.load %arg22[%c0_156, %c0_157, %c0_158] : memref<2x2x4xf32, #tpu.memory_space<vmem>>, vector<1x2x4xf32>
    %147 = vector.shape_cast %146 : vector<1x2x4xf32> to vector<2x4xf32>
    %cst_159 = arith.constant dense<0.000000e+00> : vector<2x8xf32>
    %148 = tpu.matmul %147, %145, %cst_159 {dimension_numbers = #tpu.dot_dimension_numbers<[1], [0], [0], [1], [0, 0, 1, 1], [], []>} : vector<2x4xf32>, vector<4x8xf32>, vector<2x8xf32> -> vector<2x8xf32>
    %c1_160 = arith.constant 1 : index
    %c0_161 = arith.constant 0 : index
    %c0_162 = arith.constant 0 : index
    %149 = vector.load %arg22[%c1_160, %c0_161, %c0_162] : memref<2x2x4xf32, #tpu.memory_space<vmem>>, vector<1x2x4xf32>
    %150 = vector.shape_cast %149 : vector<1x2x4xf32> to vector<2x4xf32>
    %cst_163 = arith.constant dense<0.000000e+00> : vector<2x8xf32>
    %151 = tpu.matmul %150, %145, %cst_163 {dimension_numbers = #tpu.dot_dimension_numbers<[1], [0], [0], [1], [0, 0, 1, 1], [], []>} : vector<2x4xf32>, vector<4x8xf32>, vector<2x8xf32> -> vector<2x8xf32>
    %c0_164 = arith.constant 0 : index
    %c0_165 = arith.constant 0 : index
    %152 = vector.load %arg24[%c0_164, %c0_165] : memref<1x256xf32, #tpu.memory_space<vmem>>, vector<1x256xf32>
    %c0_166 = arith.constant 0 : index
    %c0_167 = arith.constant 0 : index
    %c0_168 = arith.constant 0 : index
    %153 = vector.load %arg23[%c0_166, %c0_167, %c0_168] : memref<2x8x256xf32, #tpu.memory_space<vmem>>, vector<1x8x256xf32>
    %154 = vector.shape_cast %153 : vector<1x8x256xf32> to vector<8x256xf32>
    %cst_169 = arith.constant dense<0.000000e+00> : vector<2x256xf32>
    %155 = tpu.matmul %148, %154, %cst_169 {dimension_numbers = #tpu.dot_dimension_numbers<[1], [0], [0], [1], [0, 0, 1, 1], [], []>} : vector<2x8xf32>, vector<8x256xf32>, vector<2x256xf32> -> vector<2x256xf32>
    %156 = vector.broadcast %152 : vector<1x256xf32> to vector<2x256xf32>
    %157 = arith.addf %156, %155 : vector<2x256xf32>
    %c1_170 = arith.constant 1 : index
    %c0_171 = arith.constant 0 : index
    %c0_172 = arith.constant 0 : index
    %158 = vector.load %arg23[%c1_170, %c0_171, %c0_172] : memref<2x8x256xf32, #tpu.memory_space<vmem>>, vector<1x8x256xf32>
    %159 = vector.shape_cast %158 : vector<1x8x256xf32> to vector<8x256xf32>
    %cst_173 = arith.constant dense<0.000000e+00> : vector<2x256xf32>
    %160 = tpu.matmul %151, %159, %cst_173 {dimension_numbers = #tpu.dot_dimension_numbers<[1], [0], [0], [1], [0, 0, 1, 1], [], []>} : vector<2x8xf32>, vector<8x256xf32>, vector<2x256xf32> -> vector<2x256xf32>
    %161 = arith.addf %157, %160 : vector<2x256xf32>
    %cst_174 = arith.constant 0.000000e+00 : f32
    %162 = vector.broadcast %cst_174 : f32 to vector<2x256xf32>
    %163 = arith.subf %162, %161 : vector<2x256xf32>
    %164 = math.exp %163 : vector<2x256xf32>
    %cst_175 = arith.constant 1.000000e+00 : f32
    %165 = vector.broadcast %cst_175 : f32 to vector<2x256xf32>
    %166 = arith.addf %165, %164 : vector<2x256xf32>
    %167 = tpu.reciprocal %166 {approx = true} : vector<2x256xf32> -> vector<2x256xf32>
    %c0_176 = arith.constant 0 : index
    %c0_177 = arith.constant 0 : index
    %c0_178 = arith.constant 0 : index
    %168 = vector.load %arg25[%c0_176, %c0_177, %c0_178] : memref<2x8x64xf32, #tpu.memory_space<vmem>>, vector<1x8x64xf32>
    %169 = vector.shape_cast %168 : vector<1x8x64xf32> to vector<8x64xf32>
    %cst_179 = arith.constant dense<0.000000e+00> : vector<2x64xf32>
    %170 = tpu.matmul %148, %169, %cst_179 {dimension_numbers = #tpu.dot_dimension_numbers<[1], [0], [0], [1], [0, 0, 1, 1], [], []>} : vector<2x8xf32>, vector<8x64xf32>, vector<2x64xf32> -> vector<2x64xf32>
    %c1_180 = arith.constant 1 : index
    %c0_181 = arith.constant 0 : index
    %c0_182 = arith.constant 0 : index
    %171 = vector.load %arg25[%c1_180, %c0_181, %c0_182] : memref<2x8x64xf32, #tpu.memory_space<vmem>>, vector<1x8x64xf32>
    %172 = vector.shape_cast %171 : vector<1x8x64xf32> to vector<8x64xf32>
    %cst_183 = arith.constant dense<0.000000e+00> : vector<2x64xf32>
    %173 = tpu.matmul %151, %172, %cst_183 {dimension_numbers = #tpu.dot_dimension_numbers<[1], [0], [0], [1], [0, 0, 1, 1], [], []>} : vector<2x8xf32>, vector<8x64xf32>, vector<2x64xf32> -> vector<2x64xf32>
    %174 = arith.addf %170, %173 : vector<2x64xf32>
    %c0_184 = arith.constant 0 : index
    %c0_185 = arith.constant 0 : index
    %175 = vector.load %arg26[%c0_184, %c0_185] : memref<1x64xf32, #tpu.memory_space<vmem>>, vector<1x64xf32>
    %c0_186 = arith.constant 0 : index
    %c0_187 = arith.constant 0 : index
    %176 = vector.load %arg27[%c0_186, %c0_187] : memref<1x64xf32, #tpu.memory_space<vmem>>, vector<1x64xf32>
    %177 = vector.broadcast %176 : vector<1x64xf32> to vector<2x64xf32>
    %178 = arith.addf %174, %177 : vector<2x64xf32>
    %179 = vector.broadcast %175 : vector<1x64xf32> to vector<2x64xf32>
    %180 = arith.mulf %179, %178 : vector<2x64xf32>
    %181 = arith.mulf %180, %180 : vector<2x64xf32>
    %cst_188 = arith.constant 0.000000e+00 : f32
    %182 = vector.broadcast %cst_188 : f32 to vector<2x64xf32>
    %183 = arith.subf %182, %181 : vector<2x64xf32>
    %184 = math.exp %183 : vector<2x64xf32>
    %c0_189 = arith.constant 0 : index
    %c0_190 = arith.constant 0 : index
    %185 = vector.load %arg28[%c0_189, %c0_190] : memref<64x64xf32, #tpu.memory_space<vmem>>, vector<64x64xf32>
    %cst_191 = arith.constant dense<0.000000e+00> : vector<2x64xf32>
    %186 = tpu.matmul %184, %185, %cst_191 {dimension_numbers = #tpu.dot_dimension_numbers<[1], [0], [0], [1], [0, 0, 1, 1], [], []>} : vector<2x64xf32>, vector<64x64xf32>, vector<2x64xf32> -> vector<2x64xf32>
    %cst_192 = arith.constant 9.99999997E-7 : f32
    %187 = vector.broadcast %cst_192 : f32 to vector<2x64xf32>
    %188 = arith.addf %186, %187 : vector<2x64xf32>
    %189 = tpu.reciprocal %188 {approx = true} : vector<2x64xf32> -> vector<2x64xf32>
    %190 = arith.mulf %184, %189 : vector<2x64xf32>
    %191 = tpu.concatenate %167, %190 in 1 : vector<2x256xf32>, vector<2x64xf32> -> vector<2x320xf32>
    %c0_193 = arith.constant 0 : index
    %c0_194 = arith.constant 0 : index
    %192 = vector.load %arg29[%c0_193, %c0_194] : memref<320x4xf32, #tpu.memory_space<vmem>>, vector<320x4xf32>
    %cst_195 = arith.constant dense<0.000000e+00> : vector<2x4xf32>
    %193 = tpu.matmul %191, %192, %cst_195 {dimension_numbers = #tpu.dot_dimension_numbers<[1], [0], [0], [1], [0, 0, 1, 1], [], []>} : vector<2x320xf32>, vector<320x4xf32>, vector<2x4xf32> -> vector<2x4xf32>
    %c0_196 = arith.constant 0 : index
    %c0_197 = arith.constant 0 : index
    %194 = vector.load %arg30[%c0_196, %c0_197] : memref<1x4xf32, #tpu.memory_space<vmem>>, vector<1x4xf32>
    %195 = vector.broadcast %194 : vector<1x4xf32> to vector<2x4xf32>
    %196 = arith.addf %193, %195 : vector<2x4xf32>
    %c0_198 = arith.constant 0 : index
    %c0_199 = arith.constant 0 : index
    %197 = vector.load %arg32[%c0_198, %c0_199] : memref<2x4xf32, #tpu.memory_space<vmem>>, vector<2x4xf32>
    tpu.vector_store %arg32[%c0_198, %c0_199], %196 {strides = array<i32>} : memref<2x4xf32, #tpu.memory_space<vmem>>, vector<2x4xf32>,
    return
  }
  func.func @transform_0(%arg0: i32) -> (i32, i32) {
    %c0_i32 = arith.constant 0 : i32
    %c0_i32_0 = arith.constant 0 : i32
    return %arg0, %c0_i32 : i32, i32
  }
  func.func @transform_1(%arg0: i32) -> (i32, i32, i32) {
    %c0_i32 = arith.constant 0 : i32
    %c0_i32_0 = arith.constant 0 : i32
    %c0_i32_1 = arith.constant 0 : i32
    %c0_i32_2 = arith.constant 0 : i32
    return %c0_i32, %c0_i32_0, %c0_i32_1 : i32, i32, i32
  }
  func.func @transform_2(%arg0: i32) -> (i32, i32) {
    %c0_i32 = arith.constant 0 : i32
    %c0_i32_0 = arith.constant 0 : i32
    %c0_i32_1 = arith.constant 0 : i32
    return %c0_i32, %c0_i32_0 : i32, i32
  }
  func.func @transform_3(%arg0: i32) -> (i32, i32, i32) {
    %c0_i32 = arith.constant 0 : i32
    %c0_i32_0 = arith.constant 0 : i32
    %c0_i32_1 = arith.constant 0 : i32
    %c0_i32_2 = arith.constant 0 : i32
    return %c0_i32, %c0_i32_0, %c0_i32_1 : i32, i32, i32
  }
  func.func @transform_4(%arg0: i32) -> (i32, i32, i32) {
    %c0_i32 = arith.constant 0 : i32
    %c0_i32_0 = arith.constant 0 : i32
    %c0_i32_1 = arith.constant 0 : i32
    %c0_i32_2 = arith.constant 0 : i32
    return %c0_i32, %c0_i32_0, %c0_i32_1 : i32, i32, i32
  }
  func.func @transform_5(%arg0: i32) -> (i32, i32, i32) {
    %c0_i32 = arith.constant 0 : i32
    %c0_i32_0 = arith.constant 0 : i32
    %c0_i32_1 = arith.constant 0 : i32
    %c0_i32_2 = arith.constant 0 : i32
    return %c0_i32, %c0_i32_0, %c0_i32_1 : i32, i32, i32
  }
  func.func @transform_6(%arg0: i32) -> (i32, i32, i32) {
    %c0_i32 = arith.constant 0 : i32
    %c0_i32_0 = arith.constant 0 : i32
    %c0_i32_1 = arith.constant 0 : i32
    %c0_i32_2 = arith.constant 0 : i32
    return %c0_i32, %c0_i32_0, %c0_i32_1 : i32, i32, i32
  }
  func.func @transform_7(%arg0: i32) -> (i32, i32) {
    %c0_i32 = arith.constant 0 : i32
    %c0_i32_0 = arith.constant 0 : i32
    %c0_i32_1 = arith.constant 0 : i32
    return %c0_i32, %c0_i32_0 : i32, i32
  }
  func.func @transform_8(%arg0: i32) -> (i32, i32, i32) {
    %c0_i32 = arith.constant 0 : i32
    %c0_i32_0 = arith.constant 0 : i32
    %c0_i32_1 = arith.constant 0 : i32
    %c0_i32_2 = arith.constant 0 : i32
    return %c0_i32, %c0_i32_0, %c0_i32_1 : i32, i32, i32
  }
  func.func @transform_9(%arg0: i32) -> (i32, i32, i32) {
    %c0_i32 = arith.constant 0 : i32
    %c0_i32_0 = arith.constant 0 : i32
    %c0_i32_1 = arith.constant 0 : i32
    %c0_i32_2 = arith.constant 0 : i32
    return %c0_i32, %c0_i32_0, %c0_i32_1 : i32, i32, i32
  }
  func.func @transform_10(%arg0: i32) -> (i32, i32, i32) {
    %c0_i32 = arith.constant 0 : i32
    %c0_i32_0 = arith.constant 0 : i32
    %c0_i32_1 = arith.constant 0 : i32
    %c0_i32_2 = arith.constant 0 : i32
    return %c0_i32, %c0_i32_0, %c0_i32_1 : i32, i32, i32
  }
  func.func @transform_11(%arg0: i32) -> (i32, i32, i32) {
    %c0_i32 = arith.constant 0 : i32
    %c0_i32_0 = arith.constant 0 : i32
    %c0_i32_1 = arith.constant 0 : i32
    %c0_i32_2 = arith.constant 0 : i32
    return %c0_i32, %c0_i32_0, %c0_i32_1 : i32, i32, i32
  }
  func.func @transform_12(%arg0: i32) -> (i32, i32) {
    %c0_i32 = arith.constant 0 : i32
    %c0_i32_0 = arith.constant 0 : i32
    %c0_i32_1 = arith.constant 0 : i32
    return %c0_i32, %c0_i32_0 : i32, i32
  }
  func.func @transform_13(%arg0: i32) -> (i32, i32, i32) {
    %c0_i32 = arith.constant 0 : i32
    %c0_i32_0 = arith.constant 0 : i32
    %c0_i32_1 = arith.constant 0 : i32
    %c0_i32_2 = arith.constant 0 : i32
    return %c0_i32, %c0_i32_0, %c0_i32_1 : i32, i32, i32
  }
  func.func @transform_14(%arg0: i32) -> (i32, i32, i32) {
    %c0_i32 = arith.constant 0 : i32
    %c0_i32_0 = arith.constant 0 : i32
    %c0_i32_1 = arith.constant 0 : i32
    %c0_i32_2 = arith.constant 0 : i32
    return %c0_i32, %c0_i32_0, %c0_i32_1 : i32, i32, i32
  }
  func.func @transform_15(%arg0: i32) -> (i32, i32, i32) {
    %c0_i32 = arith.constant 0 : i32
    %c0_i32_0 = arith.constant 0 : i32
    %c0_i32_1 = arith.constant 0 : i32
    %c0_i32_2 = arith.constant 0 : i32
    return %c0_i32, %c0_i32_0, %c0_i32_1 : i32, i32, i32
  }
  func.func @transform_16(%arg0: i32) -> (i32, i32, i32) {
    %c0_i32 = arith.constant 0 : i32
    %c0_i32_0 = arith.constant 0 : i32
    %c0_i32_1 = arith.constant 0 : i32
    %c0_i32_2 = arith.constant 0 : i32
    return %c0_i32, %c0_i32_0, %c0_i32_1 : i32, i32, i32
  }
  func.func @transform_17(%arg0: i32) -> (i32, i32) {
    %c0_i32 = arith.constant 0 : i32
    %c0_i32_0 = arith.constant 0 : i32
    %c0_i32_1 = arith.constant 0 : i32
    return %c0_i32, %c0_i32_0 : i32, i32
  }
  func.func @transform_18(%arg0: i32) -> (i32, i32, i32) {
    %c0_i32 = arith.constant 0 : i32
    %c0_i32_0 = arith.constant 0 : i32
    %c0_i32_1 = arith.constant 0 : i32
    %c0_i32_2 = arith.constant 0 : i32
    return %c0_i32, %c0_i32_0, %c0_i32_1 : i32, i32, i32
  }
  func.func @transform_19(%arg0: i32) -> (i32, i32, i32) {
    %c0_i32 = arith.constant 0 : i32
    %c0_i32_0 = arith.constant 0 : i32
    %c0_i32_1 = arith.constant 0 : i32
    %c0_i32_2 = arith.constant 0 : i32
    return %c0_i32, %c0_i32_0, %c0_i32_1 : i32, i32, i32
  }
  func.func @transform_20(%arg0: i32) -> (i32, i32, i32) {
    %c0_i32 = arith.constant 0 : i32
    %c0_i32_0 = arith.constant 0 : i32
    %c0_i32_1 = arith.constant 0 : i32
    %c0_i32_2 = arith.constant 0 : i32
    return %c0_i32, %c0_i32_0, %c0_i32_1 : i32, i32, i32
  }
  func.func @transform_21(%arg0: i32) -> (i32, i32, i32) {
    %c0_i32 = arith.constant 0 : i32
    %c0_i32_0 = arith.constant 0 : i32
    %c0_i32_1 = arith.constant 0 : i32
    %c0_i32_2 = arith.constant 0 : i32
    return %c0_i32, %c0_i32_0, %c0_i32_1 : i32, i32, i32
  }
  func.func @transform_22(%arg0: i32) -> (i32, i32, i32) {
    %c0_i32 = arith.constant 0 : i32
    %c0_i32_0 = arith.constant 0 : i32
    %c0_i32_1 = arith.constant 0 : i32
    %c0_i32_2 = arith.constant 0 : i32
    return %c0_i32, %c0_i32_0, %c0_i32_1 : i32, i32, i32
  }
  func.func @transform_23(%arg0: i32) -> (i32, i32) {
    %c0_i32 = arith.constant 0 : i32
    %c0_i32_0 = arith.constant 0 : i32
    %c0_i32_1 = arith.constant 0 : i32
    return %c0_i32, %c0_i32_0 : i32, i32
  }
  func.func @transform_24(%arg0: i32) -> (i32, i32, i32) {
    %c0_i32 = arith.constant 0 : i32
    %c0_i32_0 = arith.constant 0 : i32
    %c0_i32_1 = arith.constant 0 : i32
    %c0_i32_2 = arith.constant 0 : i32
    return %c0_i32, %c0_i32_0, %c0_i32_1 : i32, i32, i32
  }
  func.func @transform_25(%arg0: i32) -> (i32, i32) {
    %c0_i32 = arith.constant 0 : i32
    %c0_i32_0 = arith.constant 0 : i32
    %c0_i32_1 = arith.constant 0 : i32
    return %c0_i32, %c0_i32_0 : i32, i32
  }
  func.func @transform_26(%arg0: i32) -> (i32, i32) {
    %c0_i32 = arith.constant 0 : i32
    %c0_i32_0 = arith.constant 0 : i32
    %c0_i32_1 = arith.constant 0 : i32
    return %c0_i32, %c0_i32_0 : i32, i32
  }
  func.func @transform_27(%arg0: i32) -> (i32, i32) {
    %c0_i32 = arith.constant 0 : i32
    %c0_i32_0 = arith.constant 0 : i32
    %c0_i32_1 = arith.constant 0 : i32
    return %c0_i32, %c0_i32_0 : i32, i32
  }
  func.func @transform_28(%arg0: i32) -> (i32, i32) {
    %c0_i32 = arith.constant 0 : i32
    %c0_i32_0 = arith.constant 0 : i32
    %c0_i32_1 = arith.constant 0 : i32
    return %c0_i32, %c0_i32_0 : i32, i32
  }
  func.func @transform_29(%arg0: i32) -> (i32, i32) {
    %c0_i32 = arith.constant 0 : i32
    %c0_i32_0 = arith.constant 0 : i32
    %c0_i32_1 = arith.constant 0 : i32
    return %c0_i32, %c0_i32_0 : i32, i32
  }
  func.func @transform_30(%arg0: i32) -> (i32, i32) {
    %c0_i32 = arith.constant 0 : i32
    %c0_i32_0 = arith.constant 0 : i32
    return %arg0, %c0_i32 : i32, i32
  }
  func.func @transform_31(%arg0: i32) -> (i32, i32) {
    %c0_i32 = arith.constant 0 : i32
    %c0_i32_0 = arith.constant 0 : i32
    return %arg0, %c0_i32 : i32, i32
  }
}

</mosaic_0001>

<bundles_post_ra>
// kernel: hist_res_forward.1
= control target key start
LH: loop header
LB: loop body
LE: loop exit
PB: predicated region body
PF: predicated region fallthrough
CT: control target
= control target key end

     0   :  { %s6424_s6 = smov 1   ;;  %s6425_s10 = smov 2   ;;  %s7294_s0 = inlined_call_operand.smem [shape: u32[32], index: -1, kind: input, shape index: {}] }
   0x1   :  { %s6493_s5 = sld [smem:[%s7294_s0]]   ;;  %s6426_s14 = smov 3  }
   0x2   :  { %s6498_s9 = sld [smem:[%s7294_s0 + %s6424_s6]]   ;;  %s6427_s18 = smov 4  }
   0x3   :  { %s6503_s13 = sld [smem:[%s7294_s0 + %s6425_s10]]   ;;  %s6428_s22 = smov 5  }
   0x4   :  { %s6508_s17 = sld [smem:[%s7294_s0 + %s6426_s14]]   ;;  %s6429_s26 = smov 6  }
   0x5   :  { %s6513_s21 = sld [smem:[%s7294_s0 + %s6427_s18]]   ;;  %s6430_s30 = smov 7  }
   0x6   :  { %s6518_s25 = sld [smem:[%s7294_s0 + %s6428_s22]]   ;;  %s6431_s4 = smov 8  }
   0x7   :  { %s6523_s29 = sld [smem:[%s7294_s0 + %s6429_s26]]   ;;  %s6432_s10 = smov 9  }
   0x8   :  { %7306 = sst [smem:[#allocation44_spill]] %s6498_s9  ;;  %s6433_s15 = smov 10  }
   0x9   :  { %7307 = sst [smem:[#allocation45_spill]] %s6503_s13  ;;  %s6434_s20 = smov 11  }
   0xa   :  { %s6528_s3 = sld [smem:[%s7294_s0 + %s6430_s30]]   ;;  %s6435_s26 = smov 12  }
   0xb   :  { %s6533_s8 = sld [smem:[%s7294_s0 + %s6431_s4]]   ;;  %s6436_s1 = smov 13  }
   0xc   :  { %7308 = sst [smem:[#allocation46_spill]] %s6518_s25  ;;  %s6437_s7 = smov 14  }
   0xd   :  { %7309 = sst [smem:[#allocation47_spill]] %s6523_s29  ;;  %s6439_s22 = smov 16  }
   0xe   :  { %s6538_s14 = sld [smem:[%s7294_s0 + %s6432_s10]]   ;;  %s6440_s28 = smov 17  }
   0xf   :  { %s6543_s19 = sld [smem:[%s7294_s0 + %s6433_s15]]   ;;  %s6438_s15 = smov 15  }
  0x10   :  { %s6548_s24 = sld [smem:[%s7294_s0 + %s6434_s20]]  }
  0x11   :  { %s6553_s30 = sld [smem:[%s7294_s0 + %s6435_s26]]  }
  0x12   :  { %s6558_s6 = sld [smem:[%s7294_s0 + %s6436_s1]]  }
  0x13   :  { %s6563_s12 = sld [smem:[%s7294_s0 + %s6437_s7]]   ;;  %s6441_s7 = smov 18  }
  0x14   :  { %7310 = sst [smem:[#allocation48_spill]] %s6538_s14 }
  0x15   :  { %7311 = sst [smem:[#allocation49_spill]] %s6543_s19 }
  0x16   :  { %s6568_s20 = sld [smem:[%s7294_s0 + %s6438_s15]]   ;;  %s6442_s15 = smov 19  }
  0x17   :  { %s6573_s27 = sld [smem:[%s7294_s0 + %s6439_s22]]   ;;  %s6443_s22 = smov 20  }
  0x18   :  { %s6578_s4 = sld [smem:[%s7294_s0 + %s6440_s28]]   ;;  %s6444_s28 = smov 21  }
  0x19   :  { %s6583_s19 = sld [smem:[%s7294_s0 + %s6441_s7]]   ;;  %s6445_s7 = smov 22  }
  0x1a   :  { %s6598_s14 = sld [smem:[%s7294_s0 + %s6444_s28]]   ;;  %s6448_s28 = smov 25  }
  0x1b   :  { %s6618_s13 = sld [smem:[%s7294_s0 + %s6448_s28]]   ;;  %s6452_s28 = smov 29  }
  0x1c   :  { %7312 = sst [smem:[#allocation50_spill]] %s6568_s20 }
  0x1d   :  { %7313 = sst [smem:[#allocation51_spill]] %s6573_s27 }
  0x1e   :  { %s6588_s20 = sld [smem:[%s7294_s0 + %s6442_s15]]   ;;  %s6446_s15 = smov 23  }
  0x1f   :  { %7314 = sst [smem:[#allocation52_spill]] %s6583_s19 }
  0x20   :  { %s6593_s27 = sld [smem:[%s7294_s0 + %s6443_s22]]   ;;  %s6447_s22 = smov 24  }
  0x21   :  { %s6603_s19 = sld [smem:[%s7294_s0 + %s6445_s7]]   ;;  %s6449_s7 = smov 26  }
  0x22   :  { %s6608_s29 = sld [smem:[%s7294_s0 + %s6446_s15]]   ;;  %s6450_s15 = smov 27  }
  0x23   :  { %s6623_s25 = sld [smem:[%s7294_s0 + %s6449_s7]]   ;;  %s6453_s7 = smov 30  }
  0x24   :  { %7315 = sst [smem:[#allocation53_spill]] %s6588_s20 }
  0x25   :  { %s6628_s9 = sld [smem:[%s7294_s0 + %s6450_s15]]   ;;  %s6454_s15 = smov 31  }
  0x26   :  { %7316 = sst [smem:[#allocation54_spill]] %s6593_s27 }
  0x27   :  { %7317 = sst [smem:[#allocation55_spill]] %s6603_s19 }
  0x28   :  { %s6613_s27 = sld [smem:[%s7294_s0 + %s6447_s22]]   ;;  %s6451_s22 = smov 28  }
  0x29   :  { %7319 = sst [smem:[#allocation57_spill]] %s6623_s25 }
  0x2a   :  { %s6638_s19 = sld [smem:[%s7294_s0 + %s6452_s28]]  }
  0x2b   :  { %s6643_s25 = sld [smem:[%s7294_s0 + %s6453_s7]]  }
  0x2c   :  { %s6648_s20 = sld [smem:[%s7294_s0 + %s6454_s15]]  }
  0x2e   :  { %7318 = sst [smem:[#allocation56_spill]] %s6613_s27 }
  0x2f   :  { %s6633_s27 = sld [smem:[%s7294_s0 + %s6451_s22]]  }
  0x30   :  { %69 = vsyncpa [#allocation3], 0 }
  0x31   :  { %70 = vsyncpa [#allocation6], 0 }
  0x32   :  { %71 = vsyncpa [#allocation9], 0 }
  0x33   :  { %72 = vsyncpa [#allocation12], 0 }
  0x34   :  { %73 = vsyncpa [#allocation15], 0 }
  0x35   :  { %74 = vsyncpa [#allocation18], 0 }
  0x36   :  { %75 = vsyncpa [#allocation21], 0 }
  0x37   :  { %76 = vsyncpa [#allocation24], 0 }
  0x38   :  { %77 = vsyncpa [#allocation27], 0 }
  0x39   :  { %78 = vsyncpa [#allocation30], 0 }
  0x3a   :  { %79 = vsyncpa [#allocation4], 0  ;;  %s6455_s22 = smov [#allocation5]   ;;  %s6456_s26 = smov [#allocation8]  }
  0x3b   :  { %s101_s23 = sshll.u32 %s6455_s22, 4  ;;  %s130_s28 = sshll.u32 %s6456_s26, 4  ;;  %s102_s23 = int_to_ptr.vmem [resolvable:$true] %s101_s23  ;;  %s131_s28 = int_to_ptr.vmem [resolvable:$true] %s130_s28 }
  0x3c   :  { %s6010_s1 = scalar_lea.vmem %s102_s23, 2048  ;;  %p6015_p1 = scmp.lt.s32.totalorder %s102_s23, %s102_s23 }
  0x3d   :  { %p6011_p0 = scmp.ne.s32.totalorder %s102_s23, %s6010_s1  ;;  %p6016_p2 = scmp.lt.s32.totalorder %s6010_s1, %s6010_s1 }
  0x3f   :  { %p6017_p3 = por %p6016_p2, %p6015_p1 }
  0x41   :  { %p6018_p4 = pnand %p6017_p3, %p6011_p0 }
  0x43   :  { %6021 = shalt.err (!%p6018_p4)
}
  0x44   :  { %s6457_s0 = smov 128   ;;  %s6458_s2 = smov 8  }
  0x45   :  { %107 = dma.hbm_to_vmem [thread:$0]  %s6508_s17, 2048, %s102_s23, [#allocation6], %s6457_s0, %s6457_s0, %s6458_s2  }
  0x46   :  { %s6030_s7 = scalar_lea.vmem %s131_s28, 16  ;;  %s6034_s10 = scalar_lea.vmem %s131_s28, 32 }
  0x47   :  { %p6031_p5 = scmp.ne.s32.totalorder %s131_s28, %s6030_s7  ;;  %p6035_p6 = scmp.lt.s32.totalorder %s131_s28, %s131_s28 }
  0x48   :  { %p6036_p7 = scmp.lt.s32.totalorder %s6034_s10, %s6030_s7 }
  0x4a   :  { %p6037_p8 = por %p6036_p7, %p6035_p6 }
  0x4c   :  { %p6038_p9 = pnand %p6037_p8, %p6031_p5 }
  0x4e   :  { %6041 = shalt.err (!%p6038_p9)
}
  0x4f   :  { %133 = dma.hbm_to_vmem [thread:$0]  %s6528_s3, 16, %s131_s28, [#allocation9]  }
  0x50   :  { %s6459_s11 = smov [#allocation11]   ;;  %s6460_s16 = smov [#allocation14]  }
  0x51   :  { %s155_s15 = sshll.u32 %s6459_s11, 4  ;;  %s177_s18 = sshll.u32 %s6460_s16, 4  ;;  %s156_s15 = int_to_ptr.vmem [resolvable:$true] %s155_s15  ;;  %s178_s18 = int_to_ptr.vmem [resolvable:$true] %s177_s18 }
  0x52   :  { %s6050_s22 = scalar_lea.vmem %s156_s15, 3072  ;;  %p6055_p11 = scmp.lt.s32.totalorder %s156_s15, %s156_s15 }
  0x53   :  { %p6051_p10 = scmp.ne.s32.totalorder %s156_s15, %s6050_s22  ;;  %p6056_p12 = scmp.lt.s32.totalorder %s6050_s22, %s6050_s22 }
  0x55   :  { %p6057_p13 = por %p6056_p12, %p6055_p11 }
  0x57   :  { %p6058_p0 = pnand %p6057_p13, %p6051_p10 }
  0x59   :  { %6061 = shalt.err (!%p6058_p0)
}
  0x5a   :  { %161 = dma.hbm_to_vmem [thread:$0]  %s6548_s24, 3072, %s156_s15, [#allocation12], %s6457_s0, %s6457_s0, %s6458_s2  }
  0x5b   :  { %s6070_s17 = scalar_lea.vmem %s178_s18, 512  ;;  %p6075_p2 = scmp.lt.s32.totalorder %s178_s18, %s178_s18 }
  0x5c   :  { %p6071_p1 = scmp.ne.s32.totalorder %s178_s18, %s6070_s17  ;;  %p6076_p3 = scmp.lt.s32.totalorder %s6070_s17, %s6070_s17 }
  0x5e   :  { %p6077_p4 = por %p6076_p3, %p6075_p2 }
  0x60   :  { %p6078_p5 = pnand %p6077_p4, %p6071_p1 }
  0x62   :  { %6081 = shalt.err (!%p6078_p5)
}
  0x63   :  { %183 = dma.hbm_to_vmem [thread:$0]  %s6558_s6, 512, %s178_s18, [#allocation15], %s6457_s0, %s6457_s0, %s6458_s2  }
  0x64   :  { %s6461_s3 = smov [#allocation17]   ;;  %s6462_s26 = smov [#allocation20]  }
  0x65   :  { %s206_s23 = sshll.u32 %s6461_s3, 4  ;;  %s231_s28 = sshll.u32 %s6462_s26, 4  ;;  %s207_s23 = int_to_ptr.vmem [resolvable:$true] %s206_s23  ;;  %s232_s28 = int_to_ptr.vmem [resolvable:$true] %s231_s28 }
  0x66   :  { %s6090_s1 = scalar_lea.vmem %s207_s23, 16  ;;  %s6094_s24 = scalar_lea.vmem %s207_s23, 32 }
  0x67   :  { %p6091_p6 = scmp.ne.s32.totalorder %s207_s23, %s6090_s1  ;;  %p6095_p7 = scmp.lt.s32.totalorder %s207_s23, %s207_s23 }
  0x68   :  { %p6096_p8 = scmp.lt.s32.totalorder %s6094_s24, %s6090_s1 }
  0x6a   :  { %p6097_p9 = por %p6096_p8, %p6095_p7 }
  0x6c   :  { %p6098_p10 = pnand %p6097_p9, %p6091_p6 }
  0x6e   :  { %6101 = shalt.err (!%p6098_p10)
}
  0x6f   :  { %209 = dma.hbm_to_vmem [thread:$0]  %s6578_s4, 16, %s207_s23, [#allocation18]  }
  0x70   :  { %s6110_s7 = scalar_lea.vmem %s232_s28, 64  ;;  %p6115_p12 = scmp.lt.s32.totalorder %s232_s28, %s232_s28 }
  0x71   :  { %p6111_p11 = scmp.ne.s32.totalorder %s232_s28, %s6110_s7  ;;  %p6116_p13 = scmp.lt.s32.totalorder %s6110_s7, %s6110_s7 }
  0x73   :  { %p6117_p0 = por %p6116_p13, %p6115_p12 }
  0x75   :  { %p6118_p1 = pnand %p6117_p0, %p6111_p11 }
  0x77   :  { %6121 = shalt.err (!%p6118_p1)
}
  0x78   :  { %s6463_s6 = smov 32   ;;  %s6464_s10 = smov 2  }
  0x79   :  { %237 = dma.hbm_to_vmem [thread:$0]  %s6598_s14, 64, %s232_s28, [#allocation21], %s6463_s6, %s6463_s6, %s6464_s10  }
  0x7a   :  { %s6465_s11 = smov [#allocation23]   ;;  %s6466_s16 = smov [#allocation26]  }
  0x7b   :  { %s256_s15 = sshll.u32 %s6465_s11, 4  ;;  %s278_s18 = sshll.u32 %s6466_s16, 4  ;;  %s257_s15 = int_to_ptr.vmem [resolvable:$true] %s256_s15  ;;  %s279_s18 = int_to_ptr.vmem [resolvable:$true] %s278_s18 }
  0x7c   :  { %s6130_s22 = scalar_lea.vmem %s257_s15, 32  ;;  %p6135_p3 = scmp.lt.s32.totalorder %s257_s15, %s257_s15 }
  0x7d   :  { %p6131_p2 = scmp.ne.s32.totalorder %s257_s15, %s6130_s22  ;;  %p6136_p4 = scmp.lt.s32.totalorder %s6130_s22, %s6130_s22 }
  0x7f   :  { %p6137_p5 = por %p6136_p4, %p6135_p3 }
  0x81   :  { %p6138_p6 = pnand %p6137_p5, %p6131_p2 }
  0x83   :  { %6141 = shalt.err (!%p6138_p6)
}
  0x84   :  { %259 = dma.hbm_to_vmem [thread:$0]  %s6608_s29, 32, %s257_s15, [#allocation24]  }
  0x85   :  { %s6150_s4 = scalar_lea.vmem %s279_s18, 16  ;;  %s6154_s17 = scalar_lea.vmem %s279_s18, 32 }
  0x86   :  { %p6151_p7 = scmp.ne.s32.totalorder %s279_s18, %s6150_s4  ;;  %p6155_p8 = scmp.lt.s32.totalorder %s279_s18, %s279_s18 }
  0x87   :  { %p6156_p9 = scmp.lt.s32.totalorder %s6154_s17, %s6150_s4 }
  0x89   :  { %p6157_p10 = por %p6156_p9, %p6155_p8 }
  0x8b   :  { %p6158_p11 = pnand %p6157_p10, %p6151_p7 }
  0x8d   :  { %6161 = shalt.err (!%p6158_p11)
}
  0x8e   :  { %281 = dma.hbm_to_vmem [thread:$0]  %s6618_s13, 16, %s279_s18, [#allocation27]  }
  0x8f   :  { %s6467_s14 = smov [#allocation29]   ;;  %s6468_s23 = smov [#allocation2]  }
  0x90   :  { %s297_s3 = sshll.u32 %s6467_s14, 4  ;;  %s85_s26 = sshll.u32 %s6468_s23, 4  ;;  %s298_s3 = int_to_ptr.vmem [resolvable:$true] %s297_s3  ;;  %s86_s26 = int_to_ptr.vmem [resolvable:$true] %s85_s26 }
  0x91   :  { %s6170_s28 = scalar_lea.vmem %s298_s3, 1024  ;;  %p6175_p13 = scmp.lt.s32.totalorder %s298_s3, %s298_s3 }
  0x92   :  { %p6171_p12 = scmp.ne.s32.totalorder %s298_s3, %s6170_s28  ;;  %p6176_p0 = scmp.lt.s32.totalorder %s6170_s28, %s6170_s28 }
  0x94   :  { %p6177_p1 = por %p6176_p0, %p6175_p13 }
  0x96   :  { %p6178_p2 = pnand %p6177_p1, %p6171_p12 }
  0x98   :  { %6181 = shalt.err (!%p6178_p2)
}
  0x99   :  { %303 = dma.hbm_to_vmem [thread:$0]  %s6628_s9, 1024, %s298_s3, [#allocation30], %s6457_s0, %s6457_s0, %s6458_s2  }
  0x9a   :  { %s6190_s29 = scalar_lea.vmem %s86_s26, 1024  ;;  %p6195_p4 = scmp.lt.s32.totalorder %s86_s26, %s86_s26 }
  0x9b   :  { %p6191_p3 = scmp.ne.s32.totalorder %s86_s26, %s6190_s29  ;;  %p6196_p5 = scmp.lt.s32.totalorder %s6190_s29, %s6190_s29 }
  0x9d   :  { %p6197_p6 = por %p6196_p5, %p6195_p4 }
  0x9f   :  { %p6198_p7 = pnand %p6197_p6, %p6191_p3 }
  0xa1   :  { %6201 = shalt.err (!%p6198_p7)
}
  0xa2   :  { %91 = dma.hbm_to_vmem [thread:$0]  %s6493_s5, 1024, %s86_s26, [#allocation3], %s6457_s0, %s6457_s0, %s6458_s2  }
  0xa3   :  { %s6469_s13 = smov [#allocation7]   ;;  %s6470_s24 = smov [#allocation10]  }
  0xa4   :  { %s113_s1 = sshll.u32 %s6469_s13, 4  ;;  %s139_s7 = sshll.u32 %s6470_s24, 4  ;;  %s114_s1 = int_to_ptr.vmem [resolvable:$true] %s113_s1  ;;  %s140_s7 = int_to_ptr.vmem [resolvable:$true] %s139_s7 }
  0xa5   :  { %s6210_s6 = scalar_lea.vmem %s114_s1, 1024  ;;  %p6215_p9 = scmp.lt.s32.totalorder %s114_s1, %s114_s1 }
  0xa6   :  { %p6211_p8 = scmp.ne.s32.totalorder %s114_s1, %s6210_s6  ;;  %p6216_p10 = scmp.lt.s32.totalorder %s6210_s6, %s6210_s6 }
  0xa8   :  { %p6217_p11 = por %p6216_p10, %p6215_p9 }
  0xaa   :  { %p6218_p12 = pnand %p6217_p11, %p6211_p8 }
  0xac   :  { %6221 = shalt.err (!%p6218_p12)
}
  0xad   :  { %119 = dma.hbm_to_vmem [thread:$0]  %s6513_s21, 1024, %s114_s1, [#allocation6], %s6457_s0, %s6457_s0, %s6458_s2  }
  0xae   :  { %s6230_s9 = scalar_lea.vmem %s140_s7, 1024  ;;  %p6235_p0 = scmp.lt.s32.totalorder %s140_s7, %s140_s7 }
  0xaf   :  { %p6231_p13 = scmp.ne.s32.totalorder %s140_s7, %s6230_s9  ;;  %p6236_p1 = scmp.lt.s32.totalorder %s6230_s9, %s6230_s9 }
  0xb1   :  { %p6237_p2 = por %p6236_p1, %p6235_p0 }
  0xb3   :  { %p6238_p3 = pnand %p6237_p2, %p6231_p13 }
  0xb5   :  { %6241 = shalt.err (!%p6238_p3)
}
  0xb6   :  { %145 = dma.hbm_to_vmem [thread:$0]  %s6533_s8, 1024, %s140_s7, [#allocation9], %s6457_s0, %s6457_s0, %s6458_s2  }
  0xb7   :  { %s6471_s5 = smov [#allocation13]   ;;  %s6472_s11 = smov [#allocation16]  }
  0xb8   :  { %s168_s10 = sshll.u32 %s6471_s5, 4  ;;  %s189_s15 = sshll.u32 %s6472_s11, 4  ;;  %s169_s10 = int_to_ptr.vmem [resolvable:$true] %s168_s10  ;;  %s190_s15 = int_to_ptr.vmem [resolvable:$true] %s189_s15 }
  0xb9   :  { %s6250_s16 = scalar_lea.vmem %s169_s10, 16  ;;  %s6254_s21 = scalar_lea.vmem %s169_s10, 32 }
  0xba   :  { %p6251_p4 = scmp.ne.s32.totalorder %s169_s10, %s6250_s16  ;;  %p6255_p5 = scmp.lt.s32.totalorder %s169_s10, %s169_s10 }
  0xbb   :  { %p6256_p6 = scmp.lt.s32.totalorder %s6254_s21, %s6250_s16 }
  0xbd   :  { %p6257_p7 = por %p6256_p6, %p6255_p5 }
  0xbf   :  { %p6258_p8 = pnand %p6257_p7, %p6251_p4 }
  0xc1   :  { %6261 = shalt.err (!%p6258_p8)
}
  0xc2   :  { %171 = dma.hbm_to_vmem [thread:$0]  %s6553_s30, 16, %s169_s10, [#allocation12]  }
  0xc3   :  { %s6270_s18 = scalar_lea.vmem %s190_s15, 256  ;;  %p6275_p10 = scmp.lt.s32.totalorder %s190_s15, %s190_s15 }
  0xc4   :  { %p6271_p9 = scmp.ne.s32.totalorder %s190_s15, %s6270_s18  ;;  %p6276_p11 = scmp.lt.s32.totalorder %s6270_s18, %s6270_s18 }
  0xc6   :  { %p6277_p12 = por %p6276_p11, %p6275_p10 }
  0xc8   :  { %p6278_p13 = pnand %p6277_p12, %p6271_p9 }
  0xca   :  { %6281 = shalt.err (!%p6278_p13)
}
  0xcb   :  { %195 = dma.hbm_to_vmem [thread:$0]  %s6563_s12, 256, %s190_s15, [#allocation15], %s6457_s0, %s6457_s0, %s6458_s2  }
  0xcc   :  { %s6473_s8 = smov [#allocation19]  }
  0xcd   :  { %s217_s22 = sshll.u32 %s6473_s8, 4  ;;  %s218_s22 = int_to_ptr.vmem [resolvable:$true] %s217_s22 }
  0xce   :  { %s6290_s4 = scalar_lea.vmem %s218_s22, 128  ;;  %p6295_p1 = scmp.lt.s32.totalorder %s218_s22, %s218_s22 }
  0xcf   :  { %p6291_p0 = scmp.ne.s32.totalorder %s218_s22, %s6290_s4  ;;  %p6296_p2 = scmp.lt.s32.totalorder %s6290_s4, %s6290_s4 }
  0xd1   :  { %p6297_p3 = por %p6296_p2, %p6295_p1 }
  0xd3   :  { %p6298_p4 = pnand %p6297_p3, %p6291_p0 }
  0xd5   :  { %6301 = shalt.err (!%p6298_p4)
}
  0xd6   :  { %s6474_s30 = smov 64   ;;  %s7320_s17 = sld [smem:[#allocation53_spill]] }
  0xd7   :  { %s6475_s14 = smov 4   ;;  %s6476_s3 = smov [#allocation22]  }
  0xd8   :  { %s243_s23 = sshll.u32 %s6476_s3, 4  ;;  %s244_s23 = int_to_ptr.vmem [resolvable:$true] %s243_s23 }
  0xd9   :  { %s6310_s26 = scalar_lea.vmem %s244_s23, 512  ;;  %p6315_p6 = scmp.lt.s32.totalorder %s244_s23, %s244_s23 }
  0xda   :  { %p6311_p5 = scmp.ne.s32.totalorder %s244_s23, %s6310_s26  ;;  %p6316_p7 = scmp.lt.s32.totalorder %s6310_s26, %s6310_s26 }
  0xdc   :  { %223 = dma.hbm_to_vmem [thread:$0]  %s7320_s17, 128, %s218_s22, [#allocation18], %s6474_s30, %s6474_s30, %s6475_s14  }
  0xdd   :  { %p6317_p8 = por %p6316_p7, %p6315_p6 }
  0xdf   :  { %p6318_p9 = pnand %p6317_p8, %p6311_p5 }
  0xe1   :  { %6321 = shalt.err (!%p6318_p9)
}
  0xe2   :  { %s6477_s12 = smov 256   ;;  %s7321_s28 = sld [smem:[#allocation55_spill]] }
  0xe3   :  { %s6478_s29 = smov 16   ;;  %s6479_s13 = smov [#allocation25]  }
  0xe4   :  { %s265_s1 = sshll.u32 %s6479_s13, 4  ;;  %s6480_s24 = smov [#allocation28]   ;;  %s266_s1 = int_to_ptr.vmem [resolvable:$true] %s265_s1 }
  0xe5   :  { %s288_s7 = sshll.u32 %s6480_s24, 4  ;;  %s6330_s6 = scalar_lea.vmem %s266_s1, 256  ;;  %s289_s7 = int_to_ptr.vmem [resolvable:$true] %s288_s7 }
  0xe6   :  { %p6331_p10 = scmp.ne.s32.totalorder %s266_s1, %s6330_s6  ;;  %p6335_p11 = scmp.lt.s32.totalorder %s266_s1, %s266_s1 }
  0xe7   :  { %p6336_p12 = scmp.lt.s32.totalorder %s6330_s6, %s6330_s6 }
  0xe8   :  { %249 = dma.hbm_to_vmem [thread:$0]  %s7321_s28, 512, %s244_s23, [#allocation21], %s6477_s12, %s6477_s12, %s6478_s29  }
  0xe9   :  { %p6337_p13 = por %p6336_p12, %p6335_p11 }
  0xeb   :  { %p6338_p0 = pnand %p6337_p13, %p6331_p10 }
  0xed   :  { %6341 = shalt.err (!%p6338_p0)
}
  0xee   :  { %s7322_s9 = sld [smem:[#allocation56_spill]]  ;;  %s6350_s5 = scalar_lea.vmem %s289_s7, 16 }
  0xef   :  { %p6351_p1 = scmp.ne.s32.totalorder %s289_s7, %s6350_s5  ;;  %s6354_s10 = scalar_lea.vmem %s289_s7, 32 }
  0xf0   :  { %p6355_p2 = scmp.lt.s32.totalorder %s289_s7, %s289_s7  ;;  %p6356_p3 = scmp.lt.s32.totalorder %s6354_s10, %s6350_s5 }
  0xf2   :  { %p6357_p4 = por %p6356_p3, %p6355_p2 }
  0xf4   :  { %271 = dma.hbm_to_vmem [thread:$0]  %s7322_s9, 256, %s266_s1, [#allocation24], %s6457_s0, %s6457_s0, %s6458_s2  }
  0xf5   :  { %p6358_p5 = pnand %p6357_p4, %p6351_p1 }
  0xf7   :  { %6361 = shalt.err (!%p6358_p5)
}
  0xf8   :  { %s7323_s11 = sld [smem:[#allocation57_spill]]  ;;  %s6481_s15 = smov [#allocation31]  }
  0xf9   :  { %s312_s16 = sshll.u32 %s6481_s15, 4  ;;  %s313_s16 = int_to_ptr.vmem [resolvable:$true] %s312_s16 }
  0xfa   :  { %s6370_s21 = scalar_lea.vmem %s313_s16, 16  ;;  %s6374_s18 = scalar_lea.vmem %s313_s16, 32 }
  0xfb   :  { %p6371_p6 = scmp.ne.s32.totalorder %s313_s16, %s6370_s21  ;;  %p6375_p7 = scmp.lt.s32.totalorder %s313_s16, %s313_s16 }
  0xfc   :  { %p6376_p8 = scmp.lt.s32.totalorder %s6374_s18, %s6370_s21 }
  0xfe   :  { %291 = dma.hbm_to_vmem [thread:$0]  %s7323_s11, 16, %s289_s7, [#allocation27]  }
  0xff   :  { %p6377_p9 = por %p6376_p8, %p6375_p7 }
 0x101   :  { %p6378_p10 = pnand %p6377_p9, %p6371_p6 }
 0x103   :  { %6381 = shalt.err (!%p6378_p10)
}
 0x104   :  { %315 = dma.hbm_to_vmem [thread:$0]  %s6638_s19, 16, %s313_s16, [#allocation30]  }
 0x105   :  { %6402 = dma.done.wait [#allocation3], 1024  }
 0x106   :  { %6403 = vsyncadd [#allocation3], 4294966272 }
 0x107   :  { %6404 = dma.done.wait [#allocation6], 3072  }
 0x108   :  { %6405 = vsyncadd [#allocation6], 4294964224 }
 0x109   :  { %6406 = dma.done.wait [#allocation9], 1040  }
 0x10a   :  { %6407 = vsyncadd [#allocation9], 4294966256 }
 0x10b   :  { %6408 = dma.done.wait [#allocation12], 3088  }
 0x10c   :  { %6409 = vsyncadd [#allocation12], 4294964208 }
 0x10d   :  { %6410 = dma.done.wait [#allocation15], 768  }
 0x10e   :  { %6411 = vsyncadd [#allocation15], 4294966528 }
 0x10f   :  { %6412 = dma.done.wait [#allocation18], 144  }
 0x110   :  { %6413 = vsyncadd [#allocation18], 4294967152 }
 0x111   :  { %6414 = dma.done.wait [#allocation21], 576  }
 0x112   :  { %6415 = vsyncadd [#allocation21], 4294966720 }
 0x113   :  { %6416 = dma.done.wait [#allocation24], 288  }
 0x114   :  { %6417 = vsyncadd [#allocation24], 4294967008 }
 0x115   :  { %6418 = dma.done.wait [#allocation27], 32  }
 0x116   :  { %6419 = vsyncadd [#allocation27], 4294967264 }
 0x117   :  { %6420 = dma.done.wait [#allocation30], 1040  }
 0x118   :  { %6421 = vsyncadd [#allocation30], 4294966256  ;;  %v6696_v0 = vld [vmem:[#allocation2 + $0x38] sm:$0xff]  ;;  %v6698_v1 = vld [vmem:[#allocation2 + $0x30] sm:$0xff]  ;;  %s7324_s19 = sld [smem:[#allocation44_spill]]  ;;  %vm389_vm0 = vcmask 523264  }
 0x119   :  { %5391 = vmatprep.subr.mxu0 %v6696_v0  ;;  %5419 = vmatprep.subr.mxu1 %v6696_v0  ;;  %v6704_v2 = vld [vmem:[#allocation2 + $0x28] sm:$0xff]  ;;  %v6710_v3 = vld [vmem:[#allocation2 + $0x20] sm:$0xff]  ;;  %v6716_v4 = vld [vmem:[#allocation2 + $0x18] sm:$0xff]  ;;  %v7304_v38 = vmov 0.0   ;;  %vm674_vm1 = vcmask 261120   ;;  %s7325_s0 = sld [smem:[#allocation46_spill]] }
 0x11a   :  { %5392 = vmatpush3.msra.mxu0 %v6696_v0  ;;  %5420 = vmatpush3.msra.mxu1 %v6696_v0  ;;  %v6722_v5 = vld [vmem:[#allocation2 + $0x10] sm:$0xff]  ;;  %v6728_v6 = vld [vmem:[#allocation2 + $0x8] sm:$0xff]  ;;  %v6734_v7 = vld [vmem:[#allocation2] sm:$0xff]  ;;  %s7326_s2 = sld [smem:[#allocation45_spill]]  ;;  %vm2498_vm2 = vcmask 130048   ;;  %vm6483_vm3 = vmmov 0  }
 0x11b   :  { %5393 = vmatprep.subr.mxu0 %v6698_v1  ;;  %5421 = vmatprep.subr.mxu1 %v6698_v1  ;;  %v381_v8 = vld [vmem:[#allocation5] sm:$0xff]  ;;  %v382_v10 = vld [vmem:[#allocation5 + $0x8] sm:$0xff]  ;;  %v383_v12 = vld [vmem:[#allocation5 + $0x10] sm:$0xff]  ;;  %s7328_s8 = sld [smem:[#allocation47_spill]]  ;;  %vm3258_vm4 = vcmask 64512   ;;  %vm3954_vm5 = vcmask 1043456  }
 0x11c   :  { %5394 = vmatpush3.msra.mxu0 %v6698_v1  ;;  %5422 = vmatpush3.msra.mxu1 %v6698_v1  ;;  %v520_v9 = vld [vmem:[#allocation5 + $0x40] sm:$0xff]  ;;  %v521_v11 = vld [vmem:[#allocation5 + $0x48] sm:$0xff]  ;;  %v522_v13 = vld [vmem:[#allocation5 + $0x50] sm:$0xff]  ;;  %s7329_s22 = sld [smem:[#allocation48_spill]]  ;;  %vm3950_vm6 = vcmask 31744   ;;  %s6484_s3 = smov [#allocation32]  }
 0x11d   :  { %5395 = vmatprep.subr.mxu0 %v6704_v2  ;;  %5423 = vmatprep.subr.mxu1 %v6704_v2  ;;  %v384_v18 = vld [vmem:[#allocation5 + $0x18] sm:$0xff]  ;;  %v385_v20 = vld [vmem:[#allocation5 + $0x20] sm:$0xff]  ;;  %v386_v26 = vld [vmem:[#allocation5 + $0x28] sm:$0xff]  ;;  %s7330_s4 = sld [smem:[#allocation49_spill]]  ;;  %s4728_s23 = sshll.u32 %s6484_s3, 4  ;;  %vm4718_vm7 = vcmask 25600   ;;  %s4729_s23 = int_to_ptr.vmem [resolvable:$true] %s4728_s23 }
 0x11e   :  { %5396 = vmatpush3.msra.mxu0 %v6704_v2  ;;  %5424 = vmatpush3.msra.mxu1 %v6704_v2  ;;  %v4802_v14 = vld [vmem:[%s7324_s19 + $0x78] sm:$0xff]  ;;  %v4801_v16 = vld [vmem:[%s7324_s19 + $0x70] sm:$0xff]  ;;  %v524_v21 = vld [vmem:[#allocation5 + $0x60] sm:$0xff]  ;;  %s7332_s30 = sld [smem:[#allocation51_spill]]  ;;  %p6387_p12 = scmp.lt.s32.totalorder %s4729_s23, %s4729_s23 }
 0x11f   :  { %5397 = vmatprep.subr.mxu0 %v6710_v3  ;;  %5425 = vmatprep.subr.mxu1 %v6710_v3  ;;  %v664_v15 = vld [vmem:[%s7324_s19 + $0x38] sm:$0xff]  ;;  %v663_v17 = vld [vmem:[%s7324_s19 + $0x30] sm:$0xff]  ;;  %v4800_v22 = vld [vmem:[%s7324_s19 + $0x68] sm:$0xff]  ;;  %s7333_s17 = sld [smem:[#allocation52_spill]] }
 0x120   :  { %5398 = vmatpush3.msra.mxu0 %v6710_v3  ;;  %5426 = vmatpush3.msra.mxu1 %v6710_v3  ;;  %v523_v19 = vld [vmem:[#allocation5 + $0x58] sm:$0xff]  ;;  %v662_v23 = vld [vmem:[%s7324_s19 + $0x28] sm:$0xff]  ;;  %v4799_v24 = vld [vmem:[%s7324_s19 + $0x60] sm:$0xff]  ;;  %s7334_s14 = sld [smem:[#allocation54_spill]] }
 0x121   :  { %5399 = vmatprep.subr.mxu0 %v6716_v4  ;;  %5427 = vmatprep.subr.mxu1 %v6716_v4  ;;  %v661_v25 = vld [vmem:[%s7324_s19 + $0x20] sm:$0xff]  ;;  %v525_v27 = vld [vmem:[#allocation5 + $0x68] sm:$0xff]  ;;  %v387_v28 = vld [vmem:[#allocation5 + $0x30] sm:$0xff] }
 0x122   :  { %5400 = vmatpush3.msra.mxu0 %v6716_v4  ;;  %5428 = vmatpush3.msra.mxu1 %v6716_v4  ;;  %v526_v29 = vld [vmem:[#allocation5 + $0x70] sm:$0xff]  ;;  %v4798_v30 = vld [vmem:[%s7324_s19 + $0x58] sm:$0xff]  ;;  %v4796_v35 = vld [vmem:[%s7324_s19 + $0x48] sm:$0xff] }
 0x123   :  { %5401 = vmatprep.subr.mxu0 %v6722_v5  ;;  %5429 = vmatprep.subr.mxu1 %v6722_v5  ;;  %v660_v31 = vld [vmem:[%s7324_s19 + $0x18] sm:$0xff]  ;;  %v4797_v32 = vld [vmem:[%s7324_s19 + $0x50] sm:$0xff]  ;;  %v4795_v36 = vld [vmem:[%s7324_s19 + $0x40] sm:$0xff] }
 0x124   :  { %5402 = vmatpush3.msra.mxu0 %v6722_v5  ;;  %5430 = vmatpush3.msra.mxu1 %v6722_v5  ;;  %v388_v33 = vld [vmem:[#allocation5 + $0x38] sm:$0xff]  ;;  %v4825_v39 = vld [vmem:[%s7324_s19 + $0xb0] sm:$0xff]  ;;  %v4824_v40 = vld [vmem:[%s7324_s19 + $0xa8] sm:$0xff] }
 0x125   :  { %5403 = vmatprep.subr.mxu0 %v6728_v6  ;;  %5431 = vmatprep.subr.mxu1 %v6728_v6  ;;  %v527_v34 = vld [vmem:[#allocation5 + $0x78] sm:$0xff]  ;;  %v4823_v41 = vld [vmem:[%s7324_s19 + $0xa0] sm:$0xff]  ;;  %v659_v43 = vld [vmem:[%s7324_s19 + $0x10] sm:$0xff] }
 0x126   :  { %5404 = vmatpush3.msra.mxu0 %v6728_v6  ;;  %5432 = vmatpush3.msra.mxu1 %v6728_v6  ;;  %v4826_v37 = vld [vmem:[%s7324_s19 + $0xb8] sm:$0xff]  ;;  %v4821_v44 = vld [vmem:[%s7324_s19 + $0x90] sm:$0xff]  ;;  %v658_v45 = vld [vmem:[%s7324_s19 + $0x8] sm:$0xff] }
 0x127   :  { %5405 = vmatprep.subr.mxu0 %v6734_v7  ;;  %5433 = vmatprep.subr.mxu1 %v6734_v7  ;;  %v4822_v42 = vld [vmem:[%s7324_s19 + $0x98] sm:$0xff]  ;;  %v4820_v46 = vld [vmem:[%s7324_s19 + $0x88] sm:$0xff]  ;;  %v657_v47 = vld [vmem:[%s7324_s19] sm:$0xff] }
 0x128   :  { %5406 = vmatpush3.msra.mxu0 %v6734_v7  ;;  %5407 = vmatprep.mubr.msk.f32.mxu0 %vm389_vm0, %v381_v8  ;;  %v4819_v48 = vld [vmem:[%s7324_s19 + $0x80] sm:$0xff] }
 0x129   :  { %5434 = vmatpush3.msra.mxu1 %v6734_v7  ;;  %5435 = vmatprep.mubr.msk.f32.mxu1 %vm389_vm0, %v520_v9  ;;  %v1404_v9 = vld [vmem:[%s7325_s0 + $0xf0] sm:$0xff] }
 0x12a   :  { %5408 = vmatmul.mubr.msk.f32.vlgmr.msra.gmra.mxu0 %vm389_vm0, %v382_v10  ;;  %5436 = vmatmul.mubr.msk.f32.vlgmr.msra.gmra.mxu1 %vm389_vm0, %v521_v11  ;;  %v1388_v10 = vld [vmem:[%s7325_s0 + $0x70] sm:$0xff]  ;;  %v1403_v11 = vld [vmem:[%s7325_s0 + $0xe8] sm:$0xff] }
 0x12b   :  { %5410 = vmatprep.mubr.msk.f32.mxu0 %vm389_vm0, %v383_v12  ;;  %5438 = vmatprep.mubr.msk.f32.mxu1 %vm389_vm0, %v522_v13  ;;  %v1387_v12 = vld [vmem:[%s7325_s0 + $0x68] sm:$0xff]  ;;  %v1402_v13 = vld [vmem:[%s7325_s0 + $0xe0] sm:$0xff] }
 0x12c   :  { %723 = vmatprep.subr.mxu0 %v4802_v14  ;;  %860 = vmatprep.subr.mxu1 %v664_v15  ;;  %v1386_v15 = vld [vmem:[%s7325_s0 + $0x60] sm:$0xff] }
 0x12d   :  { %724 = vmatpush1.msra.mxu0 %v4801_v16  ;;  %861 = vmatpush1.msra.mxu1 %v663_v17  ;;  %v1401_v16 = vld [vmem:[%s7325_s0 + $0xd8] sm:$0xff] }
 0x12e   :  { %5411 = vmatmul.mubr.msk.f32.gmra.mxu0 %vm389_vm0, %v384_v18  ;;  %5439 = vmatmul.mubr.msk.f32.gmra.mxu1 %vm389_vm0, %v523_v19  ;;  %v1385_v17 = vld [vmem:[%s7325_s0 + $0x58] sm:$0xff] }
 0x12f   :  { %5413 = vmatprep.mubr.msk.f32.mxu0 %vm389_vm0, %v385_v20  ;;  %5441 = vmatprep.mubr.msk.f32.mxu1 %vm389_vm0, %v524_v21 }
 0x130   :  { %725 = vmatprep.subr.mxu0 %v4800_v22  ;;  %862 = vmatprep.subr.mxu1 %v662_v23 }
 0x131   :  { %726 = vmatpush1.msra.mxu0 %v4799_v24  ;;  %863 = vmatpush1.msra.mxu1 %v661_v25 }
 0x132   :  { %5414 = vmatmul.mubr.msk.f32.gmra.mxu0 %vm389_vm0, %v386_v26  ;;  %5442 = vmatmul.mubr.msk.f32.gmra.mxu1 %vm389_vm0, %v525_v27 }
 0x133   :  { %5416 = vmatprep.mubr.msk.f32.mxu0 %vm389_vm0, %v387_v28  ;;  %5444 = vmatprep.mubr.msk.f32.mxu1 %vm389_vm0, %v526_v29 }
 0x134   :  { %727 = vmatprep.subr.mxu0 %v4798_v30  ;;  %864 = vmatprep.subr.mxu1 %v660_v31 }
 0x135   :  { %728 = vmatpush1.msra.mxu0 %v4797_v32  ;;  %865 = vmatpush1.msra.mxu1 %v659_v43 }
 0x136   :  { %5417 = vmatmul.mubr.msk.f32.gmra.mxu0 %vm389_vm0, %v388_v33  ;;  %5445 = vmatmul.mubr.msk.f32.gmra.mxu1 %vm389_vm0, %v527_v34 }
 0x137   :  { %729 = vmatprep.subr.mxu0 %v4796_v35  ;;  %763 = vmatprep.mubr.f32.mxu0 %v7304_v38 }
 0x138   :  { %730 = vmatpush1.msra.mxu0 %v4795_v36  ;;  %900 = vmatprep.mubr.f32.mxu1 %v7304_v38 }
 0x139   :  { %1006 = vmatprep.subr.mxu0 %v4826_v37  ;;  %866 = vmatprep.subr.mxu1 %v658_v45 }
 0x13a   :  { %4803 = vmatmul.mubr.msk.f32.vlgmr.msra.gmra.mxu0 %vm674_vm1, %v6734_v7  ;;  %867 = vmatpush1.msra.mxu1 %v657_v47  ;;  %v1389_v7 = vld [vmem:[%s7325_s0 + $0x78] sm:$0xff] }
 0x13b   :  { %769 = vmatprep.mubr.f32.mxu0 %v7304_v38  ;;  %1007 = vmatpush1.msra.mxu0 %v4825_v39 }
 0x13c   :  { %1008 = vmatprep.subr.mxu0 %v4824_v40 }
 0x13d   :  { %1009 = vmatpush1.msra.mxu0 %v4823_v41 }
 0x13e   :  { %4804 = vmatmul.mubr.msk.f32.gmra.mxu0 %vm674_vm1, %v6728_v6  ;;  %1010 = vmatprep.subr.mxu0 %v4822_v42  ;;  %v1405_v6 = vld [vmem:[%s7325_s0 + $0xf8] sm:$0xff] }
 0x13f   :  { %775 = vmatprep.mubr.f32.mxu0 %v7304_v38  ;;  %1011 = vmatpush1.msra.mxu0 %v4821_v44 }
 0x140   :  { %1012 = vmatprep.subr.mxu0 %v4820_v46 }
 0x141   :  { %1013 = vmatpush1.msra.mxu0 %v4819_v48  ;;  %v1113_v48 = vlaneseq }
 0x142   :  { %4805 = vmatmul.mubr.msk.f32.gmra.mxu0 %vm674_vm1, %v6722_v5  ;;  %5027 = vmatprep.subr.mxu0 %v1405_v6 }
 0x143   :  { %781 = vmatprep.mubr.f32.mxu0 %v7304_v38 }
 0x146   :  { %4806 = vmatmul.mubr.msk.f32.gmra.mxu0 %vm674_vm1, %v6716_v4 }
 0x147   :  { %787 = vmatprep.mubr.f32.mxu0 %v7304_v38 }
 0x14a   :  { %4807 = vmatmul.mubr.msk.f32.gmra.mxu0 %vm674_vm1, %v6710_v3 }
 0x14b   :  { %793 = vmatprep.mubr.f32.mxu0 %v7304_v38 }
 0x14e   :  { %4808 = vmatmul.mubr.msk.f32.gmra.mxu0 %vm674_vm1, %v6704_v2 }
 0x14f   :  { %799 = vmatprep.mubr.f32.mxu0 %v7304_v38 }
 0x152   :  { %4809 = vmatmul.mubr.msk.f32.gmra.mxu0 %vm674_vm1, %v6698_v1 }
 0x153   :  { %805 = vmatprep.mubr.f32.mxu0 %v7304_v38 }
 0x156   :  { %4810 = vmatmul.mubr.msk.f32.gmra.mxu0 %vm674_vm1, %v6696_v0 }
 0x157   :  { %1046 = vmatprep.mubr.f32.mxu0 %v7304_v38 }
 0x1ea   :  { %v5409_v49 = vpop.f32.mrf.mxu0  ;;  %v5437_v50 = vpop.f32.mrf.mxu1 }
 0x1ec   :  { %v480_v51 = vpop.f32.mrf.mxu0  ;;  %v618_v52 = vpop.f32.mrf.mxu1 }
 0x1ed   :  { %4811 = vmatmul.mubr.msk.f32.vlgmr.msra.gmra.mxu1 %vm674_vm1, %v480_v51  ;;  %4827 = vmatmul.mubr.msk.f32.vlgmr.msra.gmra.mxu0 %vm674_vm1, %v618_v52 }
 0x1ee   :  { %906 = vmatprep.mubr.f32.mxu1 %v7304_v38  ;;  %1052 = vmatprep.mubr.f32.mxu0 %v7304_v38  ;;  %v5440_v53 = vpop.f32.mrf.mxu1  ;;  %v5412_v54 = vpop.f32.mrf.mxu0 }
 0x1ef   :  { %5028 = vmatpush3.msra.mxu0 %v1389_v7 }
 0x1f0   :  { %v628_v55 = vpop.f32.mrf.mxu1  ;;  %v490_v56 = vpop.f32.mrf.mxu0  ;;  %5029 = vmatprep.subr.mxu0 %v1404_v9 }
 0x1f1   :  { %4812 = vmatmul.mubr.msk.f32.gmra.mxu1 %vm674_vm1, %v5409_v49  ;;  %4828 = vmatmul.mubr.msk.f32.gmra.mxu0 %vm674_vm1, %v5437_v50 }
 0x1f2   :  { %912 = vmatprep.mubr.f32.mxu1 %v7304_v38  ;;  %1058 = vmatprep.mubr.f32.mxu0 %v7304_v38  ;;  %v5443_v57 = vpop.f32.mrf.mxu1  ;;  %v5415_v58 = vpop.f32.mrf.mxu0 }
 0x1f3   :  { %5030 = vmatpush3.msra.mxu0 %v1388_v10 }
 0x1f4   :  { %v638_v59 = vpop.f32.mrf.mxu1  ;;  %v500_v60 = vpop.f32.mrf.mxu0  ;;  %5031 = vmatprep.subr.mxu0 %v1403_v11 }
 0x1f5   :  { %4813 = vmatmul.mubr.msk.f32.gmra.mxu1 %vm674_vm1, %v490_v56  ;;  %4829 = vmatmul.mubr.msk.f32.gmra.mxu0 %vm674_vm1, %v628_v55 }
 0x1f6   :  { %918 = vmatprep.mubr.f32.mxu1 %v7304_v38  ;;  %1064 = vmatprep.mubr.f32.mxu0 %v7304_v38  ;;  %v5446_v61 = vpop.f32.mrf.mxu1  ;;  %v5418_v62 = vpop.f32.mrf.mxu0 }
 0x1f7   :  { %5032 = vmatpush3.msra.mxu0 %v1387_v12 }
 0x1f8   :  { %v648_v63 = vpop.f32.mrf.mxu1  ;;  %v510_v0 = vpop.f32.mrf.mxu0  ;;  %5033 = vmatprep.subr.mxu0 %v1402_v13 }
 0x1f9   :  { %4814 = vmatmul.mubr.msk.f32.gmra.mxu1 %vm674_vm1, %v5412_v54  ;;  %4830 = vmatmul.mubr.msk.f32.gmra.mxu0 %vm674_vm1, %v5440_v53  ;;  %v6881_v53 = vshrl.u32 %v1113_v48, 7 }
 0x1fa   :  { %924 = vmatprep.mubr.f32.mxu1 %v7304_v38  ;;  %1070 = vmatprep.mubr.f32.mxu0 %v7304_v38  ;;  %v6841_v1 = vpop.f32.mrf.mxu0 }
 0x1fb   :  { %5034 = vmatpush3.msra.mxu0 %v1386_v15 }
 0x1fc   :  { %v6843_v2 = vpop.f32.mrf.mxu0  ;;  %5035 = vmatprep.subr.mxu0 %v1401_v16 }
 0x1fd   :  { %4815 = vmatmul.mubr.msk.f32.gmra.mxu1 %vm674_vm1, %v500_v60  ;;  %4831 = vmatmul.mubr.msk.f32.gmra.mxu0 %vm674_vm1, %v638_v59  ;;  %v1115_v59 = vsub.s32 0, %v6881_v53 }
 0x1fe   :  { %930 = vmatprep.mubr.f32.mxu1 %v7304_v38  ;;  %1076 = vmatprep.mubr.f32.mxu0 %v7304_v38  ;;  %v6845_v3 = vpop.f32.mrf.mxu0 }
 0x1ff   :  { %5036 = vmatpush3.msra.mxu0 %v1385_v17 }
 0x200   :  { %v6847_v4 = vpop.f32.mrf.mxu0 }
 0x201   :  { %4816 = vmatmul.mubr.msk.f32.gmra.mxu1 %vm674_vm1, %v5415_v58  ;;  %4832 = vmatmul.mubr.msk.f32.gmra.mxu0 %vm674_vm1, %v5443_v57 }
 0x202   :  { %936 = vmatprep.mubr.f32.mxu1 %v7304_v38  ;;  %1082 = vmatprep.mubr.f32.mxu0 %v7304_v38  ;;  %v6849_v5 = vpop.f32.mrf.mxu0 }
 0x204   :  { %v6853_v8 = vpop.f32.mrf.mxu0 }
 0x205   :  { %4817 = vmatmul.mubr.msk.f32.gmra.mxu1 %vm674_vm1, %v510_v0  ;;  %4833 = vmatmul.mubr.msk.f32.gmra.mxu0 %vm674_vm1, %v648_v63  ;;  %v1111_v63 = vld [vmem:[%s7326_s2] sm:$0x3]  ;;  %v1119_v0 = vsub.s32 1, %v6881_v53 }
 0x206   :  { %942 = vmatprep.mubr.f32.mxu1 %v7304_v38  ;;  %1088 = vmatprep.mubr.f32.mxu0 %v7304_v38  ;;  %v6860_v14 = vpop.f32.mrf.mxu0  ;;  %v1116_v16 = vrot.slane %v1111_v63, %v1115_v59 }
 0x208   :  { %v785_v18 = vpop.f32.mrf.mxu0 }
 0x209   :  { %4818 = vmatmul.mubr.msk.f32.gmra.mxu1 %vm674_vm1, %v5418_v62  ;;  %4834 = vmatmul.mubr.msk.f32.gmra.mxu0 %vm674_vm1, %v5446_v61 }
 0x20a   :  { %1235 = vmatprep.mubr.f32.mxu1 %v7304_v38  ;;  %v789_v19 = vpop.f32.mrf.mxu0 }
 0x20c   :  { %v791_v20 = vpop.f32.mrf.mxu0 }
 0x20e   :  { %v795_v21 = vpop.f32.mrf.mxu0 }
 0x210   :  { %v797_v22 = vpop.f32.mrf.mxu0 }
 0x212   :  { %v801_v23 = vpop.f32.mrf.mxu0 }
 0x214   :  { %v803_v24 = vpop.f32.mrf.mxu0 }
 0x216   :  { %v807_v25 = vpop.f32.mrf.mxu0 }
 0x218   :  { %v809_v26 = vpop.f32.mrf.mxu0 }
 0x2ad   :  { %v6865_v27 = vpop.f32.mrf.mxu1  ;;  %v6867_v28 = vpop.f32.mrf.mxu0 }
 0x2af   :  { %v6869_v29 = vpop.f32.mrf.mxu1  ;;  %v6871_v30 = vpop.f32.mrf.mxu0 }
 0x2b1   :  { %v6873_v31 = vpop.f32.mrf.mxu1  ;;  %v6875_v32 = vpop.f32.mrf.mxu0 }
 0x2b3   :  { %v910_v33 = vpop.f32.mrf.mxu1  ;;  %v6877_v34 = vpop.f32.mrf.mxu0 }
 0x2b5   :  { %v914_v35 = vpop.f32.mrf.mxu1  ;;  %v6879_v36 = vpop.f32.mrf.mxu0 }
 0x2b7   :  { %v916_v37 = vpop.f32.mrf.mxu1  ;;  %v1062_v39 = vpop.f32.mrf.mxu0 }
 0x2b9   :  { %v920_v40 = vpop.f32.mrf.mxu1  ;;  %v1066_v41 = vpop.f32.mrf.mxu0 }
 0x2bb   :  { %v922_v42 = vpop.f32.mrf.mxu1  ;;  %v1068_v43 = vpop.f32.mrf.mxu0 }
 0x2bd   :  { %v926_v44 = vpop.f32.mrf.mxu1  ;;  %v1072_v45 = vpop.f32.mrf.mxu0 }
 0x2be   :  { %v927_v17 = vadd.f32 %v926_v44, %v789_v19  ;;  %v915_v19 = vadd.f32 %v914_v35, %v6849_v5 }
 0x2bf   :  { %v928_v46 = vpop.f32.mrf.mxu1  ;;  %v1074_v47 = vpop.f32.mrf.mxu0 }
 0x2c0   :  { %v929_v11 = vadd.f32 %v928_v46, %v791_v20  ;;  %v917_v20 = vadd.f32 %v916_v37, %v6853_v8  ;;  %v1103_v44 = vadd.f32 %v1072_v45, %v927_v17  ;;  %v1261_v17 = vld [vmem:[#allocation7 + $0x20] sm:$0xff] }
 0x2c1   :  { %v932_v49 = vpop.f32.mrf.mxu1  ;;  %v1078_v50 = vpop.f32.mrf.mxu0 }
 0x2c2   :  { %v933_v9 = vadd.f32 %v932_v49, %v795_v21  ;;  %v1100_v5 = vadd.f32 %v1062_v39, %v917_v20  ;;  %v4855_v20 = vld [vmem:[%s7325_s0 + $0x160] sm:$0xff] }
 0x2c3   :  { %v934_v51 = vpop.f32.mrf.mxu1  ;;  %v1080_v52 = vpop.f32.mrf.mxu0 }
 0x2c4   :  { %v935_v6 = vadd.f32 %v934_v51, %v797_v22  ;;  %v921_v22 = vadd.f32 %v920_v40, %v6860_v14  ;;  %v1105_v21 = vadd.f32 %v1078_v50, %v933_v9  ;;  %v909_v40 = vadd.f32 %v6873_v31, %v6845_v3 }
 0x2c5   :  { %v938_v54 = vpop.f32.mrf.mxu1  ;;  %v1084_v55 = vpop.f32.mrf.mxu0 }
 0x2c6   :  { %v939_v60 = vadd.f32 %v938_v54, %v801_v23  ;;  %v1120_v23 = vrot.slane %v1111_v63, %v1119_v0  ;;  %v923_v54 = vadd.f32 %v922_v42, %v785_v18  ;;  %v911_v18 = vadd.f32 %v910_v33, %v6847_v4 }
 0x2c7   :  { %v940_v56 = vpop.f32.mrf.mxu1  ;;  %v1086_v57 = vpop.f32.mrf.mxu0  ;;  %v1101_v50 = vadd.f32 %v1066_v41, %v921_v22  ;;  %v1133_v8 = vadd.f32 %v1116_v16, %v1105_v21  ;;  %v903_v4 = vadd.f32 %v6865_v27, %v6841_v1  ;;  %v1099_v33 = vadd.f32 %v6879_v36, %v915_v19  ;;  %v4872_v22 = vld [vmem:[%s7325_s0 + $0x1e8] sm:$0xff]  ;;  %v1264_v19 = vld [vmem:[#allocation7 + $0x38] sm:$0xff] }
 0x2c8   :  { %v941_v58 = vadd.f32 %v940_v56, %v803_v24  ;;  %v1107_v24 = vadd.f32 %v1084_v55, %v939_v60  ;;  %v1106_v56 = vadd.f32 %v1080_v52, %v935_v6  ;;  %v1102_v42 = vadd.f32 %v1068_v43, %v923_v54  ;;  %v4857_v54 = vld [vmem:[%s7325_s0 + $0x170] sm:$0xff]  ;;  %v4856_v21 = vld [vmem:[%s7325_s0 + $0x168] sm:$0xff] }
 0x2c9   :  { %v944_v61 = vpop.f32.mrf.mxu1  ;;  %v1090_v62 = vpop.f32.mrf.mxu0  ;;  %v1131_v43 = vadd.f32 %v1116_v16, %v1103_v44  ;;  %v1098_v31 = vadd.f32 %v6877_v34, %v911_v18  ;;  %v1149_v39 = vmax.f32 %v1133_v8, 0.0  ;;  %v1128_v1 = vadd.f32 %v1120_v23, %v1100_v5  ;;  %v1400_v44 = vld [vmem:[%s7325_s0 + $0xd0] sm:$0xff]  ;;  %v1398_v8 = vld [vmem:[%s7325_s0 + $0xc0] sm:$0xff] }
 0x2ca   :  { %v945_v7 = vadd.f32 %v944_v61, %v807_v25  ;;  %v1108_v12 = vadd.f32 %v1086_v57, %v941_v58  ;;  %v6897_v51 = vadd.f32 %v1116_v16, %v1107_v24  ;;  %v6900_v52 = vadd.f32 %v1120_v23, %v1106_v56  ;;  %v4874_v24 = vld [vmem:[%s7325_s0 + $0x1f8] sm:$0xff]  ;;  %v1262_v56 = vld [vmem:[#allocation7 + $0x28] sm:$0xff]  ;;  %5037 = vmatprep.subr.mxu0 %v1400_v44  ;;  %v1384_v18 = vld [vmem:[%s7325_s0 + $0x50] sm:$0xff] }
 0x2cb   :  { %v946_v10 = vpop.f32.mrf.mxu1  ;;  %v1092_v48 = vpop.f32.mrf.mxu0  ;;  %v1130_v41 = vadd.f32 %v1120_v23, %v1102_v42  ;;  %v1095_v36 = vadd.f32 %v6867_v28, %v903_v4  ;;  %v1127_v57 = vadd.f32 %v1116_v16, %v1099_v33  ;;  %v1147_v58 = vmax.f32 %v1131_v43, 0.0  ;;  %v4853_v42 = vld [vmem:[%s7325_s0 + $0x150] sm:$0xff]  ;;  %5038 = vmatpush3.msra.mxu0 %v1384_v18  ;;  %v4851_v5 = vld [vmem:[%s7325_s0 + $0x140] sm:$0xff]  ;;  %v1381_v4 = vld [vmem:[%s7325_s0 + $0x38] sm:$0xff] }
 0x2cc   :  { %v1109_v13 = vadd.f32 %v1090_v62, %v945_v7  ;;  %v947_v15 = vadd.f32 %v946_v10, %v809_v26  ;;  %v1104_v26 = vadd.f32 %v1074_v47, %v929_v11  ;;  %v6894_v46 = vadd.f32 %v1120_v23, %v1108_v12  ;;  %v1155_v11 = vld [vmem:[#allocation7] sm:$0xff]  ;;  %v4850_v33 = vld [vmem:[%s7325_s0 + $0x138] sm:$0xff]  ;;  %v1396_v43 = vld [vmem:[%s7325_s0 + $0xb0] sm:$0xff] }
 0x2cd   :  { %v1151_v3 = vmax.f32 %v6897_v51, 0.0  ;;  %v1150_v47 = vmax.f32 %v6900_v52, 0.0  ;;  %v1126_v34 = vadd.f32 %v1120_v23, %v1098_v31  ;;  %v1146_v60 = vmax.f32 %v1130_v41, 0.0  ;;  %v4869_v51 = vld [vmem:[%s7325_s0 + $0x1d0] sm:$0xff]  ;;  %v1399_v52 = vld [vmem:[%s7325_s0 + $0xc8] sm:$0xff] }
 0x2ce   :  { %v1110_v38 = vadd.f32 %v1092_v48, %v947_v15  ;;  %v6891_v25 = vadd.f32 %v1116_v16, %v1109_v13  ;;  %v1132_v35 = vadd.f32 %v1120_v23, %v1104_v26  ;;  %v1152_v45 = vmax.f32 %v6894_v46, 0.0  ;;  %v1156_v13 = vld [vmem:[#allocation7 + $0x8] sm:$0xff]  ;;  %v1157_v15 = vld [vmem:[#allocation7 + $0x10] sm:$0xff]  ;;  %v4858_v48 = vld [vmem:[%s7325_s0 + $0x178] sm:$0xff]  ;;  %5039 = vmatprep.subr.mxu0 %v1399_v52 }
 0x2cf   :  { %v1144_v63 = vmax.f32 %v1128_v1, 0.0  ;;  %v1123_v6 = vadd.f32 %v1116_v16, %v1095_v36  ;;  %v1143_v7 = vmax.f32 %v1127_v57, 0.0  ;;  %v7327_v12 = vmov 0.0   ;;  %v1263_v26 = vld [vmem:[#allocation7 + $0x30] sm:$0xff]  ;;  %v4870_v46 = vld [vmem:[%s7325_s0 + $0x1d8] sm:$0xff]  ;;  %v4863_v1 = vld [vmem:[%s7325_s0 + $0x1a0] sm:$0xff] }
 0x2d0   :  { %v1138_v49 = vadd.f32 %v1120_v23, %v1110_v38  ;;  %v1153_v37 = vmax.f32 %v6891_v25, 0.0  ;;  %v905_v38 = vadd.f32 %v6869_v29, %v6843_v2  ;;  %v1097_v2 = vadd.f32 %v6875_v32, %v909_v40  ;;  %v4871_v25 = vld [vmem:[%s7325_s0 + $0x1e0] sm:$0xff]  ;;  %v1383_v40 = vld [vmem:[%s7325_s0 + $0x48] sm:$0xff]  ;;  %v1380_v31 = vld [vmem:[%s7325_s0 + $0x30] sm:$0xff] }
 0x2d1   :  { %v1129_v29 = vadd.f32 %v1116_v16, %v1101_v50  ;;  %v1148_v27 = vmax.f32 %v1132_v35, 0.0  ;;  %v1139_v10 = vmax.f32 %v1123_v6, 0.0  ;;  %v4852_v50 = vld [vmem:[%s7325_s0 + $0x148] sm:$0xff]  ;;  %5040 = vmatpush3.msra.mxu0 %v1383_v40  ;;  %v1397_v35 = vld [vmem:[%s7325_s0 + $0xb8] sm:$0xff]  ;;  %v4849_v41 = vld [vmem:[%s7325_s0 + $0x130] sm:$0xff] }
 0x2d2   :  { %v1154_v14 = vmax.f32 %v1138_v49, 0.0  ;;  %v1096_v55 = vadd.f32 %v6871_v30, %v905_v38  ;;  %v1125_v61 = vadd.f32 %v1116_v16, %v1097_v2  ;;  %v1142_v30 = vmax.f32 %v1126_v34, 0.0  ;;  %v1158_v16 = vld [vmem:[#allocation7 + $0x18] sm:$0xff]  ;;  %5041 = vmatprep.subr.mxu0 %v1398_v8  ;;  %v1382_v38 = vld [vmem:[%s7325_s0 + $0x40] sm:$0xff]  ;;  %v4864_v2 = vld [vmem:[%s7325_s0 + $0x1a8] sm:$0xff] }
 0x2d3   :  { %v1145_v62 = vmax.f32 %v1129_v29, 0.0  ;;  %v4854_v49 = vld [vmem:[%s7325_s0 + $0x158] sm:$0xff]  ;;  %5042 = vmatpush3.msra.mxu0 %v1382_v38  ;;  %v1379_v29 = vld [vmem:[%s7325_s0 + $0x28] sm:$0xff]  ;;  %v4847_v36 = vld [vmem:[%s7325_s0 + $0x120] sm:$0xff] }
 0x2d4   :  { %1187 = vmatprep.subr.mxu1 %v1154_v14  ;;  %v1124_v32 = vadd.f32 %v1120_v23, %v1096_v55  ;;  %v1141_v9 = vmax.f32 %v1125_v61, 0.0  ;;  %v4873_v23 = vld [vmem:[%s7325_s0 + $0x1f0] sm:$0xff]  ;;  %5043 = vmatprep.subr.mxu0 %v1397_v35  ;;  %v1394_v55 = vld [vmem:[%s7325_s0 + $0xa0] sm:$0xff]  ;;  %v1393_v57 = vld [vmem:[%s7325_s0 + $0x98] sm:$0xff] }
 0x2d5   :  { %1188 = vmatpush1.msra.mxu1 %v1153_v37  ;;  %5044 = vmatpush3.msra.mxu0 %v1381_v4  ;;  %v1377_v34 = vld [vmem:[%s7325_s0 + $0x18] sm:$0xff]  ;;  %v1392_v61 = vld [vmem:[%s7325_s0 + $0x90] sm:$0xff]  ;;  %v1391_v6 = vld [vmem:[%s7325_s0 + $0x88] sm:$0xff] }
 0x2d6   :  { %1189 = vmatprep.subr.mxu1 %v1152_v45  ;;  %v1140_v28 = vmax.f32 %v1124_v32, 0.0  ;;  %5045 = vmatprep.subr.mxu0 %v1396_v43  ;;  %v1376_v32 = vld [vmem:[%s7325_s0 + $0x10] sm:$0xff]  ;;  %v4895_v8 = vld [vmem:[%s7328_s8 + $0xe0] sm:$0xff]  ;;  %v4894_v35 = vld [vmem:[%s7328_s8 + $0xd8] sm:$0xff] }
 0x2d7   :  { %1190 = vmatpush1.msra.mxu1 %v1151_v3  ;;  %5046 = vmatpush3.msra.mxu0 %v1380_v31  ;;  %v4892_v4 = vld [vmem:[%s7328_s8 + $0xc8] sm:$0xff]  ;;  %v4890_v43 = vld [vmem:[%s7328_s8 + $0xb8] sm:$0xff] }
 0x2d8   :  { %1191 = vmatprep.subr.mxu1 %v1150_v47  ;;  %v4888_v31 = vld [vmem:[%s7328_s8 + $0xa8] sm:$0xff] }
 0x2d9   :  { %1192 = vmatpush1.msra.mxu1 %v1149_v39 }
 0x2da   :  { %1193 = vmatprep.subr.mxu1 %v1148_v27 }
 0x2db   :  { %1194 = vmatpush1.msra.mxu1 %v1147_v58 }
 0x2dc   :  { %1195 = vmatprep.subr.mxu1 %v1146_v60 }
 0x2dd   :  { %1196 = vmatpush1.msra.mxu1 %v1145_v62 }
 0x2de   :  { %1197 = vmatprep.subr.mxu1 %v1144_v63 }
 0x2df   :  { %1198 = vmatpush1.msra.mxu1 %v1143_v7 }
 0x2e0   :  { %1199 = vmatprep.subr.mxu1 %v1142_v30 }
 0x2e1   :  { %1200 = vmatpush1.msra.mxu1 %v1141_v9 }
 0x2e2   :  { %1201 = vmatprep.subr.mxu1 %v1140_v28 }
 0x2e3   :  { %1202 = vmatpush1.msra.mxu1 %v1139_v10 }
 0x2e4   :  { %4835 = vmatmul.mubr.msk.f32.vlgmr.msra.gmra.mxu1 %vm389_vm0, %v1155_v11  ;;  %1293 = vmatprep.subr.mxu1 %v1154_v14  ;;  %v4868_v14 = vld [vmem:[%s7325_s0 + $0x1c8] sm:$0xff]  ;;  %v1374_v11 = vld [vmem:[%s7325_s0] sm:$0xff] }
 0x2e5   :  { %1294 = vmatpush1.msra.mxu1 %v1153_v37  ;;  %1241 = vmatprep.mubr.f32.mxu1 %v7327_v12  ;;  %v4867_v37 = vld [vmem:[%s7325_s0 + $0x1c0] sm:$0xff] }
 0x2e6   :  { %1295 = vmatprep.subr.mxu1 %v1152_v45  ;;  %v4866_v45 = vld [vmem:[%s7325_s0 + $0x1b8] sm:$0xff] }
 0x2e7   :  { %1296 = vmatpush1.msra.mxu1 %v1151_v3  ;;  %v4865_v3 = vld [vmem:[%s7325_s0 + $0x1b0] sm:$0xff] }
 0x2e8   :  { %4836 = vmatmul.mubr.msk.f32.gmra.mxu1 %vm389_vm0, %v1156_v13  ;;  %1297 = vmatprep.subr.mxu1 %v1150_v47  ;;  %v1395_v47 = vld [vmem:[%s7325_s0 + $0xa8] sm:$0xff]  ;;  %v4843_v13 = vld [vmem:[%s7325_s0 + $0x100] sm:$0xff] }
 0x2e9   :  { %1298 = vmatpush1.msra.mxu1 %v1149_v39  ;;  %1247 = vmatprep.mubr.f32.mxu1 %v7327_v12  ;;  %v4848_v39 = vld [vmem:[%s7325_s0 + $0x128] sm:$0xff] }
 0x2ea   :  { %1299 = vmatprep.subr.mxu1 %v1148_v27  ;;  %5047 = vmatprep.subr.mxu0 %v1395_v47  ;;  %v1378_v27 = vld [vmem:[%s7325_s0 + $0x20] sm:$0xff]  ;;  %v4886_v47 = vld [vmem:[%s7328_s8 + $0x98] sm:$0xff] }
 0x2eb   :  { %1300 = vmatpush1.msra.mxu1 %v1147_v58  ;;  %5048 = vmatpush3.msra.mxu0 %v1379_v29  ;;  %v4862_v58 = vld [vmem:[%s7325_s0 + $0x198] sm:$0xff]  ;;  %v4884_v29 = vld [vmem:[%s7328_s8 + $0x88] sm:$0xff] }
 0x2ec   :  { %4837 = vmatmul.mubr.msk.f32.gmra.mxu1 %vm389_vm0, %v1157_v15  ;;  %1301 = vmatprep.subr.mxu1 %v1146_v60  ;;  %v4846_v60 = vld [vmem:[%s7325_s0 + $0x118] sm:$0xff] }
 0x2ed   :  { %1302 = vmatpush1.msra.mxu1 %v1145_v62  ;;  %1253 = vmatprep.mubr.f32.mxu1 %v7327_v12  ;;  %v4861_v62 = vld [vmem:[%s7325_s0 + $0x190] sm:$0xff]  ;;  %v4898_v15 = vld [vmem:[%s7328_s8 + $0xf8] sm:$0xff] }
 0x2ee   :  { %1303 = vmatprep.subr.mxu1 %v1144_v63  ;;  %5049 = vmatprep.subr.mxu0 %v1394_v55  ;;  %v4845_v63 = vld [vmem:[%s7325_s0 + $0x110] sm:$0xff]  ;;  %v1613_v55 = vld [vmem:[#allocation10] sm:$0xff] }
 0x2ef   :  { %1304 = vmatpush1.msra.mxu1 %v1143_v7  ;;  %5050 = vmatpush3.msra.mxu0 %v1378_v27  ;;  %v4860_v7 = vld [vmem:[%s7325_s0 + $0x188] sm:$0xff] }
 0x2f0   :  { %4838 = vmatmul.mubr.msk.f32.gmra.mxu1 %vm389_vm0, %v1158_v16  ;;  %1305 = vmatprep.subr.mxu1 %v1142_v30  ;;  %v1375_v30 = vld [vmem:[%s7325_s0 + $0x8] sm:$0xff] }
 0x2f1   :  { %1306 = vmatpush1.msra.mxu1 %v1141_v9  ;;  %1341 = vmatprep.mubr.f32.mxu1 %v7327_v12  ;;  %v4844_v9 = vld [vmem:[%s7325_s0 + $0x108] sm:$0xff] }
 0x2f2   :  { %1307 = vmatprep.subr.mxu1 %v1140_v28  ;;  %5051 = vmatprep.subr.mxu0 %v1393_v57  ;;  %v1390_v28 = vld [vmem:[%s7325_s0 + $0x80] sm:$0xff] }
 0x2f3   :  { %1308 = vmatpush1.msra.mxu1 %v1139_v10  ;;  %5052 = vmatpush3.msra.mxu0 %v1377_v34  ;;  %v4859_v10 = vld [vmem:[%s7325_s0 + $0x180] sm:$0xff] }
 0x2f4   :  { %4839 = vmatmul.mubr.msk.f32.vlgmr.msra.gmra.mxu1 %vm389_vm0, %v1261_v17  ;;  %5071 = vmatprep.subr.mxu1 %v4874_v24 }
 0x2f5   :  { %1347 = vmatprep.mubr.f32.mxu1 %v7327_v12  ;;  %5072 = vmatpush3.msra.mxu1 %v4858_v48 }
 0x2f6   :  { %5073 = vmatprep.subr.mxu1 %v4873_v23  ;;  %5053 = vmatprep.subr.mxu0 %v1392_v61 }
 0x2f7   :  { %5074 = vmatpush3.msra.mxu1 %v4857_v54  ;;  %5054 = vmatpush3.msra.mxu0 %v1376_v32 }
 0x2f8   :  { %4840 = vmatmul.mubr.msk.f32.gmra.mxu1 %vm389_vm0, %v1262_v56  ;;  %5075 = vmatprep.subr.mxu1 %v4872_v22 }
 0x2f9   :  { %1353 = vmatprep.mubr.f32.mxu1 %v7327_v12  ;;  %5076 = vmatpush3.msra.mxu1 %v4856_v21 }
 0x2fa   :  { %5077 = vmatprep.subr.mxu1 %v4871_v25  ;;  %5055 = vmatprep.subr.mxu0 %v1391_v6 }
 0x2fb   :  { %5078 = vmatpush3.msra.mxu1 %v4855_v20  ;;  %5056 = vmatpush3.msra.mxu0 %v1375_v30 }
 0x2fc   :  { %4841 = vmatmul.mubr.msk.f32.gmra.mxu1 %vm389_vm0, %v1263_v26  ;;  %5079 = vmatprep.subr.mxu1 %v4870_v46 }
 0x2fd   :  { %1359 = vmatprep.mubr.f32.mxu1 %v7327_v12  ;;  %5080 = vmatpush3.msra.mxu1 %v4854_v49  ;;  %v4897_v49 = vld [vmem:[%s7328_s8 + $0xf0] sm:$0xff] }
 0x2fe   :  { %5081 = vmatprep.subr.mxu1 %v4869_v51  ;;  %5057 = vmatprep.subr.mxu0 %v1390_v28 }
 0x2ff   :  { %5082 = vmatpush3.msra.mxu1 %v4853_v42  ;;  %5058 = vmatpush3.msra.mxu0 %v1374_v11  ;;  %v4896_v42 = vld [vmem:[%s7328_s8 + $0xe8] sm:$0xff] }
 0x300   :  { %4842 = vmatmul.mubr.msk.f32.gmra.mxu1 %vm389_vm0, %v1264_v19  ;;  %5083 = vmatprep.subr.mxu1 %v4868_v14 }
 0x301   :  { %5084 = vmatpush3.msra.mxu1 %v4852_v50 }
 0x302   :  { %5085 = vmatprep.subr.mxu1 %v4867_v37 }
 0x303   :  { %5086 = vmatpush3.msra.mxu1 %v4851_v5 }
 0x304   :  { %5087 = vmatprep.subr.mxu1 %v4866_v45  ;;  %v4893_v45 = vld [vmem:[%s7328_s8 + $0xd0] sm:$0xff] }
 0x305   :  { %5088 = vmatpush3.msra.mxu1 %v4850_v33  ;;  %v4891_v33 = vld [vmem:[%s7328_s8 + $0xc0] sm:$0xff] }
 0x306   :  { %5089 = vmatprep.subr.mxu1 %v4865_v3  ;;  %v4889_v3 = vld [vmem:[%s7328_s8 + $0xb0] sm:$0xff] }
 0x307   :  { %5090 = vmatpush3.msra.mxu1 %v4849_v41  ;;  %v4887_v41 = vld [vmem:[%s7328_s8 + $0xa0] sm:$0xff] }
 0x308   :  { %5091 = vmatprep.subr.mxu1 %v4864_v2  ;;  %v4885_v2 = vld [vmem:[%s7328_s8 + $0x90] sm:$0xff] }
 0x309   :  { %5092 = vmatpush3.msra.mxu1 %v4848_v39  ;;  %v4883_v39 = vld [vmem:[%s7328_s8 + $0x80] sm:$0xff] }
 0x30a   :  { %5093 = vmatprep.subr.mxu1 %v4863_v1  ;;  %v4914_v1 = vld [vmem:[%s7328_s8 + $0x178] sm:$0xff] }
 0x30b   :  { %5094 = vmatpush3.msra.mxu1 %v4847_v36 }
 0x30c   :  { %5095 = vmatprep.subr.mxu1 %v4862_v58 }
 0x30d   :  { %5096 = vmatpush3.msra.mxu1 %v4846_v60 }
 0x30e   :  { %5097 = vmatprep.subr.mxu1 %v4861_v62 }
 0x30f   :  { %5098 = vmatpush3.msra.mxu1 %v4845_v63 }
 0x310   :  { %5099 = vmatprep.subr.mxu1 %v4860_v7 }
 0x311   :  { %5100 = vmatpush3.msra.mxu1 %v4844_v9 }
 0x312   :  { %5101 = vmatprep.subr.mxu1 %v4859_v10 }
 0x313   :  { %5102 = vmatpush3.msra.mxu1 %v4843_v13 }
 0x314   :  { %5475 = vmatprep.subr.mxu1 %v4898_v15 }
 0x3a4   :  { %v1237_v16 = vpop.f32.mrf.mxu1 }
 0x3a6   :  { %v1239_v17 = vpop.f32.mrf.mxu1 }
 0x3a8   :  { %v1243_v24 = vpop.f32.mrf.mxu1 }
 0x3aa   :  { %v1245_v48 = vpop.f32.mrf.mxu1 }
 0x3ac   :  { %v1249_v23 = vpop.f32.mrf.mxu1 }
 0x3ae   :  { %v1251_v54 = vpop.f32.mrf.mxu1 }
 0x3b0   :  { %v1255_v56 = vpop.f32.mrf.mxu1 }
 0x3b2   :  { %v1257_v22 = vpop.f32.mrf.mxu1 }
 0x3b4   :  { %v1343_v21 = vpop.f32.mrf.mxu1 }
 0x3b5   :  { %v1366_v26 = vmax.f32 %v1237_v16, %v1343_v21 }
 0x3b6   :  { %v1345_v25 = vpop.f32.mrf.mxu1 }
 0x3b7   :  { %v1367_v20 = vmax.f32 %v1239_v17, %v1345_v25 }
 0x3b8   :  { %v1349_v46 = vpop.f32.mrf.mxu1 }
 0x3b9   :  { %1470 = vmatprep.mubr.f32.mxu0 %v1367_v20  ;;  %1588 = vmatprep.mubr.f32.mxu1 %v1367_v20  ;;  %v1368_v51 = vmax.f32 %v1243_v24, %v1349_v46  ;;  %v1614_v20 = vld [vmem:[#allocation10 + $0x8] sm:$0xff]  ;;  %v1616_v46 = vld [vmem:[#allocation10 + $0x18] sm:$0xff] }
 0x3ba   :  { %v1351_v19 = vpop.f32.mrf.mxu1  ;;  %1471 = vmatmul.mubr.f32.vlgmr.msra.gmra.mxu0 %v1366_v26  ;;  %1589 = vmatmul.mubr.f32.vlgmr.msra.gmra.mxu1 %v1366_v26  ;;  %v1615_v26 = vld [vmem:[#allocation10 + $0x10] sm:$0xff] }
 0x3bb   :  { %v1369_v44 = vmax.f32 %v1245_v48, %v1351_v19  ;;  %5476 = vmatpush3.msra.mxu1 %v4898_v15  ;;  %v4913_v15 = vld [vmem:[%s7328_s8 + $0x170] sm:$0xff] }
 0x3bc   :  { %v1355_v18 = vpop.f32.mrf.mxu1  ;;  %5477 = vmatprep.subr.mxu1 %v4897_v49  ;;  %v1716_v19 = vld [vmem:[#allocation10 + $0x28] sm:$0xff] }
 0x3bd   :  { %1475 = vmatprep.mubr.f32.mxu0 %v1369_v44  ;;  %1593 = vmatprep.mubr.f32.mxu1 %v1369_v44  ;;  %v1370_v40 = vmax.f32 %v1249_v23, %v1355_v18  ;;  %v1831_v44 = vld [vmem:[%s7328_s8 + $0x78] sm:$0xff]  ;;  %v1830_v18 = vld [vmem:[%s7328_s8 + $0x70] sm:$0xff] }
 0x3be   :  { %v1357_v52 = vpop.f32.mrf.mxu1  ;;  %1476 = vmatmul.mubr.f32.gmra.mxu0 %v1368_v51  ;;  %1594 = vmatmul.mubr.f32.gmra.mxu1 %v1368_v51  ;;  %v1717_v51 = vld [vmem:[#allocation10 + $0x30] sm:$0xff] }
 0x3bf   :  { %v1371_v14 = vmax.f32 %v1251_v54, %v1357_v52  ;;  %5478 = vmatpush3.msra.mxu1 %v4897_v49  ;;  %v1715_v49 = vld [vmem:[#allocation10 + $0x20] sm:$0xff] }
 0x3c0   :  { %v1361_v50 = vpop.f32.mrf.mxu1  ;;  %5479 = vmatprep.subr.mxu1 %v4896_v42  ;;  %v1829_v52 = vld [vmem:[%s7328_s8 + $0x68] sm:$0xff] }
 0x3c1   :  { %1480 = vmatprep.mubr.f32.mxu0 %v1371_v14  ;;  %1598 = vmatprep.mubr.f32.mxu1 %v1371_v14  ;;  %v1372_v5 = vmax.f32 %v1255_v56, %v1361_v50  ;;  %v1828_v14 = vld [vmem:[%s7328_s8 + $0x60] sm:$0xff]  ;;  %v1826_v50 = vld [vmem:[%s7328_s8 + $0x50] sm:$0xff] }
 0x3c2   :  { %v1363_v37 = vpop.f32.mrf.mxu1  ;;  %1481 = vmatmul.mubr.f32.gmra.mxu0 %v1370_v40  ;;  %1599 = vmatmul.mubr.f32.gmra.mxu1 %v1370_v40  ;;  %v1827_v40 = vld [vmem:[%s7328_s8 + $0x58] sm:$0xff] }
 0x3c3   :  { %v1373_v38 = vmax.f32 %v1257_v22, %v1363_v37  ;;  %5480 = vmatpush3.msra.mxu1 %v4896_v42  ;;  %v1718_v42 = vld [vmem:[#allocation10 + $0x38] sm:$0xff]  ;;  %v4912_v37 = vld [vmem:[%s7328_s8 + $0x168] sm:$0xff] }
 0x3c4   :  { %5481 = vmatprep.subr.mxu1 %v4895_v8 }
 0x3c5   :  { %1485 = vmatprep.mubr.f32.mxu0 %v1373_v38  ;;  %1603 = vmatprep.mubr.f32.mxu1 %v1373_v38  ;;  %v1824_v38 = vld [vmem:[%s7328_s8 + $0x40] sm:$0xff] }
 0x3c6   :  { %1486 = vmatmul.mubr.f32.gmra.mxu0 %v1372_v5  ;;  %1604 = vmatmul.mubr.f32.gmra.mxu1 %v1372_v5  ;;  %v4911_v5 = vld [vmem:[%s7328_s8 + $0x160] sm:$0xff] }
 0x3c7   :  { %5482 = vmatpush3.msra.mxu1 %v4895_v8  ;;  %5455 = vmatprep.mubr.msk.f32.mxu0 %vm674_vm1, %v1613_v55  ;;  %v1825_v8 = vld [vmem:[%s7328_s8 + $0x48] sm:$0xff] }
 0x3c8   :  { %5483 = vmatprep.subr.mxu1 %v4894_v35  ;;  %v1817_v55 = vld [vmem:[%s7328_s8 + $0x8] sm:$0xff] }
 0x3c9   :  { %5484 = vmatpush3.msra.mxu1 %v4894_v35  ;;  %v1823_v35 = vld [vmem:[%s7328_s8 + $0x38] sm:$0xff] }
 0x3ca   :  { %5485 = vmatprep.subr.mxu1 %v4893_v45 }
 0x3cb   :  { %5486 = vmatpush3.msra.mxu1 %v4893_v45  ;;  %v4910_v45 = vld [vmem:[%s7328_s8 + $0x158] sm:$0xff] }
 0x3cc   :  { %5487 = vmatprep.subr.mxu1 %v4892_v4 }
 0x3cd   :  { %5488 = vmatpush3.msra.mxu1 %v4892_v4  ;;  %v1822_v4 = vld [vmem:[%s7328_s8 + $0x30] sm:$0xff] }
 0x3ce   :  { %5489 = vmatprep.subr.mxu1 %v4891_v33 }
 0x3cf   :  { %5490 = vmatpush3.msra.mxu1 %v4891_v33  ;;  %v4909_v33 = vld [vmem:[%s7328_s8 + $0x150] sm:$0xff] }
 0x3d0   :  { %5491 = vmatprep.subr.mxu1 %v4890_v43 }
 0x3d1   :  { %5492 = vmatpush3.msra.mxu1 %v4890_v43  ;;  %v1821_v43 = vld [vmem:[%s7328_s8 + $0x28] sm:$0xff] }
 0x3d2   :  { %5493 = vmatprep.subr.mxu1 %v4889_v3 }
 0x3d3   :  { %5494 = vmatpush3.msra.mxu1 %v4889_v3  ;;  %v4908_v3 = vld [vmem:[%s7328_s8 + $0x148] sm:$0xff] }
 0x3d4   :  { %5495 = vmatprep.subr.mxu1 %v4888_v31 }
 0x3d5   :  { %5496 = vmatpush3.msra.mxu1 %v4888_v31  ;;  %v1820_v31 = vld [vmem:[%s7328_s8 + $0x20] sm:$0xff] }
 0x3d6   :  { %5497 = vmatprep.subr.mxu1 %v4887_v41 }
 0x3d7   :  { %5498 = vmatpush3.msra.mxu1 %v4887_v41  ;;  %v4907_v41 = vld [vmem:[%s7328_s8 + $0x140] sm:$0xff] }
 0x3d8   :  { %5499 = vmatprep.subr.mxu1 %v4886_v47 }
 0x3d9   :  { %5500 = vmatpush3.msra.mxu1 %v4886_v47  ;;  %v1819_v47 = vld [vmem:[%s7328_s8 + $0x18] sm:$0xff] }
 0x3da   :  { %5501 = vmatprep.subr.mxu1 %v4885_v2 }
 0x3db   :  { %5502 = vmatpush3.msra.mxu1 %v4885_v2  ;;  %v4906_v2 = vld [vmem:[%s7328_s8 + $0x138] sm:$0xff] }
 0x3dc   :  { %5503 = vmatprep.subr.mxu1 %v4884_v29 }
 0x3dd   :  { %5504 = vmatpush3.msra.mxu1 %v4884_v29  ;;  %v1818_v29 = vld [vmem:[%s7328_s8 + $0x10] sm:$0xff] }
 0x3de   :  { %5505 = vmatprep.subr.mxu1 %v4883_v39 }
 0x3df   :  { %5506 = vmatpush3.msra.mxu1 %v4883_v39  ;;  %v4905_v39 = vld [vmem:[%s7328_s8 + $0x130] sm:$0xff] }
 0x3e0   :  { %5551 = vmatprep.subr.mxu1 %v4914_v1 }
 0x47a   :  { %v5059_v27 = vpop.f32.mrf.mxu0  ;;  %v5103_v36 = vpop.f32.mrf.mxu1 }
 0x47c   :  { %v5060_v57 = vpop.f32.mrf.mxu0  ;;  %v5104_v58 = vpop.f32.mrf.mxu1 }
 0x47d   :  { %v5061_v34 = vadd.f32 %v5060_v57, %v5059_v27  ;;  %v5105_v60 = vadd.f32 %v5104_v58, %v5103_v36  ;;  %v1816_v27 = vld [vmem:[%s7328_s8] sm:$0xff]  ;;  %v4902_v57 = vld [vmem:[%s7328_s8 + $0x118] sm:$0xff]  ;;  %v4901_v58 = vld [vmem:[%s7328_s8 + $0x110] sm:$0xff] }
 0x47e   :  { %v5062_v61 = vpop.f32.mrf.mxu0  ;;  %v5106_v62 = vpop.f32.mrf.mxu1  ;;  %v4903_v36 = vld [vmem:[%s7328_s8 + $0x120] sm:$0xff] }
 0x47f   :  { %v1609_v32 = vmax.f32 %v5061_v34, %v5105_v60  ;;  %v4900_v34 = vld [vmem:[%s7328_s8 + $0x108] sm:$0xff]  ;;  %v4899_v60 = vld [vmem:[%s7328_s8 + $0x100] sm:$0xff] }
 0x480   :  { %v5063_v63 = vpop.f32.mrf.mxu0  ;;  %v5107_v6 = vpop.f32.mrf.mxu1 }
 0x481   :  { %v5064_v7 = vadd.f32 %v5063_v63, %v5062_v61  ;;  %v5108_v30 = vadd.f32 %v5107_v6, %v5106_v62  ;;  %5507 = vmatprep.mubr.f32.mxu1 %v1609_v32 }
 0x482   :  { %v5065_v9 = vpop.f32.mrf.mxu0  ;;  %v5109_v28 = vpop.f32.mrf.mxu1 }
 0x483   :  { %v1610_v10 = vmax.f32 %v5064_v7, %v5108_v30 }
 0x484   :  { %v5066_v11 = vpop.f32.mrf.mxu0  ;;  %v5110_v13 = vpop.f32.mrf.mxu1 }
 0x485   :  { %v5067_v16 = vadd.f32 %v5066_v11, %v5065_v9  ;;  %v5111_v17 = vadd.f32 %v5110_v13, %v5109_v28  ;;  %5508 = vmatmul.mubr.f32.vlgmr.msra.gmra.mxu1 %v1610_v10  ;;  %v2140_v28 = vld [vmem:[%s7329_s22] sm:$0xff]  ;;  %v4936_v11 = vld [vmem:[%s7330_s4 + $0xf0] sm:$0xff]  ;;  %v4935_v13 = vld [vmem:[%s7330_s4 + $0xe8] sm:$0xff] }
 0x486   :  { %v5068_v24 = vpop.f32.mrf.mxu0  ;;  %v5112_v48 = vpop.f32.mrf.mxu1  ;;  %5552 = vmatpush3.msra.mxu1 %v4914_v1  ;;  %v4904_v1 = vld [vmem:[%s7328_s8 + $0x128] sm:$0xff] }
 0x487   :  { %v1611_v23 = vmax.f32 %v5067_v16, %v5111_v17  ;;  %5553 = vmatprep.subr.mxu1 %v4913_v15  ;;  %v4933_v16 = vld [vmem:[%s7330_s4 + $0xd8] sm:$0xff]  ;;  %v4932_v17 = vld [vmem:[%s7330_s4 + $0xd0] sm:$0xff] }
 0x488   :  { %v5069_v54 = vpop.f32.mrf.mxu0  ;;  %v5113_v56 = vpop.f32.mrf.mxu1  ;;  %5554 = vmatpush3.msra.mxu1 %v4913_v15  ;;  %v4934_v15 = vld [vmem:[%s7330_s4 + $0xe0] sm:$0xff] }
 0x489   :  { %v5070_v22 = vadd.f32 %v5069_v54, %v5068_v24  ;;  %v5114_v21 = vadd.f32 %v5113_v56, %v5112_v48  ;;  %5510 = vmatprep.mubr.f32.mxu1 %v1611_v23  ;;  %5555 = vmatprep.subr.mxu1 %v4912_v37  ;;  %v4931_v24 = vld [vmem:[%s7330_s4 + $0xc8] sm:$0xff]  ;;  %v4930_v48 = vld [vmem:[%s7330_s4 + $0xc0] sm:$0xff]  ;;  %v4928_v54 = vld [vmem:[%s7330_s4 + $0xb0] sm:$0xff] }
 0x48a   :  { %5556 = vmatpush3.msra.mxu1 %v4912_v37  ;;  %v4927_v56 = vld [vmem:[%s7330_s4 + $0xa8] sm:$0xff]  ;;  %v4915_v37 = vld [vmem:[#allocation8] ss:$0 sm:$0xff] }
 0x48b   :  { %v1612_v25 = vmax.f32 %v5070_v22, %v5114_v21  ;;  %5557 = vmatprep.subr.mxu1 %v4911_v5 }
 0x48c   :  { %5558 = vmatpush3.msra.mxu1 %v4911_v5 }
 0x48d   :  { %5447 = vmatprep.subr.mxu0 %v1612_v25  ;;  %5511 = vmatmul.mubr.f32.gmra.mxu1 %v1612_v25 }
 0x48e   :  { %5448 = vmatpush3.msra.mxu0 %v1612_v25  ;;  %5559 = vmatprep.subr.mxu1 %v4910_v45 }
 0x48f   :  { %5449 = vmatprep.subr.mxu0 %v1611_v23  ;;  %5560 = vmatpush3.msra.mxu1 %v4910_v45 }
 0x490   :  { %5450 = vmatpush3.msra.mxu0 %v1611_v23  ;;  %5561 = vmatprep.subr.mxu1 %v4909_v33 }
 0x491   :  { %5451 = vmatprep.subr.mxu0 %v1610_v10  ;;  %5562 = vmatpush3.msra.mxu1 %v4909_v33 }
 0x492   :  { %5452 = vmatpush3.msra.mxu0 %v1610_v10  ;;  %5563 = vmatprep.subr.mxu1 %v4908_v3 }
 0x493   :  { %5453 = vmatprep.subr.mxu0 %v1609_v32  ;;  %5564 = vmatpush3.msra.mxu1 %v4908_v3 }
 0x494   :  { %5454 = vmatpush3.msra.mxu0 %v1609_v32  ;;  %5565 = vmatprep.subr.mxu1 %v4907_v41 }
 0x495   :  { %5456 = vmatmul.mubr.msk.f32.vlgmr.msra.gmra.mxu0 %vm674_vm1, %v1614_v20  ;;  %5461 = vmatprep.subr.mxu0 %v1612_v25 }
 0x496   :  { %5462 = vmatpush3.msra.mxu0 %v1612_v25  ;;  %5458 = vmatprep.mubr.msk.f32.mxu0 %vm674_vm1, %v1615_v26 }
 0x497   :  { %5463 = vmatprep.subr.mxu0 %v1611_v23  ;;  %5566 = vmatpush3.msra.mxu1 %v4907_v41 }
 0x498   :  { %5464 = vmatpush3.msra.mxu0 %v1611_v23  ;;  %5567 = vmatprep.subr.mxu1 %v4906_v2  ;;  %v4929_v23 = vld [vmem:[%s7330_s4 + $0xb8] sm:$0xff] }
 0x499   :  { %5459 = vmatmul.mubr.msk.f32.gmra.mxu0 %vm674_vm1, %v1616_v46  ;;  %5465 = vmatprep.subr.mxu0 %v1610_v10 }
 0x49a   :  { %5466 = vmatpush3.msra.mxu0 %v1610_v10  ;;  %5469 = vmatprep.mubr.msk.f32.mxu0 %vm674_vm1, %v1715_v49  ;;  %v4937_v10 = vld [vmem:[%s7330_s4 + $0xf8] sm:$0xff] }
 0x49b   :  { %5467 = vmatprep.subr.mxu0 %v1609_v32  ;;  %5568 = vmatpush3.msra.mxu1 %v4906_v2  ;;  %v2141_v2 = vld [vmem:[%s7329_s22 + $0x8] sm:$0xff] }
 0x49c   :  { %5468 = vmatpush3.msra.mxu0 %v1609_v32  ;;  %5569 = vmatprep.subr.mxu1 %v4905_v39 }
 0x49d   :  { %5470 = vmatmul.mubr.msk.f32.vlgmr.msra.gmra.mxu0 %vm674_vm1, %v1716_v19  ;;  %5513 = vmatprep.subr.mxu0 %v1831_v44 }
 0x49e   :  { %5472 = vmatprep.mubr.msk.f32.mxu0 %vm674_vm1, %v1717_v51  ;;  %5514 = vmatpush3.msra.mxu0 %v1831_v44 }
 0x49f   :  { %5515 = vmatprep.subr.mxu0 %v1830_v18  ;;  %5570 = vmatpush3.msra.mxu1 %v4905_v39  ;;  %v4919_v39 = vld [vmem:[%s7329_s22 + $0x18] sm:$0xff] }
 0x4a0   :  { %5516 = vmatpush3.msra.mxu0 %v1830_v18  ;;  %5571 = vmatprep.subr.mxu1 %v4904_v1 }
 0x4a1   :  { %5473 = vmatmul.mubr.msk.f32.gmra.mxu0 %vm674_vm1, %v1718_v42  ;;  %5517 = vmatprep.subr.mxu0 %v1829_v52 }
 0x4a2   :  { %5518 = vmatpush3.msra.mxu0 %v1829_v52  ;;  %5572 = vmatpush3.msra.mxu1 %v4904_v1  ;;  %v2323_v1 = vld [vmem:[%s7330_s4 + $0x70] sm:$0xff] }
 0x4a3   :  { %5519 = vmatprep.subr.mxu0 %v1828_v14  ;;  %5573 = vmatprep.subr.mxu1 %v4903_v36 }
 0x4a4   :  { %5520 = vmatpush3.msra.mxu0 %v1828_v14  ;;  %5574 = vmatpush3.msra.mxu1 %v4903_v36  ;;  %v2321_v36 = vld [vmem:[%s7330_s4 + $0x60] sm:$0xff] }
 0x4a5   :  { %5521 = vmatprep.subr.mxu0 %v1827_v40  ;;  %5575 = vmatprep.subr.mxu1 %v4902_v57 }
 0x4a6   :  { %5522 = vmatpush3.msra.mxu0 %v1827_v40  ;;  %5576 = vmatpush3.msra.mxu1 %v4902_v57  ;;  %v2320_v57 = vld [vmem:[%s7330_s4 + $0x58] sm:$0xff] }
 0x4a7   :  { %5523 = vmatprep.subr.mxu0 %v1826_v50  ;;  %5577 = vmatprep.subr.mxu1 %v4901_v58 }
 0x4a8   :  { %5524 = vmatpush3.msra.mxu0 %v1826_v50  ;;  %5578 = vmatpush3.msra.mxu1 %v4901_v58  ;;  %v2319_v58 = vld [vmem:[%s7330_s4 + $0x50] sm:$0xff] }
 0x4a9   :  { %5525 = vmatprep.subr.mxu0 %v1825_v8  ;;  %5579 = vmatprep.subr.mxu1 %v4900_v34 }
 0x4aa   :  { %5526 = vmatpush3.msra.mxu0 %v1825_v8  ;;  %5580 = vmatpush3.msra.mxu1 %v4900_v34  ;;  %v2318_v34 = vld [vmem:[%s7330_s4 + $0x48] sm:$0xff] }
 0x4ab   :  { %5527 = vmatprep.subr.mxu0 %v1824_v38  ;;  %5581 = vmatprep.subr.mxu1 %v4899_v60 }
 0x4ac   :  { %5528 = vmatpush3.msra.mxu0 %v1824_v38  ;;  %5582 = vmatpush3.msra.mxu1 %v4899_v60  ;;  %v2317_v60 = vld [vmem:[%s7330_s4 + $0x40] sm:$0xff] }
 0x4ad   :  { %5529 = vmatprep.subr.mxu0 %v1823_v35  ;;  %5646 = vmatprep.subr.mxu1 %v4937_v10 }
 0x4ae   :  { %5530 = vmatpush3.msra.mxu0 %v1823_v35 }
 0x4af   :  { %5531 = vmatprep.subr.mxu0 %v1822_v4 }
 0x4b0   :  { %5532 = vmatpush3.msra.mxu0 %v1822_v4 }
 0x4b1   :  { %5533 = vmatprep.subr.mxu0 %v1821_v43 }
 0x4b2   :  { %5534 = vmatpush3.msra.mxu0 %v1821_v43 }
 0x4b3   :  { %5535 = vmatprep.subr.mxu0 %v1820_v31 }
 0x4b4   :  { %5536 = vmatpush3.msra.mxu0 %v1820_v31 }
 0x4b5   :  { %5537 = vmatprep.subr.mxu0 %v1819_v47 }
 0x4b6   :  { %5538 = vmatpush3.msra.mxu0 %v1819_v47 }
 0x4b7   :  { %5539 = vmatprep.subr.mxu0 %v1818_v29 }
 0x4b8   :  { %5540 = vmatpush3.msra.mxu0 %v1818_v29  ;;  %v4918_v29 = vld [vmem:[%s7329_s22 + $0x10] sm:$0xff] }
 0x4b9   :  { %5541 = vmatprep.subr.mxu0 %v1817_v55 }
 0x4ba   :  { %5542 = vmatpush3.msra.mxu0 %v1817_v55  ;;  %v2324_v55 = vld [vmem:[%s7330_s4 + $0x78] sm:$0xff] }
 0x4bb   :  { %5543 = vmatprep.subr.mxu0 %v1816_v27 }
 0x4bc   :  { %5544 = vmatpush3.msra.mxu0 %v1816_v27  ;;  %v2322_v27 = vld [vmem:[%s7330_s4 + $0x68] sm:$0xff] }
 0x545   :  { %v5509_v22 = vpop.f32.mrf.mxu1 }
 0x547   :  { %v1915_v21 = vpop.f32.mrf.mxu1 }
 0x54d   :  { %v5512_v20 = vpop.f32.mrf.mxu1 }
 0x54f   :  { %v1925_v46 = vpop.f32.mrf.mxu1 }
 0x555   :  { %v5457_v61 = vpop.f32.mrf.mxu0 }
 0x557   :  { %v1695_v62 = vpop.f32.mrf.mxu0 }
 0x558   :  { %5545 = vmatprep.mubr.f32.mxu0 %v1695_v62  ;;  %v2315_v62 = vld [vmem:[%s7330_s4 + $0x30] sm:$0xff] }
 0x559   :  { %v5460_v32 = vpop.f32.mrf.mxu0  ;;  %5546 = vmatmul.mubr.f32.vlgmr.msra.gmra.mxu0 %v5457_v61  ;;  %v2316_v61 = vld [vmem:[%s7330_s4 + $0x38] sm:$0xff] }
 0x55b   :  { %v1705_v63 = vpop.f32.mrf.mxu0 }
 0x55c   :  { %5548 = vmatprep.mubr.f32.mxu0 %v1705_v63  ;;  %v2313_v63 = vld [vmem:[%s7330_s4 + $0x20] sm:$0xff] }
 0x55d   :  { %v5471_v6 = vpop.f32.mrf.mxu0  ;;  %5549 = vmatmul.mubr.f32.gmra.mxu0 %v5460_v32  ;;  %v2314_v32 = vld [vmem:[%s7330_s4 + $0x28] sm:$0xff] }
 0x55e   :  { %5597 = vmatprep.mubr.msk.f32.mxu0 %vm674_vm1, %v2140_v28  ;;  %v4924_v28 = vld [vmem:[%s7330_s4 + $0x90] sm:$0xff] }
 0x55f   :  { %v1797_v7 = vpop.f32.mrf.mxu0 }
 0x560   :  { %5583 = vmatprep.mubr.f32.mxu1 %v1797_v7  ;;  %v2312_v7 = vld [vmem:[%s7330_s4 + $0x18] sm:$0xff] }
 0x561   :  { %v5474_v30 = vpop.f32.mrf.mxu0  ;;  %5584 = vmatmul.mubr.f32.vlgmr.msra.gmra.mxu1 %v5471_v6  ;;  %v4926_v6 = vld [vmem:[%s7330_s4 + $0xa0] sm:$0xff] }
 0x562   :  { %5647 = vmatpush3.msra.mxu1 %v4937_v10  ;;  %v2310_v10 = vld [vmem:[%s7330_s4 + $0x8] sm:$0xff] }
 0x563   :  { %v1807_v9 = vpop.f32.mrf.mxu0  ;;  %5648 = vmatprep.subr.mxu1 %v4936_v11 }
 0x564   :  { %5586 = vmatprep.mubr.f32.mxu1 %v1807_v9  ;;  %5649 = vmatpush3.msra.mxu1 %v4936_v11  ;;  %v2311_v9 = vld [vmem:[%s7330_s4 + $0x10] sm:$0xff]  ;;  %v4923_v11 = vld [vmem:[%s7330_s4 + $0x88] sm:$0xff] }
 0x565   :  { %5587 = vmatmul.mubr.f32.gmra.mxu1 %v5474_v30  ;;  %5650 = vmatprep.subr.mxu1 %v4935_v13  ;;  %v4925_v30 = vld [vmem:[%s7330_s4 + $0x98] sm:$0xff] }
 0x566   :  { %5651 = vmatpush3.msra.mxu1 %v4935_v13  ;;  %v2309_v13 = vld [vmem:[%s7330_s4] sm:$0xff] }
 0x567   :  { %5652 = vmatprep.subr.mxu1 %v4934_v15 }
 0x568   :  { %5653 = vmatpush3.msra.mxu1 %v4934_v15  ;;  %v4922_v15 = vld [vmem:[%s7330_s4 + $0x80] sm:$0xff] }
 0x569   :  { %5654 = vmatprep.subr.mxu1 %v4933_v16 }
 0x56a   :  { %5655 = vmatpush3.msra.mxu1 %v4933_v16 }
 0x56b   :  { %5656 = vmatprep.subr.mxu1 %v4932_v17 }
 0x56c   :  { %5657 = vmatpush3.msra.mxu1 %v4932_v17 }
 0x56d   :  { %5658 = vmatprep.subr.mxu1 %v4931_v24 }
 0x56e   :  { %5659 = vmatpush3.msra.mxu1 %v4931_v24 }
 0x56f   :  { %5660 = vmatprep.subr.mxu1 %v4930_v48 }
 0x570   :  { %5661 = vmatpush3.msra.mxu1 %v4930_v48 }
 0x571   :  { %5662 = vmatprep.subr.mxu1 %v4929_v23 }
 0x572   :  { %5663 = vmatpush3.msra.mxu1 %v4929_v23 }
 0x573   :  { %5664 = vmatprep.subr.mxu1 %v4928_v54 }
 0x574   :  { %5665 = vmatpush3.msra.mxu1 %v4928_v54 }
 0x575   :  { %5666 = vmatprep.subr.mxu1 %v4927_v56 }
 0x576   :  { %5667 = vmatpush3.msra.mxu1 %v4927_v56  ;;  %v2496_v56 = vld [vmem:[#allocation14] sm:$0xff] }
 0x577   :  { %5668 = vmatprep.subr.mxu1 %v4926_v6 }
 0x578   :  { %5669 = vmatpush3.msra.mxu1 %v4926_v6 }
 0x579   :  { %5670 = vmatprep.subr.mxu1 %v4925_v30 }
 0x57a   :  { %5671 = vmatpush3.msra.mxu1 %v4925_v30 }
 0x57b   :  { %5672 = vmatprep.subr.mxu1 %v4924_v28 }
 0x57c   :  { %5673 = vmatpush3.msra.mxu1 %v4924_v28 }
 0x57d   :  { %5674 = vmatprep.subr.mxu1 %v4923_v11 }
 0x57e   :  { %5675 = vmatpush3.msra.mxu1 %v4923_v11 }
 0x57f   :  { %5676 = vmatprep.subr.mxu1 %v4922_v15 }
 0x580   :  { %5677 = vmatpush3.msra.mxu1 %v4922_v15 }
 0x619   :  { %v5547_v25 = vpop.f32.mrf.mxu0 }
 0x61a   :  { %v2006_v18 = vadd.f32 %v5547_v25, %v5509_v22  ;;  %v2671_v22 = vld [vmem:[#allocation11 + $0x38] sm:$0xff]  ;;  %v2669_v25 = vld [vmem:[#allocation11 + $0x28] sm:$0xff] }
 0x61b   :  { %v2000_v26 = vpop.f32.mrf.mxu0  ;;  %5714 = vmatprep.subr.mxu1 %v2671_v22 }
 0x61c   :  { %v2001_v14 = vadd.f32 %v2000_v26, %v1915_v21  ;;  %v2670_v21 = vld [vmem:[#allocation11 + $0x30] sm:$0xff]  ;;  %v2667_v26 = vld [vmem:[#allocation11 + $0x18] sm:$0xff] }
 0x61d   :  { %v5550_v49 = vpop.f32.mrf.mxu0 }
 0x61e   :  { %v2016_v42 = vadd.f32 %v5550_v49, %v5512_v20  ;;  %v2668_v20 = vld [vmem:[#allocation11 + $0x20] sm:$0xff] }
 0x61f   :  { %v2010_v44 = vpop.f32.mrf.mxu0 }
 0x620   :  { %v2011_v40 = vadd.f32 %v2010_v44, %v1925_v46  ;;  %v2666_v46 = vld [vmem:[#allocation11 + $0x10] sm:$0xff] }
 0x621   :  { %v5585_v19 = vpop.f32.mrf.mxu1 }
 0x622   :  { %v2122_v50 = vadd.f32 %v5585_v19, %v2006_v18 }
 0x623   :  { %v2102_v51 = vpop.f32.mrf.mxu1 }
 0x624   :  { %v2121_v5 = vadd.f32 %v2102_v51, %v2001_v14  ;;  %v2133_v4 = vadd.f32 %v4915_v37, %v2122_v50  ;;  %v2581_v14 = vld [vmem:[#allocation14 + $0x10] sm:$0xff] }
 0x625   :  { %v5588_v52 = vpop.f32.mrf.mxu1  ;;  %v2680_v50 = vld [vmem:[#allocation11 + $0x78] sm:$0xff] }
 0x626   :  { %v2124_v8 = vadd.f32 %v5588_v52, %v2016_v42  ;;  %v2132_v3 = vadd.f32 %v4915_v37, %v2121_v5  ;;  %v2137_v41 = vmax.f32 %v2133_v4, 0.0  ;;  %v2497_v52 = vld [vmem:[#allocation14 + $0x8] sm:$0xff]  ;;  %v2676_v5 = vld [vmem:[#allocation11 + $0x58] sm:$0xff]  ;;  %v2673_v4 = vld [vmem:[#allocation11 + $0x40] sm:$0xff] }
 0x627   :  { %v2112_v38 = vpop.f32.mrf.mxu1 }
 0x628   :  { %v2135_v35 = vadd.f32 %v4915_v37, %v2124_v8  ;;  %v2123_v45 = vadd.f32 %v2112_v38, %v2011_v40  ;;  %v2136_v47 = vmax.f32 %v2132_v3, 0.0  ;;  %v2582_v40 = vld [vmem:[#allocation14 + $0x18] sm:$0xff]  ;;  %v2679_v8 = vld [vmem:[#allocation11 + $0x70] sm:$0xff]  ;;  %v2849_v3 = vld [vmem:[#allocation11 + $0xa8] sm:$0xff] }
 0x629   :  { %v2677_v38 = vld [vmem:[#allocation11 + $0x60] sm:$0xff] }
 0x62a   :  { %v2139_v33 = vmax.f32 %v2135_v35, 0.0  ;;  %v2134_v43 = vadd.f32 %v4915_v37, %v2123_v45  ;;  %v2678_v37 = vld [vmem:[#allocation11 + $0x68] sm:$0xff]  ;;  %v2675_v35 = vld [vmem:[#allocation11 + $0x50] sm:$0xff] }
 0x62b   :  { %v2674_v45 = vld [vmem:[#allocation11 + $0x48] sm:$0xff] }
 0x62c   :  { %v2138_v31 = vmax.f32 %v2134_v43, 0.0  ;;  %5589 = vmatprep.subr.mxu0 %v2139_v33  ;;  %v2850_v43 = vld [vmem:[#allocation11 + $0xb0] sm:$0xff] }
 0x62d   :  { %5590 = vmatpush3.msra.mxu0 %v2139_v33 }
 0x62e   :  { %5591 = vmatprep.subr.mxu0 %v2138_v31 }
 0x62f   :  { %5592 = vmatpush3.msra.mxu0 %v2138_v31 }
 0x630   :  { %5593 = vmatprep.subr.mxu0 %v2137_v41 }
 0x631   :  { %5594 = vmatpush3.msra.mxu0 %v2137_v41 }
 0x632   :  { %5595 = vmatprep.subr.mxu0 %v2136_v47 }
 0x633   :  { %5596 = vmatpush3.msra.mxu0 %v2136_v47 }
 0x634   :  { %5600 = vmatprep.subr.mxu0 %v2139_v33  ;;  %5598 = vmatmul.mubr.msk.f32.vlgmr.msra.gmra.mxu0 %vm674_vm1, %v2141_v2  ;;  %v2664_v2 = vld [vmem:[#allocation11] sm:$0xff] }
 0x635   :  { %5601 = vmatpush3.msra.mxu0 %v2139_v33  ;;  %5608 = vmatprep.mubr.msk.f32.mxu0 %vm674_vm1, %v4918_v29  ;;  %v2851_v33 = vld [vmem:[#allocation11 + $0xb8] sm:$0xff]  ;;  %v2846_v29 = vld [vmem:[#allocation11 + $0x90] sm:$0xff] }
 0x636   :  { %5602 = vmatprep.subr.mxu0 %v2138_v31 }
 0x637   :  { %5603 = vmatpush3.msra.mxu0 %v2138_v31  ;;  %v2848_v31 = vld [vmem:[#allocation11 + $0xa0] sm:$0xff] }
 0x638   :  { %5604 = vmatprep.subr.mxu0 %v2137_v41 }
 0x639   :  { %5605 = vmatpush3.msra.mxu0 %v2137_v41  ;;  %v2665_v41 = vld [vmem:[#allocation11 + $0x8] sm:$0xff] }
 0x63a   :  { %5606 = vmatprep.subr.mxu0 %v2136_v47 }
 0x63b   :  { %5607 = vmatpush3.msra.mxu0 %v2136_v47  ;;  %v2847_v47 = vld [vmem:[#allocation11 + $0x98] sm:$0xff] }
 0x63c   :  { %5609 = vmatmul.mubr.msk.f32.vlgmr.msra.gmra.mxu0 %vm674_vm1, %v4919_v39  ;;  %5611 = vmatprep.subr.mxu0 %v2324_v55  ;;  %v2845_v39 = vld [vmem:[#allocation11 + $0x88] sm:$0xff] }
 0x63d   :  { %5612 = vmatpush3.msra.mxu0 %v2324_v55  ;;  %v2844_v55 = vld [vmem:[#allocation11 + $0x80] sm:$0xff] }
 0x63e   :  { %5613 = vmatprep.subr.mxu0 %v2323_v1 }
 0x63f   :  { %5614 = vmatpush3.msra.mxu0 %v2323_v1 }
 0x640   :  { %5615 = vmatprep.subr.mxu0 %v2322_v27 }
 0x641   :  { %5616 = vmatpush3.msra.mxu0 %v2322_v27 }
 0x642   :  { %5617 = vmatprep.subr.mxu0 %v2321_v36 }
 0x643   :  { %5618 = vmatpush3.msra.mxu0 %v2321_v36 }
 0x644   :  { %5619 = vmatprep.subr.mxu0 %v2320_v57 }
 0x645   :  { %5620 = vmatpush3.msra.mxu0 %v2320_v57 }
 0x646   :  { %5621 = vmatprep.subr.mxu0 %v2319_v58 }
 0x647   :  { %5622 = vmatpush3.msra.mxu0 %v2319_v58 }
 0x648   :  { %5623 = vmatprep.subr.mxu0 %v2318_v34 }
 0x649   :  { %5624 = vmatpush3.msra.mxu0 %v2318_v34 }
 0x64a   :  { %5625 = vmatprep.subr.mxu0 %v2317_v60 }
 0x64b   :  { %5626 = vmatpush3.msra.mxu0 %v2317_v60 }
 0x64c   :  { %5627 = vmatprep.subr.mxu0 %v2316_v61 }
 0x64d   :  { %5628 = vmatpush3.msra.mxu0 %v2316_v61 }
 0x64e   :  { %5629 = vmatprep.subr.mxu0 %v2315_v62 }
 0x64f   :  { %5630 = vmatpush3.msra.mxu0 %v2315_v62 }
 0x650   :  { %5631 = vmatprep.subr.mxu0 %v2314_v32 }
 0x651   :  { %5632 = vmatpush3.msra.mxu0 %v2314_v32 }
 0x652   :  { %5633 = vmatprep.subr.mxu0 %v2313_v63 }
 0x653   :  { %5634 = vmatpush3.msra.mxu0 %v2313_v63 }
 0x654   :  { %5635 = vmatprep.subr.mxu0 %v2312_v7 }
 0x655   :  { %5636 = vmatpush3.msra.mxu0 %v2312_v7 }
 0x656   :  { %5637 = vmatprep.subr.mxu0 %v2311_v9 }
 0x657   :  { %5638 = vmatpush3.msra.mxu0 %v2311_v9  ;;  %v4948_v9 = vld [vmem:[#allocation13] ss:$0 sm:$0xff] }
 0x658   :  { %5639 = vmatprep.subr.mxu0 %v2310_v10 }
 0x659   :  { %5640 = vmatpush3.msra.mxu0 %v2310_v10 }
 0x65a   :  { %5641 = vmatprep.subr.mxu0 %v2309_v13 }
 0x65b   :  { %5642 = vmatpush3.msra.mxu0 %v2309_v13 }
 0x6f4   :  { %v5599_v16 = vpop.f32.mrf.mxu0 }
 0x6f6   :  { %v2214_v17 = vpop.f32.mrf.mxu0 }
 0x6fc   :  { %v5610_v24 = vpop.f32.mrf.mxu0 }
 0x6fd   :  { %v2308_v54 = vmax.f32 %v5599_v16, %v5610_v24 }
 0x6fe   :  { %v2298_v48 = vpop.f32.mrf.mxu0 }
 0x6ff   :  { %v2307_v23 = vmax.f32 %v2214_v17, %v2298_v48  ;;  %v2946_v48 = vld [vmem:[#allocation16] sm:$0xff] }
 0x701   :  { %5643 = vmatprep.mubr.f32.mxu0 %v2307_v23  ;;  %5678 = vmatprep.mubr.f32.mxu1 %v2307_v23  ;;  %v3021_v23 = vld [vmem:[#allocation16 + $0x8] sm:$0xff] }
 0x702   :  { %5644 = vmatmul.mubr.f32.vlgmr.msra.gmra.mxu0 %v2308_v54  ;;  %5679 = vmatmul.mubr.f32.vlgmr.msra.gmra.mxu1 %v2308_v54 }
 0x703   :  { %5685 = vmatprep.mubr.msk.f32.mxu0 %vm2498_vm2, %v2496_v56  ;;  %5715 = vmatpush3.msra.mxu1 %v2671_v22 }
 0x704   :  { %5716 = vmatprep.subr.mxu1 %v2670_v21 }
 0x705   :  { %5717 = vmatpush3.msra.mxu1 %v2670_v21 }
 0x706   :  { %5718 = vmatprep.subr.mxu1 %v2669_v25 }
 0x707   :  { %5719 = vmatpush3.msra.mxu1 %v2669_v25 }
 0x708   :  { %5720 = vmatprep.subr.mxu1 %v2668_v20 }
 0x709   :  { %5721 = vmatpush3.msra.mxu1 %v2668_v20 }
 0x70a   :  { %5722 = vmatprep.subr.mxu1 %v2667_v26 }
 0x70b   :  { %5723 = vmatpush3.msra.mxu1 %v2667_v26 }
 0x70c   :  { %5724 = vmatprep.subr.mxu1 %v2666_v46 }
 0x70d   :  { %5725 = vmatpush3.msra.mxu1 %v2666_v46 }
 0x70e   :  { %5726 = vmatprep.subr.mxu1 %v2665_v41 }
 0x70f   :  { %5727 = vmatpush3.msra.mxu1 %v2665_v41  ;;  %v3410_v41 = vld [vmem:[%s7332_s30 + $0x18] sm:$0xff] }
 0x710   :  { %5728 = vmatprep.subr.mxu1 %v2664_v2 }
 0x711   :  { %5729 = vmatpush3.msra.mxu1 %v2664_v2  ;;  %v3408_v2 = vld [vmem:[%s7332_s30 + $0x8] sm:$0xff] }
 0x712   :  { %5752 = vmatprep.subr.mxu1 %v7327_v12 }
 0x7c2   :  { %v5645_v49 = vpop.f32.mrf.mxu0  ;;  %v5680_v19 = vpop.f32.mrf.mxu1 }
 0x7c3   :  { %v2493_v44 = vmax.f32 %v5645_v49, %v5680_v19 }
 0x7c4   :  { %v2391_v51 = vpop.f32.mrf.mxu0  ;;  %v2483_v18 = vpop.f32.mrf.mxu1 }
 0x7c5   :  { %2495 = vst.msk [vmem:[%s6643_s25 + $0x8] sm:$0xff] %vm389_vm0, %v2493_v44  ;;  %v2492_v42 = vmax.f32 %v2391_v51, %v2483_v18  ;;  %5681 = vmatprep.subr.mxu0 %v2493_v44 }
 0x7c6   :  { %5682 = vmatpush3.msra.mxu0 %v2493_v44 }
 0x7c7   :  { %2494 = vst.msk [vmem:[%s6643_s25] sm:$0xff] %vm389_vm0, %v2492_v42  ;;  %5683 = vmatprep.subr.mxu0 %v2492_v42  ;;  %s7331_s25 = sld [smem:[#allocation50_spill]] }
 0x7c8   :  { %5684 = vmatpush3.msra.mxu0 %v2492_v42 }
 0x7c9   :  { %5686 = vmatmul.mubr.msk.f32.vlgmr.msra.gmra.mxu0 %vm2498_vm2, %v2497_v52  ;;  %5688 = vmatprep.subr.mxu0 %v2493_v44 }
 0x7ca   :  { %5689 = vmatpush3.msra.mxu0 %v2493_v44  ;;  %5692 = vmatprep.mubr.msk.f32.mxu0 %vm2498_vm2, %v2581_v14 }
 0x7cb   :  { %5690 = vmatprep.subr.mxu0 %v2492_v42 }
 0x7cc   :  { %5691 = vmatpush3.msra.mxu0 %v2492_v42 }
 0x7cd   :  { %5693 = vmatmul.mubr.msk.f32.vlgmr.msra.gmra.mxu0 %vm2498_vm2, %v2582_v40  ;;  %5695 = vmatprep.subr.mxu0 %v2680_v50  ;;  %v4959_v58 = vld [vmem:[%s7331_s25 + $0x78] sm:$0xff]  ;;  %v4958_v34 = vld [vmem:[%s7331_s25 + $0x70] sm:$0xff]  ;;  %v4957_v60 = vld [vmem:[%s7331_s25 + $0x68] sm:$0xff] }
 0x7ce   :  { %5696 = vmatpush3.msra.mxu0 %v2680_v50  ;;  %5711 = vmatprep.mubr.msk.f32.mxu0 %vm389_vm0, %v2492_v42  ;;  %v4956_v61 = vld [vmem:[%s7331_s25 + $0x60] sm:$0xff]  ;;  %v3103_v54 = vld [vmem:[%s7331_s25 + $0x38] sm:$0xff]  ;;  %v3102_v56 = vld [vmem:[%s7331_s25 + $0x30] sm:$0xff] }
 0x7cf   :  { %5697 = vmatprep.subr.mxu0 %v2679_v8  ;;  %v3101_v22 = vld [vmem:[%s7331_s25 + $0x28] sm:$0xff]  ;;  %v3100_v21 = vld [vmem:[%s7331_s25 + $0x20] sm:$0xff]  ;;  %v3099_v25 = vld [vmem:[%s7331_s25 + $0x18] sm:$0xff] }
 0x7d0   :  { %5698 = vmatpush3.msra.mxu0 %v2679_v8  ;;  %v4955_v20 = vld [vmem:[%s7331_s25 + $0x58] sm:$0xff]  ;;  %v3098_v26 = vld [vmem:[%s7331_s25 + $0x10] sm:$0xff]  ;;  %v3097_v49 = vld [vmem:[%s7331_s25 + $0x8] sm:$0xff] }
 0x7d1   :  { %5699 = vmatprep.subr.mxu0 %v2678_v37  ;;  %v4954_v46 = vld [vmem:[%s7331_s25 + $0x50] sm:$0xff]  ;;  %v4953_v19 = vld [vmem:[%s7331_s25 + $0x48] sm:$0xff]  ;;  %v4952_v51 = vld [vmem:[%s7331_s25 + $0x40] sm:$0xff] }
 0x7d2   :  { %5700 = vmatpush3.msra.mxu0 %v2678_v37  ;;  %v4967_v50 = vld [vmem:[%s7332_s30 + $0x38] sm:$0xff]  ;;  %v4966_v8 = vld [vmem:[%s7332_s30 + $0x30] sm:$0xff]  ;;  %v4965_v37 = vld [vmem:[%s7332_s30 + $0x28] sm:$0xff] }
 0x7d3   :  { %5701 = vmatprep.subr.mxu0 %v2677_v38 }
 0x7d4   :  { %5702 = vmatpush3.msra.mxu0 %v2677_v38  ;;  %v4964_v38 = vld [vmem:[%s7332_s30 + $0x20] sm:$0xff] }
 0x7d5   :  { %5703 = vmatprep.subr.mxu0 %v2676_v5 }
 0x7d6   :  { %5704 = vmatpush3.msra.mxu0 %v2676_v5 }
 0x7d7   :  { %5705 = vmatprep.subr.mxu0 %v2675_v35 }
 0x7d8   :  { %5706 = vmatpush3.msra.mxu0 %v2675_v35 }
 0x7d9   :  { %5707 = vmatprep.subr.mxu0 %v2674_v45 }
 0x7da   :  { %5708 = vmatpush3.msra.mxu0 %v2674_v45 }
 0x7db   :  { %5709 = vmatprep.subr.mxu0 %v2673_v4 }
 0x7dc   :  { %5710 = vmatpush3.msra.mxu0 %v2673_v4  ;;  %v3257_v4 = vld [vmem:[%s7333_s17] sm:$0xff] }
 0x7dd   :  { %5712 = vmatmul.mubr.msk.f32.vlgmr.msra.gmra.mxu0 %vm389_vm0, %v2493_v44  ;;  %5733 = vmatprep.subr.mxu0 %v2851_v33  ;;  %v3096_v44 = vld [vmem:[%s7331_s25] sm:$0xff] }
 0x7de   :  { %5734 = vmatpush3.msra.mxu0 %v2851_v33 }
 0x7df   :  { %5735 = vmatprep.subr.mxu0 %v2850_v43 }
 0x7e0   :  { %5736 = vmatpush3.msra.mxu0 %v2850_v43 }
 0x7e1   :  { %5737 = vmatprep.subr.mxu0 %v2849_v3 }
 0x7e2   :  { %5738 = vmatpush3.msra.mxu0 %v2849_v3  ;;  %v4973_v3 = vld [vmem:[%s7332_s30 + $0x58] sm:$0xff] }
 0x7e3   :  { %5739 = vmatprep.subr.mxu0 %v2848_v31 }
 0x7e4   :  { %5740 = vmatpush3.msra.mxu0 %v2848_v31  ;;  %v4962_v31 = vld [vmem:[%s7333_s17 + $0x8] sm:$0xff] }
 0x7e5   :  { %5741 = vmatprep.subr.mxu0 %v2847_v47 }
 0x7e6   :  { %5742 = vmatpush3.msra.mxu0 %v2847_v47  ;;  %v3409_v47 = vld [vmem:[%s7332_s30 + $0x10] sm:$0xff] }
 0x7e7   :  { %5743 = vmatprep.subr.mxu0 %v2846_v29 }
 0x7e8   :  { %5744 = vmatpush3.msra.mxu0 %v2846_v29  ;;  %v3407_v29 = vld [vmem:[%s7332_s30] sm:$0xff] }
 0x7e9   :  { %5745 = vmatprep.subr.mxu0 %v2845_v39 }
 0x7ea   :  { %5746 = vmatpush3.msra.mxu0 %v2845_v39  ;;  %v4972_v39 = vld [vmem:[%s7332_s30 + $0x50] sm:$0xff] }
 0x7eb   :  { %5747 = vmatprep.subr.mxu0 %v2844_v55 }
 0x7ec   :  { %5748 = vmatpush3.msra.mxu0 %v2844_v55  ;;  %v4971_v55 = vld [vmem:[%s7332_s30 + $0x48] sm:$0xff] }
 0x7ed   :  { %5785 = vmatprep.subr.mxu0 %v7327_v12 }
 0x889   :  { %v5687_v1 = vpop.f32.mrf.mxu0 }
 0x88b   :  { %v2571_v27 = vpop.f32.mrf.mxu0 }
 0x88c   :  { %5730 = vmatprep.mubr.msk.f32.mxu1 %vm389_vm0, %v2571_v27 }
 0x88d   :  { %v5694_v36 = vpop.f32.mrf.mxu0  ;;  %5731 = vmatmul.mubr.msk.f32.vlgmr.msra.gmra.mxu1 %vm389_vm0, %v5687_v1  ;;  %v4970_v1 = vld [vmem:[%s7332_s30 + $0x40] sm:$0xff] }
 0x88e   :  { %5756 = vmatprep.mubr.msk.f32.mxu1 %vm6483_vm3, %v7327_v12 }
 0x88f   :  { %v2655_v57 = vpop.f32.mrf.mxu0 }
 0x890   :  { %5749 = vmatprep.mubr.msk.f32.mxu0 %vm389_vm0, %v2655_v57 }
 0x891   :  { %5750 = vmatmul.mubr.msk.f32.vlgmr.msra.gmra.mxu0 %vm389_vm0, %v5694_v36 }
 0x892   :  { %5801 = vmatprep.mubr.msk.f32.mxu0 %vm6483_vm3, %v7327_v12  ;;  %5786 = vmatpush3.msra.mxu0 %v4959_v58 }
 0x893   :  { %5787 = vmatprep.subr.mxu0 %v7327_v12 }
 0x894   :  { %5788 = vmatpush3.msra.mxu0 %v4958_v34 }
 0x895   :  { %5789 = vmatprep.subr.mxu0 %v7327_v12 }
 0x896   :  { %5790 = vmatpush3.msra.mxu0 %v4957_v60 }
 0x897   :  { %5791 = vmatprep.subr.mxu0 %v7327_v12 }
 0x898   :  { %5792 = vmatpush3.msra.mxu0 %v4956_v61 }
 0x899   :  { %5793 = vmatprep.subr.mxu0 %v7327_v12 }
 0x89a   :  { %5794 = vmatpush3.msra.mxu0 %v4955_v20  ;;  %v3949_v20 = vld [vmem:[#allocation20] sm:$0x3] }
 0x89b   :  { %5795 = vmatprep.subr.mxu0 %v7327_v12 }
 0x89c   :  { %5796 = vmatpush3.msra.mxu0 %v4954_v46 }
 0x89d   :  { %v5713_v62 = vpop.f32.mrf.mxu0  ;;  %5797 = vmatprep.subr.mxu0 %v7327_v12 }
 0x89e   :  { %5798 = vmatpush3.msra.mxu0 %v4953_v19  ;;  %v4105_v19 = vld [vmem:[#allocation22 + $0x8] sm:$0xff] }
 0x89f   :  { %v2753_v63 = vpop.f32.mrf.mxu0  ;;  %5799 = vmatprep.subr.mxu0 %v7327_v12 }
 0x8a0   :  { %5800 = vmatpush3.msra.mxu0 %v4952_v51  ;;  %v4104_v51 = vld [vmem:[#allocation22] sm:$0xff] }
 0x8a1   :  { %5814 = vmatprep.subr.mxu0 %v7327_v12 }
 0x94d   :  { %v5732_v32 = vpop.f32.mrf.mxu1 }
 0x94e   :  { %v2840_v7 = vadd.f32 %v5732_v32, %v5713_v62 }
 0x94f   :  { %v2834_v6 = vpop.f32.mrf.mxu1 }
 0x950   :  { %v2835_v28 = vadd.f32 %v2834_v6, %v2753_v63  ;;  %v4975_v6 = vld [vmem:[#allocation17] ss:$0 sm:$0xff] }
 0x951   :  { %v5751_v30 = vpop.f32.mrf.mxu0 }
 0x952   :  { %v2934_v10 = vadd.f32 %v5751_v30, %v2840_v7 }
 0x953   :  { %v2924_v11 = vpop.f32.mrf.mxu0 }
 0x954   :  { %v2943_v13 = vadd.f32 %v4948_v9, %v2934_v10  ;;  %v2933_v15 = vadd.f32 %v2924_v11, %v2835_v28  ;;  %v3650_v10 = vld [vmem:[#allocation19] sm:$0xf]  ;;  %v3725_v11 = vld [vmem:[#allocation19 + $0x4] sm:$0xf] }
 0x956   :  { %v2945_v16 = vmax.f32 %v2943_v13, 0.0  ;;  %v2942_v17 = vadd.f32 %v4948_v9, %v2933_v15  ;;  %v3801_v13 = vld [vmem:[%s7334_s14 + $0x8] sm:$0xff]  ;;  %v4980_v15 = vld [vmem:[%s7334_s14 + $0x18] sm:$0xff] }
 0x958   :  { %v2944_v24 = vmax.f32 %v2942_v17, 0.0  ;;  %5753 = vmatpush3.msra.mxu1 %v2945_v16  ;;  %v4979_v17 = vld [vmem:[%s7334_s14 + $0x10] sm:$0xff] }
 0x959   :  { %5754 = vmatprep.subr.mxu1 %v7327_v12 }
 0x95a   :  { %5755 = vmatpush3.msra.mxu1 %v2944_v24 }
 0x95b   :  { %5757 = vmatmul.mubr.msk.f32.vlgmr.msra.gmra.mxu1 %vm2498_vm2, %v2946_v48  ;;  %5759 = vmatprep.subr.mxu1 %v7327_v12 }
 0x95c   :  { %5760 = vmatpush3.msra.mxu1 %v2945_v16  ;;  %5763 = vmatprep.mubr.msk.f32.mxu1 %vm6483_vm3, %v7327_v12  ;;  %v3800_v16 = vld [vmem:[%s7334_s14] sm:$0xff] }
 0x95d   :  { %5761 = vmatprep.subr.mxu1 %v7327_v12 }
 0x95e   :  { %5762 = vmatpush3.msra.mxu1 %v2944_v24 }
 0x95f   :  { %5764 = vmatmul.mubr.msk.f32.vlgmr.msra.gmra.mxu1 %vm2498_vm2, %v3021_v23  ;;  %5766 = vmatprep.subr.mxu1 %v7327_v12 }
 0x960   :  { %5767 = vmatpush3.msra.mxu1 %v3103_v54  ;;  %5782 = vmatprep.mubr.msk.f32.mxu1 %vm6483_vm3, %v7327_v12 }
 0x961   :  { %5768 = vmatprep.subr.mxu1 %v7327_v12 }
 0x962   :  { %5769 = vmatpush3.msra.mxu1 %v3102_v56 }
 0x963   :  { %5770 = vmatprep.subr.mxu1 %v7327_v12 }
 0x964   :  { %5771 = vmatpush3.msra.mxu1 %v3101_v22 }
 0x965   :  { %5772 = vmatprep.subr.mxu1 %v7327_v12 }
 0x966   :  { %5773 = vmatpush3.msra.mxu1 %v3100_v21 }
 0x967   :  { %5774 = vmatprep.subr.mxu1 %v7327_v12 }
 0x968   :  { %5775 = vmatpush3.msra.mxu1 %v3099_v25 }
 0x969   :  { %5776 = vmatprep.subr.mxu1 %v7327_v12 }
 0x96a   :  { %5777 = vmatpush3.msra.mxu1 %v3098_v26  ;;  %v4029_v26 = vld [vmem:[#allocation20 + $0x2] sm:$0x3] }
 0x96b   :  { %5778 = vmatprep.subr.mxu1 %v7327_v12 }
 0x96c   :  { %5779 = vmatpush3.msra.mxu1 %v3097_v49 }
 0x96d   :  { %5780 = vmatprep.subr.mxu1 %v7327_v12 }
 0x96e   :  { %5781 = vmatpush3.msra.mxu1 %v3096_v44  ;;  %v4195_v44 = vld [vmem:[#allocation22 + $0x18] sm:$0xff] }
 0x96f   :  { %5804 = vmatprep.subr.mxu1 %v7327_v12 }
 0xa1b   :  { %v3016_v18 = vpop.f32.mrf.mxu1 }
 0xa1d   :  { %v5758_v42 = vpop.f32.mrf.mxu1 }
 0xa1e   :  { %v4284_v42 = vld [vmem:[#allocation25 + $0x8] sm:$0xff] }
 0xa1f   :  { %v3091_v52 = vpop.f32.mrf.mxu1 }
 0xa20   :  { %v3095_v14 = vmax.f32 %v3016_v18, %v3091_v52  ;;  %v4194_v18 = vld [vmem:[#allocation22 + $0x10] sm:$0xff] }
 0xa21   :  { %v5765_v40 = vpop.f32.mrf.mxu1 }
 0xa22   :  { %5783 = vmatmul.mubr.msk.f32.vlgmr.msra.gmra.mxu1 %vm389_vm0, %v3095_v14  ;;  %5802 = vmatmul.mubr.msk.f32.vlgmr.msra.gmra.mxu0 %vm389_vm0, %v3095_v14  ;;  %v4282_v40 = vld [vmem:[#allocation25] sm:$0xff] }
 0xa23   :  { %5806 = vmatprep.mubr.msk.f32.mxu1 %vm6483_vm3, %v7327_v12  ;;  %5822 = vmatprep.mubr.msk.f32.mxu0 %vm6483_vm3, %v7327_v12 }
 0xa24   :  { %5815 = vmatpush3.msra.mxu0 %v4967_v50 }
 0xa25   :  { %5816 = vmatprep.subr.mxu0 %v7327_v12 }
 0xa26   :  { %5817 = vmatpush3.msra.mxu0 %v4966_v8 }
 0xa27   :  { %5818 = vmatprep.subr.mxu0 %v7327_v12 }
 0xa28   :  { %5819 = vmatpush3.msra.mxu0 %v4965_v37  ;;  %v4559_v37 = vld [vmem:[%s6633_s27 + $0xf8] sm:$0xff] }
 0xa29   :  { %5820 = vmatprep.subr.mxu0 %v7327_v12 }
 0xa2a   :  { %5821 = vmatpush3.msra.mxu0 %v4964_v38  ;;  %v4543_v38 = vld [vmem:[%s6633_s27 + $0x78] sm:$0xff] }
 0xa2b   :  { %5836 = vmatprep.subr.mxu0 %v7327_v12 }
 0xae2   :  { %v3173_v5 = vpop.f32.mrf.mxu1  ;;  %v3252_v35 = vpop.f32.mrf.mxu0 }
 0xae3   :  { %v3256_v45 = vmax.f32 %v3173_v5, %v3252_v35  ;;  %v4558_v5 = vld [vmem:[%s6633_s27 + $0xf0] sm:$0xff] }
 0xae4   :  { %v5784_v33 = vpop.f32.mrf.mxu1  ;;  %v5803_v43 = vpop.f32.mrf.mxu0  ;;  %v4542_v35 = vld [vmem:[%s6633_s27 + $0x70] sm:$0xff] }
 0xae5   :  { %5805 = vmatpush3.msra.mxu1 %v3256_v45  ;;  %5823 = vmatmul.mubr.msk.f32.vlgmr.msra.gmra.mxu0 %vm674_vm1, %v3256_v45  ;;  %v4452_v33 = vld [vmem:[#allocation29 + $0x38] sm:$0xff]  ;;  %v4556_v43 = vld [vmem:[%s6633_s27 + $0xe0] sm:$0xff] }
 0xae6   :  { %5807 = vmatmul.mubr.msk.f32.vlgmr.msra.gmra.mxu1 %vm3258_vm4, %v3257_v4  ;;  %5809 = vmatprep.subr.mxu1 %v7327_v12  ;;  %v4541_v4 = vld [vmem:[%s6633_s27 + $0x68] sm:$0xff] }
 0xae7   :  { %5810 = vmatpush3.msra.mxu1 %v3256_v45  ;;  %5811 = vmatprep.mubr.msk.f32.mxu1 %vm6483_vm3, %v7327_v12  ;;  %v4557_v45 = vld [vmem:[%s6633_s27 + $0xe8] sm:$0xff] }
 0xae8   :  { %5825 = vmatprep.subr.mxu1 %v7327_v12  ;;  %5837 = vmatpush3.msra.mxu0 %v4973_v3  ;;  %v4540_v3 = vld [vmem:[%s6633_s27 + $0x60] sm:$0xff] }
 0xae9   :  { %5838 = vmatprep.subr.mxu0 %v7327_v12  ;;  %5844 = vmatprep.mubr.msk.f32.mxu0 %vm6483_vm3, %v7327_v12 }
 0xaea   :  { %5812 = vmatmul.mubr.msk.f32.vlgmr.msra.gmra.mxu1 %vm3258_vm4, %v4962_v31  ;;  %5839 = vmatpush3.msra.mxu0 %v4972_v39  ;;  %v4451_v31 = vld [vmem:[#allocation29 + $0x30] sm:$0xff]  ;;  %v4538_v39 = vld [vmem:[%s6633_s27 + $0x50] sm:$0xff] }
 0xaeb   :  { %5826 = vmatpush3.msra.mxu1 %v3410_v41  ;;  %5833 = vmatprep.mubr.msk.f32.mxu1 %vm6483_vm3, %v7327_v12  ;;  %v4555_v41 = vld [vmem:[%s6633_s27 + $0xd8] sm:$0xff] }
 0xaec   :  { %5827 = vmatprep.subr.mxu1 %v7327_v12  ;;  %5840 = vmatprep.subr.mxu0 %v7327_v12 }
 0xaed   :  { %5828 = vmatpush3.msra.mxu1 %v3409_v47  ;;  %5841 = vmatpush3.msra.mxu0 %v4971_v55  ;;  %v4539_v47 = vld [vmem:[%s6633_s27 + $0x58] sm:$0xff] }
 0xaee   :  { %5829 = vmatprep.subr.mxu1 %v7327_v12  ;;  %5842 = vmatprep.subr.mxu0 %v7327_v12  ;;  %v4449_v55 = vld [vmem:[#allocation29 + $0x20] sm:$0xff] }
 0xaef   :  { %5830 = vmatpush3.msra.mxu1 %v3408_v2  ;;  %5843 = vmatpush3.msra.mxu0 %v4970_v1  ;;  %v4450_v2 = vld [vmem:[#allocation29 + $0x28] sm:$0xff]  ;;  %v4553_v1 = vld [vmem:[%s6633_s27 + $0xc8] sm:$0xff] }
 0xaf0   :  { %5831 = vmatprep.subr.mxu1 %v7327_v12  ;;  %5857 = vmatprep.subr.mxu0 %v7327_v12 }
 0xaf1   :  { %5832 = vmatpush3.msra.mxu1 %v3407_v29  ;;  %v4554_v29 = vld [vmem:[%s6633_s27 + $0xd0] sm:$0xff] }
 0xaf2   :  { %5847 = vmatprep.subr.mxu1 %v7327_v12 }
 0xba5   :  { %v3485_v27 = vpop.f32.mrf.mxu0 }
 0xba6   :  { %v3328_v36 = vpop.f32.mrf.mxu1 }
 0xba7   :  { %5834 = vmatmul.mubr.msk.f32.vlgmr.msra.gmra.mxu1 %vm674_vm1, %v3328_v36  ;;  %v5824_v57 = vpop.f32.mrf.mxu0  ;;  %v4448_v36 = vld [vmem:[#allocation29 + $0x18] sm:$0xff] }
 0xba8   :  { %v5808_v58 = vpop.f32.mrf.mxu1  ;;  %5849 = vmatprep.mubr.msk.f32.mxu1 %vm6483_vm3, %v7327_v12  ;;  %v4552_v57 = vld [vmem:[%s6633_s27 + $0xc0] sm:$0xff] }
 0xba9   :  { %v4536_v58 = vld [vmem:[%s6633_s27 + $0x40] sm:$0xff] }
 0xbaa   :  { %v3403_v34 = vpop.f32.mrf.mxu1 }
 0xbab   :  { %5845 = vmatmul.mubr.msk.f32.vlgmr.msra.gmra.mxu0 %vm674_vm1, %v3403_v34  ;;  %v4447_v34 = vld [vmem:[#allocation29 + $0x10] sm:$0xff] }
 0xbac   :  { %v5813_v60 = vpop.f32.mrf.mxu1  ;;  %5861 = vmatprep.mubr.msk.f32.mxu0 %vm6483_vm3, %v7327_v12  ;;  %5858 = vmatpush3.msra.mxu0 %v3801_v13  ;;  %v4546_v13 = vld [vmem:[%s6633_s27 + $0x90] sm:$0xff] }
 0xbad   :  { %5859 = vmatprep.subr.mxu0 %v7327_v12  ;;  %v4551_v60 = vld [vmem:[%s6633_s27 + $0xb8] sm:$0xff] }
 0xbae   :  { %5860 = vmatpush3.msra.mxu0 %v3800_v16  ;;  %v4545_v16 = vld [vmem:[%s6633_s27 + $0x88] sm:$0xff] }
 0xbaf   :  { %5871 = vmatprep.subr.mxu0 %v7327_v12 }
 0xc67   :  { %v3558_v61 = vpop.f32.mrf.mxu1 }
 0xc68   :  { %v3559_v32 = vadd.f32 %v3558_v61, %v3485_v27  ;;  %v4537_v27 = vld [vmem:[%s6633_s27 + $0x48] sm:$0xff]  ;;  %v4535_v61 = vld [vmem:[%s6633_s27 + $0x38] sm:$0xff] }
 0xc69   :  { %v5835_v62 = vpop.f32.mrf.mxu1 }
 0xc6a   :  { %v4446_v62 = vld [vmem:[#allocation29 + $0x8] sm:$0xff] }
 0xc6b   :  { %v3636_v63 = vpop.f32.mrf.mxu0 }
 0xc6c   :  { %v3640_v7 = vadd.f32 %v3636_v63, %v3559_v32  ;;  %v4445_v32 = vld [vmem:[#allocation29] sm:$0xff]  ;;  %v4550_v63 = vld [vmem:[%s6633_s27 + $0xb0] sm:$0xff] }
 0xc6d   :  { %v5846_v30 = vpop.f32.mrf.mxu0 }
 0xc6e   :  { %v3648_v9 = vadd.f32 %v4975_v6, %v3640_v7  ;;  %v4534_v6 = vld [vmem:[%s6633_s27 + $0x30] sm:$0xff]  ;;  %v4549_v7 = vld [vmem:[%s6633_s27 + $0xa8] sm:$0xff] }
 0xc6f   :  { %v4533_v30 = vld [vmem:[%s6633_s27 + $0x28] sm:$0xff] }
 0xc70   :  { %v3649_v28 = vmax.f32 %v3648_v9, 0.0  ;;  %v4548_v9 = vld [vmem:[%s6633_s27 + $0xa0] sm:$0xff] }
 0xc72   :  { %5848 = vmatpush3.msra.mxu1 %v3649_v28 }
 0xc73   :  { %5850 = vmatmul.mubr.msk.f32.vlgmr.msra.gmra.mxu1 %vm3258_vm4, %v3650_v10  ;;  %5852 = vmatprep.subr.mxu1 %v7327_v12  ;;  %v4547_v10 = vld [vmem:[%s6633_s27 + $0x98] sm:$0xff] }
 0xc74   :  { %5853 = vmatpush3.msra.mxu1 %v3649_v28  ;;  %5854 = vmatprep.mubr.msk.f32.mxu1 %vm6483_vm3, %v7327_v12  ;;  %v4532_v28 = vld [vmem:[%s6633_s27 + $0x20] sm:$0xff] }
 0xc75   :  { %5864 = vmatprep.subr.mxu1 %v7327_v12 }
 0xc77   :  { %5855 = vmatmul.mubr.msk.f32.vlgmr.msra.gmra.mxu1 %vm3258_vm4, %v3725_v11  ;;  %v4531_v11 = vld [vmem:[%s6633_s27 + $0x18] sm:$0xff] }
 0xc78   :  { %5868 = vmatprep.mubr.msk.f32.mxu1 %vm6483_vm3, %v7327_v12  ;;  %5865 = vmatpush3.msra.mxu1 %v4980_v15  ;;  %v4530_v15 = vld [vmem:[%s6633_s27 + $0x10] sm:$0xff] }
 0xc79   :  { %5866 = vmatprep.subr.mxu1 %v7327_v12 }
 0xc7a   :  { %5867 = vmatpush3.msra.mxu1 %v4979_v17  ;;  %v4529_v17 = vld [vmem:[%s6633_s27 + $0x8] sm:$0xff] }
 0xc7b   :  { %5876 = vmatprep.subr.mxu1 %v7327_v12 }
 0xd33   :  { %v3720_v24 = vpop.f32.mrf.mxu1 }
 0xd35   :  { %v5851_v48 = vpop.f32.mrf.mxu1 }
 0xd36   :  { %v4528_v48 = vld [vmem:[%s6633_s27] sm:$0xff] }
 0xd37   :  { %v3795_v23 = vpop.f32.mrf.mxu1 }
 0xd38   :  { %v3799_v54 = vmax.f32 %v3720_v24, %v3795_v23  ;;  %v4544_v24 = vld [vmem:[%s6633_s27 + $0x80] sm:$0xff] }
 0xd39   :  { %v5856_v56 = vpop.f32.mrf.mxu1  ;;  %v4103_v23 = vld [vmem:[#allocation23] sm:$0x3] }
 0xd3a   :  { %5862 = vmatmul.mubr.msk.f32.vlgmr.msra.gmra.mxu0 %vm2498_vm2, %v3799_v54  ;;  %5869 = vmatmul.mubr.msk.f32.vlgmr.msra.gmra.mxu1 %vm2498_vm2, %v3799_v54  ;;  %v4184_v54 = vrot.slane %v4103_v23, %v1115_v59  ;;  %v4188_v56 = vrot.slane %v4103_v23, %v1119_v0 }
 0xd3b   :  { %5873 = vmatprep.mubr.msk.f32.mxu0 %vm6483_vm3, %v7327_v12  ;;  %5878 = vmatprep.mubr.msk.f32.mxu1 %vm6483_vm3, %v7327_v12 }
 0xdfa   :  { %v3871_v22 = vpop.f32.mrf.mxu0  ;;  %v3944_v21 = vpop.f32.mrf.mxu1 }
 0xdfb   :  { %v3948_v25 = vmax.f32 %v3871_v22, %v3944_v21 }
 0xdfc   :  { %v5863_v46 = vpop.f32.mrf.mxu0  ;;  %v5870_v49 = vpop.f32.mrf.mxu1 }
 0xdfd   :  { %5872 = vmatpush3.msk.msra.mxu0 %vm3954_vm5, %v3948_v25  ;;  %5877 = vmatpush3.msk.msra.mxu1 %vm3954_vm5, %v3948_v25 }
 0xdfe   :  { %5874 = vmatmul.mubr.msk.f32.vlgmr.msra.gmra.mxu0 %vm3950_vm6, %v3949_v20  ;;  %5879 = vmatmul.mubr.msk.f32.vlgmr.msra.gmra.mxu1 %vm3950_vm6, %v4029_v26 }
 0xdff   :  { %4139 = vmatprep.subr.mxu0 %v4105_v19  ;;  %4229 = vmatprep.subr.mxu1 %v4195_v44 }
 0xe00   :  { %4173 = vmatprep.mubr.f32.mxu0 %v7327_v12  ;;  %4263 = vmatprep.mubr.f32.mxu1 %v7327_v12 }
 0xe01   :  { %4140 = vmatpush1.msra.mxu0 %v4104_v51  ;;  %4230 = vmatpush1.msra.mxu1 %v4194_v18  ;;  %v4990_v51 = vld [vmem:[#allocation28] ss:$0 sm:$0xff] }
 0xe02   :  { %5881 = vmatprep.subr.mxu0 %v7327_v12  ;;  %5886 = vmatprep.subr.mxu1 %v7327_v12 }
 0xebe   :  { %v4024_v52 = vpop.f32.mrf.mxu0  ;;  %v4099_v14 = vpop.f32.mrf.mxu1 }
 0xebf   :  { %4986 = vmatmul.mubr.msk.f32.vlgmr.msra.gmra.mxu0 %vm3258_vm4, %v4024_v52  ;;  %4987 = vmatmul.mubr.msk.f32.vlgmr.msra.gmra.mxu1 %vm3258_vm4, %v4099_v14 }
 0xec0   :  { %5882 = vmatpush3.msra.mxu0 %v4284_v42  ;;  %5883 = vmatprep.mubr.msk.f32.mxu0 %vm6483_vm3, %v7327_v12  ;;  %v5875_v50 = vpop.f32.mrf.mxu0  ;;  %v5880_v8 = vpop.f32.mrf.mxu1 }
 0xec1   :  { %5887 = vmatpush3.msra.mxu1 %v4282_v40  ;;  %5888 = vmatprep.mubr.msk.f32.mxu1 %vm6483_vm3, %v7327_v12 }
 0xec2   :  { %5891 = vmatprep.subr.mxu0 %v7327_v12  ;;  %5347 = vmatprep.subr.mxu1 %v4559_v37 }
 0xec3   :  { %5884 = vmatmul.mubr.msk.f32.vlgmr.msra.gmra.mxu0 %vm3258_vm4, %v4099_v14  ;;  %5889 = vmatmul.mubr.msk.f32.vlgmr.msra.gmra.mxu1 %vm3258_vm4, %v4024_v52  ;;  %v4991_v14 = vld [vmem:[#allocation26] ss:$0 sm:$0xff] }
 0xec4   :  { %5907 = vmatprep.mubr.msk.f32.mxu0 %vm6483_vm3, %v7327_v12  ;;  %5348 = vmatpush3.msra.mxu1 %v4543_v38 }
 0xec5   :  { %5349 = vmatprep.subr.mxu1 %v4558_v5  ;;  %5892 = vmatpush3.msra.mxu0 %v4452_v33 }
 0xec6   :  { %5350 = vmatpush3.msra.mxu1 %v4542_v35  ;;  %5893 = vmatprep.subr.mxu0 %v7327_v12 }
 0xec7   :  { %5351 = vmatprep.subr.mxu1 %v4557_v45  ;;  %5894 = vmatpush3.msra.mxu0 %v4451_v31 }
 0xec8   :  { %5352 = vmatpush3.msra.mxu1 %v4541_v4  ;;  %5895 = vmatprep.subr.mxu0 %v7327_v12 }
 0xec9   :  { %5353 = vmatprep.subr.mxu1 %v4556_v43  ;;  %5896 = vmatpush3.msra.mxu0 %v4450_v2  ;;  %v4566_v2 = vld [vmem:[%s6633_s27 + $0x130] sm:$0xff] }
 0xeca   :  { %5354 = vmatpush3.msra.mxu1 %v4540_v3  ;;  %5897 = vmatprep.subr.mxu0 %v7327_v12 }
 0xecb   :  { %5355 = vmatprep.subr.mxu1 %v4555_v41  ;;  %5898 = vmatpush3.msra.mxu0 %v4449_v55  ;;  %v4563_v55 = vld [vmem:[%s6633_s27 + $0x118] sm:$0xff] }
 0xecc   :  { %5356 = vmatpush3.msra.mxu1 %v4539_v47  ;;  %5899 = vmatprep.subr.mxu0 %v7327_v12  ;;  %v4567_v47 = vld [vmem:[%s6633_s27 + $0x138] sm:$0xff] }
 0xecd   :  { %5357 = vmatprep.subr.mxu1 %v4554_v29  ;;  %5900 = vmatpush3.msra.mxu0 %v4448_v36  ;;  %v4565_v29 = vld [vmem:[%s6633_s27 + $0x128] sm:$0xff]  ;;  %v4560_v36 = vld [vmem:[%s6633_s27 + $0x100] sm:$0xff] }
 0xece   :  { %5358 = vmatpush3.msra.mxu1 %v4538_v39  ;;  %5901 = vmatprep.subr.mxu0 %v7327_v12  ;;  %v4564_v39 = vld [vmem:[%s6633_s27 + $0x120] sm:$0xff] }
 0xecf   :  { %5359 = vmatprep.subr.mxu1 %v4553_v1  ;;  %5902 = vmatpush3.msra.mxu0 %v4447_v34  ;;  %v4562_v1 = vld [vmem:[%s6633_s27 + $0x110] sm:$0xff] }
 0xed0   :  { %5360 = vmatpush3.msra.mxu1 %v4537_v27  ;;  %5903 = vmatprep.subr.mxu0 %v7327_v12  ;;  %v4561_v27 = vld [vmem:[%s6633_s27 + $0x108] sm:$0xff]  ;;  %s6382_s27 = scalar_lea.vmem %s4729_s23, 32 }
 0xed1   :  { %5361 = vmatprep.subr.mxu1 %v4552_v57  ;;  %5904 = vmatpush3.msra.mxu0 %v4446_v62  ;;  %p6383_p11 = scmp.ne.s32.totalorder %s4729_s23, %s6382_s27  ;;  %p6388_p13 = scmp.lt.s32.totalorder %s6382_s27, %s6382_s27 }
 0xed2   :  { %5362 = vmatpush3.msra.mxu1 %v4536_v58  ;;  %5905 = vmatprep.subr.mxu0 %v7327_v12 }
 0xed3   :  { %5363 = vmatprep.subr.mxu1 %v4551_v60  ;;  %5906 = vmatpush3.msra.mxu0 %v4445_v32  ;;  %p6389_p0 = por %p6388_p13, %p6387_p12 }
 0xed4   :  { %5364 = vmatpush3.msra.mxu1 %v4535_v61  ;;  %5910 = vmatprep.subr.mxu0 %v7327_v12 }
 0xed5   :  { %5365 = vmatprep.subr.mxu1 %v4550_v63  ;;  %p6390_p1 = pnand %p6389_p0, %p6383_p11 }
 0xed6   :  { %5366 = vmatpush3.msra.mxu1 %v4534_v6  ;;  %v4993_v6 = vld [vmem:[#allocation31] ss:$0 sm:$0xff] }
 0xed7   :  { %5367 = vmatprep.subr.mxu1 %v4549_v7 }
 0xed8   :  { %5368 = vmatpush3.msra.mxu1 %v4533_v30 }
 0xed9   :  { %5369 = vmatprep.subr.mxu1 %v4548_v9 }
 0xeda   :  { %5370 = vmatpush3.msra.mxu1 %v4532_v28 }
 0xedb   :  { %5371 = vmatprep.subr.mxu1 %v4547_v10 }
 0xedc   :  { %5372 = vmatpush3.msra.mxu1 %v4531_v11 }
 0xedd   :  { %5373 = vmatprep.subr.mxu1 %v4546_v13 }
 0xede   :  { %5374 = vmatpush3.msra.mxu1 %v4530_v15 }
 0xedf   :  { %5375 = vmatprep.subr.mxu1 %v4545_v16 }
 0xee0   :  { %5376 = vmatpush3.msra.mxu1 %v4529_v17 }
 0xee1   :  { %5377 = vmatprep.subr.mxu1 %v4544_v24 }
 0xee2   :  { %5378 = vmatpush3.msra.mxu1 %v4528_v48 }
 0xf7f   :  { %v4175_v22 = vpop.f32.mrf.mxu0  ;;  %v4265_v21 = vpop.f32.mrf.mxu1 }
 0xf80   :  { %v4191_v25 = vadd.f32 %v4184_v54, %v4175_v22 }
 0xf81   :  { %v4177_v20 = vpop.f32.mrf.mxu0  ;;  %v4267_v26 = vpop.f32.mrf.mxu1 }
 0xf82   :  { %v4270_v46 = vadd.f32 %v4265_v21, %v4191_v25  ;;  %v4192_v49 = vadd.f32 %v4188_v56, %v4177_v20 }
 0xf83   :  { %v4351_v19 = vpop.f32.mrf.mxu0  ;;  %v4421_v44 = vpop.f32.mrf.mxu1 }
 0xf84   :  { %v4272_v18 = vsub.f32 0.0, %v4270_v46  ;;  %v4271_v42 = vadd.f32 %v4267_v26, %v4192_v49  ;;  %v4422_v52 = vadd.f32 %v4421_v44, %v4351_v19 }
 0xf85   :  { %v5885_v40 = vpop.f32.mrf.mxu0  ;;  %v5890_v50 = vpop.f32.mrf.mxu1 }
 0xf86   :  { %v4274_v59 = vmul.f32 1.442695, %v4272_v18  ;;  %v4273_v8 = vsub.f32 0.0, %v4271_v42  ;;  %v4433_v53 = vadd.f32 %v4990_v51, %v4422_v52 }
 0xf88   :  { %5990 = vpow2.f32 %v4274_v59  ;;  %v4276_v0 = vmul.f32 1.442695, %v4273_v8  ;;  %v4440_v37 = vmul.f32 %v4991_v14, %v4433_v53 }
 0xf8a   :  { %5992 = vpow2.f32 %v4276_v0  ;;  %v4441_v38 = vmul.f32 %v4440_v37, %v4440_v37 }
 0xf8c   :  { %v4442_v5 = vsub.f32 0.0, %v4441_v38 }
 0xf8e   :  { %v4443_v35 = vmul.f32 1.442695, %v4442_v5 }
 0xf90   :  { %5994 = vpow2.f32 %v4443_v35 }
 0xf95   :  { %v5991_v45 = vpop.eup %5990 }
 0xf96   :  { %v4278_v33 = vadd.f32 1.0, %v5991_v45 }
 0xf97   :  { %v5993_v4 = vpop.eup %5992 }
 0xf98   :  { %v4279_v43 = vadd.f32 1.0, %v5993_v4 }
 0xf9a   :  { %5996 = vrcp.f32 %v4279_v43 }
 0xf9b   :  { %5998 = vrcp.f32 %v4278_v33 }
 0xf9d   :  { %v5995_v3 = vpop.eup %5994 }
 0xf9e   :  { %5908 = vmatmul.mubr.msk.f32.vlgmr.msra.gmra.mxu0 %vm389_vm0, %v5995_v3 }
 0xf9f   :  { %5926 = vmatprep.mubr.msk.f32.mxu0 %vm6483_vm3, %v7327_v12  ;;  %5911 = vmatpush3.msra.mxu0 %v4567_v47 }
 0xfa0   :  { %5912 = vmatprep.subr.mxu0 %v7327_v12 }
 0xfa1   :  { %5913 = vmatpush3.msra.mxu0 %v4566_v2 }
 0xfa2   :  { %5914 = vmatprep.subr.mxu0 %v7327_v12 }
 0xfa3   :  { %5915 = vmatpush3.msra.mxu0 %v4565_v29 }
 0xfa4   :  { %5916 = vmatprep.subr.mxu0 %v7327_v12 }
 0xfa5   :  { %5917 = vmatpush3.msra.mxu0 %v4564_v39 }
 0xfa6   :  { %5918 = vmatprep.subr.mxu0 %v7327_v12 }
 0xfa7   :  { %v5997_v31 = vpop.eup %5996  ;;  %5919 = vmatpush3.msra.mxu0 %v4563_v55 }
 0xfa8   :  { %v5999_v41 = vpop.eup %5998  ;;  %4642 = vmatprep.mubr.f32.mxu1 %v5997_v31  ;;  %5920 = vmatprep.subr.mxu0 %v7327_v12 }
 0xfa9   :  { %4643 = vmatmul.mubr.f32.vlgmr.msra.gmra.mxu1 %v5999_v41  ;;  %5921 = vmatpush3.msra.mxu0 %v4562_v1 }
 0xfaa   :  { %5922 = vmatprep.subr.mxu0 %v7327_v12 }
 0xfab   :  { %5923 = vmatpush3.msra.mxu0 %v4561_v27 }
 0xfac   :  { %5924 = vmatprep.subr.mxu0 %v7327_v12 }
 0xfad   :  { %5925 = vmatpush3.msra.mxu0 %v4560_v36 }
0x105e   :  { %v4522_v57 = vpop.f32.mrf.mxu0 }
0x105f   :  { %v4523_v58 = vadd.f32 1e-06, %v4522_v57 }
0x1060   :  { %v5909_v34 = vpop.f32.mrf.mxu0 }
0x1061   :  { %6000 = vrcp.f32 %v4523_v58 }
0x1069   :  { %v5379_v62 = vpop.f32.mrf.mxu1 }
0x106b   :  { %v5380_v32 = vpop.f32.mrf.mxu1 }
0x106c   :  { %v5381_v63 = vadd.f32 %v5380_v32, %v5379_v62 }
0x106e   :  { %v6001_v60 = vpop.eup %6000  ;;  %v4645_v7 = vadd.f32 %v5381_v63, %v4993_v6 }
0x106f   :  { %v4527_v61 = vmul.f32 %v6001_v60, %v5995_v3 }
0x1071   :  { %5927 = vmatmul.mubr.msk.f32.vlgmr.msra.gmra.mxu0 %vm389_vm0, %v4527_v61 }
0x1131   :  { %v4714_v30 = vpop.f32.mrf.mxu0 }
0x1132   :  { %v4715_v9 = vadd.f32 %v4714_v30, %v4645_v7 }
0x1133   :  { %v5928_v12 = vpop.f32.mrf.mxu0 }
0x1134   :  { %4719 = vst.msk [vmem:[#allocation32] sm:$0x3] %vm4718_vm7, %v4715_v9 }
0x1135   :  { %6393 = shalt.err (!%p6390_p1)
}
0x1136   :  { %4731 = dma.vmem_to_hbm [thread:$0]  %s4729_s23, 32, %s6648_s20, [#allocation4]  }
0x1137   :  { %6422 = dma.done.wait [#allocation4], 32  }
0x1138   :  { %6423 = vsyncadd [#allocation4], 4294967264 }
0x1139   :  { %4737 = vsyncpa [#allocation3], 1 }
0x113a   :  { %4738 = vsyncpa [#allocation6], 1 }
0x113b   :  { %4739 = vsyncpa [#allocation9], 1 }
0x113c   :  { %4740 = vsyncpa [#allocation12], 1 }
0x113d   :  { %4741 = vsyncpa [#allocation15], 1 }
0x113e   :  { %4742 = vsyncpa [#allocation18], 1 }
0x113f   :  { %4743 = vsyncpa [#allocation21], 1 }
0x1140   :  { %4744 = vsyncpa [#allocation24], 1 }
0x1141   :  { %4745 = vsyncpa [#allocation27], 1 }
0x1142   :  { %4746 = vsyncpa [#allocation30], 1 }
0x1143   :  { %4747 = vsyncpa [#allocation4], 1 }

</bundles_post_ra>
